<compile_context>
chip_gen: v5e
topology: v5e:2x2
jax: 0.10.0
libtpu: 0.0.40
codegen_flags: <defaults>
</compile_context>

<pallas_src>
import jax
import jax.numpy as jnp
import numpy as np
from jax.experimental import pallas as pl
from jax.experimental.pallas import tpu as pltpu  # noqa: F401  (TPU backend)

BN_EPS = 1e-5     # nn.BatchNorm2d default
L2_EPS = 1e-12    # F.normalize default


def _fused_kernel(gx_ref, gw_ref, gb_ref, lx_ref, lw_ref, lb_ref,
                  segr_ref, sege_ref, gout_ref, lout_ref):
    """Single fused step: global projection head + local IMIM head.

    All operands are fully resident in VMEM (no grid): batch is folded into
    the lane axis so both heads are one MXU matmul each plus a small epilogue.
    """
    # ---------- global path: Linear -> L2 normalize over features ----------
    yg = jnp.dot(gx_ref[...], gw_ref[...],
                 preferred_element_type=jnp.float32) + gb_ref[...]      # (B, G) f32
    ssg = jnp.sum(yg * yg, axis=-1, keepdims=True)
    gout_ref[...] = (yg * jax.lax.rsqrt(jnp.maximum(ssg, L2_EPS * L2_EPS))
                     ).astype(gout_ref.dtype)

    # -------- local path: (BN-folded) 1x1 conv -> per-(b,h) width L2 norm --------
    y = jnp.dot(lw_ref[...], lx_ref[...],
                preferred_element_type=jnp.float32) + lb_ref[...]       # (G, Np) f32
    # sum of squares over each width segment via a thin 0/1 reduce mask
    # (bf16 operands, f32 accumulation) — no in-kernel lane reshape, no O(HW^2).
    ss = jnp.dot((y * y).astype(jnp.bfloat16), segr_ref[...],
                 preferred_element_type=jnp.float32)                    # (G, B*H)
    inv = jax.lax.rsqrt(jnp.maximum(ss, L2_EPS * L2_EPS))               # = 1/max(||.||, eps)
    # broadcast the per-segment scale back to lanes with the expand mask.
    inv_full = jnp.dot(inv.astype(jnp.bfloat16), sege_ref[...],
                       preferred_element_type=jnp.float32)              # (G, Np)
    lout_ref[...] = (y * inv_full).astype(lout_ref.dtype)


@jax.jit
def image_heading_forward(global_image, local_image, kp):
    """global_image: (B, Dg) f32, local_image: (B, C, H, W) f32.

    Returns (global_out (B, G) f32, local_out (B, G, H, W) f32) — same shapes
    and layout as the PyTorch module.
    """
    B, Dg = global_image.shape
    _, C, H, W = local_image.shape
    HW = H * W
    N = B * HW
    Np = kp["segr"].shape[0]          # lane-padded width (multiple of 128)
    G = kp["gw"].shape[1]

    # bf16 MXU inputs; accumulation / epilogue stay f32 inside the kernel.
    gx = global_image.astype(jnp.bfloat16)
    # fold batch into the lane axis: (B, C, H, W) -> (C, B*H*W), pad lanes.
    lx = jnp.transpose(local_image, (1, 0, 2, 3)).reshape(C, N)
    lx = jnp.pad(lx, ((0, 0), (0, Np - N))).astype(jnp.bfloat16)

    g_out, l_flat = pl.pallas_call(
        _fused_kernel,
        out_shape=(jax.ShapeDtypeStruct((B, G), jnp.float32),
                   jax.ShapeDtypeStruct((G, Np), jnp.float32)),
    )(gx, kp["gw"], kp["gb"], lx, kp["lw"], kp["lb"], kp["segr"], kp["sege"])

    # drop lane padding and restore PyTorch NCHW layout.
    l_out = jnp.transpose(l_flat[:, :N].reshape(G, B, H, W), (1, 0, 2, 3))
    return g_out, l_out


# ----------------------------------------------------------------------------
# Parameter construction (PyTorch-style) and kernel-side folding
# ----------------------------------------------------------------------------
def init_torch_style_params(key, feature_dim, gl_img_dim):
    C = feature_dim // 2
    ks = jax.random.split(key, 8)
    bp = 1.0 / float(np.sqrt(feature_dim))   # nn.Linear default bound
    bc = 1.0 / float(np.sqrt(C))             # 1x1 Conv2d default bound
    return dict(
        proj_w=jax.random.uniform(ks[0], (gl_img_dim, feature_dim), jnp.float32, -bp, bp),
        proj_b=jax.random.uniform(ks[1], (gl_img_dim,), jnp.float32, -bp, bp),
        conv_w=jax.random.uniform(ks[2], (gl_img_dim, C), jnp.float32, -bc, bc),
        conv_b=jax.random.uniform(ks[3], (gl_img_dim,), jnp.float32, -bc, bc),
        bn_gamma=jax.random.uniform(ks[4], (C,), jnp.float32, 0.5, 1.5),
        bn_beta=0.1 * jax.random.normal(ks[5], (C,), jnp.float32),
        bn_mean=0.1 * jax.random.normal(ks[6], (C,), jnp.float32),
        bn_var=jax.random.uniform(ks[7], (C,), jnp.float32, 0.5, 1.5),
    )


def fold_kernel_params(p, B, H, W):
    """Fold eval-mode BatchNorm into the 1x1 conv; build kernel-layout params."""
    HW = H * W
    N = B * HW
    Np = ((N + 127) // 128) * 128          # lane-pad flattened (batch, h, w) axis
    BH = B * H

    scale = p["bn_gamma"] / jnp.sqrt(p["bn_var"] + BN_EPS)          # (C,)
    shift = p["bn_beta"] - p["bn_mean"] * scale                     # (C,)
    lw = (p["conv_w"] * scale[None, :]).astype(jnp.bfloat16)        # (G, C)
    lb = (p["conv_b"] + p["conv_w"] @ shift).reshape(-1, 1)         # (G, 1) f32
    gw = jnp.transpose(p["proj_w"]).astype(jnp.bfloat16)            # (Dg, G)
    gb = p["proj_b"].reshape(1, -1)                                 # (1, G) f32

    # asymmetric width-segment masks (exact 0/1 values -> bf16 lossless).
    lane = np.arange(Np)
    seg_of_lane = lane // W                  # = b*H + h for real lanes
    valid = lane < N
    segr = np.zeros((Np, BH), np.float32)    # reduce: lane -> segment
    segr[lane[valid], seg_of_lane[valid]] = 1.0
    sege = segr.T.copy()                     # expand: segment -> lane (0 on padding)

    return dict(gw=gw, gb=gb, lw=lw, lb=lb,
                segr=jnp.asarray(segr, jnp.bfloat16),
                sege=jnp.asarray(sege, jnp.bfloat16))


# ----------------------------------------------------------------------------
# Pure-jnp f32 reference of the PyTorch forward (for the sanity check)
# ----------------------------------------------------------------------------
def reference_forward(global_image, local_image, p):
    # ProjectionHead (dropout is identity at inference)
    y = global_image @ p["proj_w"].T + p["proj_b"][None, :]
    y = y / jnp.maximum(jnp.sqrt(jnp.sum(y * y, axis=-1, keepdims=True)), L2_EPS)

    # IMIM: eval-mode BN -> 1x1 conv -> L2 normalize along width
    scale = p["bn_gamma"] / jnp.sqrt(p["bn_var"] + BN_EPS)
    xhat = ((local_image - p["bn_mean"][None, :, None, None])
            * scale[None, :, None, None] + p["bn_beta"][None, :, None, None])
    z = jnp.einsum("oc,bchw->bohw", p["conv_w"], xhat) \
        + p["conv_b"][None, :, None, None]
    z = z / jnp.maximum(jnp.sqrt(jnp.sum(z * z, axis=-1, keepdims=True)), L2_EPS)
    return y, z


if __name__ == "__main__":
    key = jax.random.PRNGKey(0)
    k_param, k_g, k_l = jax.random.split(key, 3)

    B = 2
    feature_dim = 512            # ImageHeading default
    gl_img_dim = 256             # args.gl_img_dim (lane-dense choice)
    C = feature_dim // 2         # IMIM channel_dim
    H = W = 14                   # implied by LayerNorm([channel_dim, 14, 14])

    torch_params = init_torch_style_params(k_param, feature_dim, gl_img_dim)
    kernel_params = fold_kernel_params(torch_params, B, H, W)

    global_image = jax.random.normal(k_g, (B, feature_dim), dtype=jnp.float32)
    local_image = jax.random.normal(k_l, (B, C, H, W), dtype=jnp.float32)

    g_out, l_out = image_heading_forward(global_image, local_image, kernel_params)
    g_out = jax.block_until_ready(g_out)
    l_out = jax.block_until_ready(l_out)

    g_ref, l_ref = reference_forward(global_image, local_image, torch_params)

    assert g_out.shape == (B, gl_img_dim), g_out.shape
    assert l_out.shape == (B, gl_img_dim, H, W), l_out.shape
    # loose tolerance: kernel uses bf16 MXU inputs (f32 accumulation/epilogue)
    assert jnp.allclose(g_out, g_ref, atol=3e-2, rtol=3e-2), \
        f"global mismatch, max|d|={float(jnp.max(jnp.abs(g_out - g_ref)))}"
    assert jnp.allclose(l_out, l_ref, atol=3e-2, rtol=3e-2), \
        f"local mismatch, max|d|={float(jnp.max(jnp.abs(l_out - l_ref)))}"

    print("KERNEL_OK")
</pallas_src>

<mosaic_0001>
module attributes {stable_mosaic.version = 11 : i64} {
  func.func @_fused_kernel(%arg0: memref<2x512xbf16, #tpu.memory_space<vmem>>, %arg1: memref<512x256xbf16, #tpu.memory_space<vmem>>, %arg2: memref<1x256xf32, #tpu.memory_space<vmem>>, %arg3: memref<256x512xbf16, #tpu.memory_space<vmem>>, %arg4: memref<256x256xbf16, #tpu.memory_space<vmem>>, %arg5: memref<256x1xf32, #tpu.memory_space<vmem>>, %arg6: memref<512x28xbf16, #tpu.memory_space<vmem>>, %arg7: memref<28x512xbf16, #tpu.memory_space<vmem>>, %arg8: memref<2x256xf32, #tpu.memory_space<vmem>>, %arg9: memref<256x512xf32, #tpu.memory_space<vmem>>) attributes {dimension_semantics = [], scalar_prefetch = 0 : i64, scratch_operands = 0 : i64, tpu.core_type = #tpu.core_type<tc>} {
    %c0 = arith.constant 0 : index
    %c0_0 = arith.constant 0 : index
    %0 = vector.load %arg0[%c0, %c0_0] : memref<2x512xbf16, #tpu.memory_space<vmem>>, vector<2x512xbf16>
    %c0_1 = arith.constant 0 : index
    %c0_2 = arith.constant 0 : index
    %1 = vector.load %arg1[%c0_1, %c0_2] : memref<512x256xbf16, #tpu.memory_space<vmem>>, vector<512x256xbf16>
    %cst = arith.constant dense<0.000000e+00> : vector<2x256xf32>
    %2 = tpu.matmul %0, %1, %cst {dimension_numbers = #tpu.dot_dimension_numbers<[1], [0], [0], [1], [0, 0, 1, 1], [], []>} : vector<2x512xbf16>, vector<512x256xbf16>, vector<2x256xf32> -> vector<2x256xf32>
    %c0_3 = arith.constant 0 : index
    %c0_4 = arith.constant 0 : index
    %3 = vector.load %arg2[%c0_3, %c0_4] : memref<1x256xf32, #tpu.memory_space<vmem>>, vector<1x256xf32>
    %4 = vector.broadcast %3 : vector<1x256xf32> to vector<2x256xf32>
    %5 = arith.addf %2, %4 : vector<2x256xf32>
    %6 = arith.mulf %5, %5 : vector<2x256xf32>
    %cst_5 = arith.constant dense<0.000000e+00> : vector<2xf32>
    %7 = vector.multi_reduction <add>, %6, %cst_5 [1] : vector<2x256xf32> to vector<2xf32>
    %8 = vector.shape_cast %7 : vector<2xf32> to vector<2x1xf32>
    %cst_6 = arith.constant 1.000000e-24 : f32
    %9 = vector.broadcast %cst_6 : f32 to vector<2x1xf32>
    %10 = arith.maximumf %8, %9 : vector<2x1xf32>
    %11 = math.rsqrt %10 : vector<2x1xf32>
    %12 = vector.broadcast %11 : vector<2x1xf32> to vector<2x256xf32>
    %13 = arith.mulf %5, %12 : vector<2x256xf32>
    %c0_7 = arith.constant 0 : index
    %c0_8 = arith.constant 0 : index
    %14 = vector.load %arg8[%c0_7, %c0_8] : memref<2x256xf32, #tpu.memory_space<vmem>>, vector<2x256xf32>
    tpu.vector_store %arg8[%c0_7, %c0_8], %13 {strides = array<i32>} : memref<2x256xf32, #tpu.memory_space<vmem>>, vector<2x256xf32>,
    %c0_9 = arith.constant 0 : index
    %c0_10 = arith.constant 0 : index
    %15 = vector.load %arg4[%c0_9, %c0_10] : memref<256x256xbf16, #tpu.memory_space<vmem>>, vector<256x256xbf16>
    %c0_11 = arith.constant 0 : index
    %c0_12 = arith.constant 0 : index
    %16 = vector.load %arg3[%c0_11, %c0_12] : memref<256x512xbf16, #tpu.memory_space<vmem>>, vector<256x512xbf16>
    %cst_13 = arith.constant dense<0.000000e+00> : vector<256x512xf32>
    %17 = tpu.matmul %15, %16, %cst_13 {dimension_numbers = #tpu.dot_dimension_numbers<[1], [0], [0], [1], [0, 0, 1, 1], [], []>} : vector<256x256xbf16>, vector<256x512xbf16>, vector<256x512xf32> -> vector<256x512xf32>
    %c0_14 = arith.constant 0 : index
    %c0_15 = arith.constant 0 : index
    %18 = vector.load %arg5[%c0_14, %c0_15] : memref<256x1xf32, #tpu.memory_space<vmem>>, vector<256x1xf32>
    %19 = vector.broadcast %18 : vector<256x1xf32> to vector<256x512xf32>
    %20 = arith.addf %17, %19 : vector<256x512xf32>
    %21 = arith.mulf %20, %20 : vector<256x512xf32>
    %22 = arith.truncf %21 : vector<256x512xf32> to vector<256x512xbf16>
    %c0_16 = arith.constant 0 : index
    %c0_17 = arith.constant 0 : index
    %23 = vector.load %arg6[%c0_16, %c0_17] : memref<512x28xbf16, #tpu.memory_space<vmem>>, vector<512x28xbf16>
    %cst_18 = arith.constant dense<0.000000e+00> : vector<256x28xf32>
    %24 = tpu.matmul %22, %23, %cst_18 {dimension_numbers = #tpu.dot_dimension_numbers<[1], [0], [0], [1], [0, 0, 1, 1], [], []>} : vector<256x512xbf16>, vector<512x28xbf16>, vector<256x28xf32> -> vector<256x28xf32>
    %cst_19 = arith.constant 1.000000e-24 : f32
    %25 = vector.broadcast %cst_19 : f32 to vector<256x28xf32>
    %26 = arith.maximumf %24, %25 : vector<256x28xf32>
    %27 = math.rsqrt %26 : vector<256x28xf32>
    %28 = arith.truncf %27 : vector<256x28xf32> to vector<256x28xbf16>
    %c0_20 = arith.constant 0 : index
    %c0_21 = arith.constant 0 : index
    %29 = vector.load %arg7[%c0_20, %c0_21] : memref<28x512xbf16, #tpu.memory_space<vmem>>, vector<28x512xbf16>
    %cst_22 = arith.constant dense<0.000000e+00> : vector<256x512xf32>
    %30 = tpu.matmul %28, %29, %cst_22 {dimension_numbers = #tpu.dot_dimension_numbers<[1], [0], [0], [1], [0, 0, 1, 1], [], []>} : vector<256x28xbf16>, vector<28x512xbf16>, vector<256x512xf32> -> vector<256x512xf32>
    %31 = arith.mulf %20, %30 : vector<256x512xf32>
    %c0_23 = arith.constant 0 : index
    %c0_24 = arith.constant 0 : index
    %32 = vector.load %arg9[%c0_23, %c0_24] : memref<256x512xf32, #tpu.memory_space<vmem>>, vector<256x512xf32>
    tpu.vector_store %arg9[%c0_23, %c0_24], %31 {strides = array<i32>} : memref<256x512xf32, #tpu.memory_space<vmem>>, vector<256x512xf32>,
    return
  }
}

</mosaic_0001>

<bundles_post_ra>
// kernel: image_heading_forward.1
= control target key start
LH: loop header
LB: loop body
LE: loop exit
PB: predicated region body
PF: predicated region fallthrough
CT: control target
= control target key end

     0   :  { %s8195_s0 = inlined_call_operand.vmem [shape: bf16[2,512], index: 0, kind: input, shape index: {}]   ;;  %s8196_s1 = inlined_call_operand.vmem [shape: bf16[512,256], index: 1, kind: input, shape index: {}]   ;;  %s8197_s2 = inlined_call_operand.vmem [shape: f32[1,256], index: 2, kind: input, shape index: {}]   ;;  %s8198_s3 = inlined_call_operand.vmem [shape: bf16[256,512], index: 3, kind: input, shape index: {}]   ;;  %s8199_s4 = inlined_call_operand.vmem [shape: bf16[256,256], index: 4, kind: input, shape index: {}]   ;;  %s8200_s5 = inlined_call_operand.vmem [shape: f32[256,1], index: 5, kind: input, shape index: {}]   ;;  %s8201_s6 = inlined_call_operand.vmem [shape: bf16[512,28], index: 6, kind: input, shape index: {}]   ;;  %s8202_s7 = inlined_call_operand.vmem [shape: bf16[28,512], index: 7, kind: input, shape index: {}]   ;;  %s8203_s8 = inlined_call_operand.hbm [shape: f32[2,256], index: 8, kind: output, shape index: {0}]   ;;  %s8204_s9 = inlined_call_operand.vmem [shape: f32[256,512], index: 9, kind: output, shape index: {1}]  }
   0x1   :  { %v4013_v0 = vld [vmem:[%s8196_s1 + $0x70] sm:$0xf]  ;;  %v4834_v1 = vld [vmem:[%s8196_s1 + $0x74] sm:$0xf0]  ;;  %v4005_v11 = vld [vmem:[%s8196_s1 + $0x60] sm:$0xf] }
   0x2   :  { %v4077_v2 = vld [vmem:[%s8196_s1 + $0xf0] sm:$0xf]  ;;  %v4014_v3 = vor.u32 %v4834_v1, %v4013_v0  ;;  %v4850_v4 = vld [vmem:[%s8196_s1 + $0xf4] sm:$0xf0]  ;;  %v4832_v13 = vld [vmem:[%s8196_s1 + $0x64] sm:$0xf0] }
   0x3   :  { %v4141_v5 = vld [vmem:[%s8196_s1 + $0x170] sm:$0xf]  ;;  %v4866_v6 = vld [vmem:[%s8196_s1 + $0x174] sm:$0xf0]  ;;  %v4078_v7 = vor.u32 %v4850_v4, %v4077_v2  ;;  %v4069_v14 = vld [vmem:[%s8196_s1 + $0xe0] sm:$0xf]  ;;  %v4006_v16 = vor.u32 %v4832_v13, %v4005_v11 }
   0x4   :  { %v4142_v8 = vor.u32 %v4866_v6, %v4141_v5  ;;  %v4205_v9 = vld [vmem:[%s8196_s1 + $0x1f0] sm:$0xf]  ;;  %v4882_v10 = vld [vmem:[%s8196_s1 + $0x1f4] sm:$0xf0]  ;;  %434 = vmatpush.bf16.msra.mxu0 %v4014_v3  ;;  %v4848_v15 = vld [vmem:[%s8196_s1 + $0xe4] sm:$0xf0] }
   0x5   :  { %v4206_v12 = vor.u32 %v4882_v10, %v4205_v9  ;;  %447 = vmatpush.bf16.msra.mxu1 %v4078_v7  ;;  %v4070_v17 = vor.u32 %v4848_v15, %v4069_v14  ;;  %v4133_v18 = vld [vmem:[%s8196_s1 + $0x160] sm:$0xf]  ;;  %v4864_v19 = vld [vmem:[%s8196_s1 + $0x164] sm:$0xf0]  ;;  %v3997_v23 = vld [vmem:[%s8196_s1 + $0x50] sm:$0xf] }
   0x6   :  { %460 = vmatpush.bf16.msra.mxu2 %v4142_v8  ;;  %v4197_v20 = vld [vmem:[%s8196_s1 + $0x1e0] sm:$0xf]  ;;  %v4134_v21 = vor.u32 %v4864_v19, %v4133_v18  ;;  %v4880_v22 = vld [vmem:[%s8196_s1 + $0x1e4] sm:$0xf0]  ;;  %v4830_v24 = vld [vmem:[%s8196_s1 + $0x54] sm:$0xf0] }
   0x7   :  { %473 = vmatpush.bf16.msra.mxu3 %v4206_v12  ;;  %v4198_v25 = vor.u32 %v4880_v22, %v4197_v20  ;;  %v4061_v26 = vld [vmem:[%s8196_s1 + $0xd0] sm:$0xf]  ;;  %v4846_v27 = vld [vmem:[%s8196_s1 + $0xd4] sm:$0xf0]  ;;  %v3998_v29 = vor.u32 %v4830_v24, %v3997_v23  ;;  %v3989_v35 = vld [vmem:[%s8196_s1 + $0x40] sm:$0xf] }
   0x8   :  { %v4125_v28 = vld [vmem:[%s8196_s1 + $0x150] sm:$0xf]  ;;  %435 = vmatpush.bf16.msra.mxu0 %v4006_v16  ;;  %v4862_v30 = vld [vmem:[%s8196_s1 + $0x154] sm:$0xf0]  ;;  %v4062_v33 = vor.u32 %v4846_v27, %v4061_v26  ;;  %v4828_v36 = vld [vmem:[%s8196_s1 + $0x44] sm:$0xf0] }
   0x9   :  { %v4189_v31 = vld [vmem:[%s8196_s1 + $0x1d0] sm:$0xf]  ;;  %v4878_v32 = vld [vmem:[%s8196_s1 + $0x1d4] sm:$0xf0]  ;;  %448 = vmatpush.bf16.msra.mxu1 %v4070_v17  ;;  %v4126_v34 = vor.u32 %v4862_v30, %v4125_v28  ;;  %v4053_v37 = vld [vmem:[%s8196_s1 + $0xc0] sm:$0xf]  ;;  %v3990_v44 = vor.u32 %v4828_v36, %v3989_v35 }
   0xa   :  { %461 = vmatpush.bf16.msra.mxu2 %v4134_v21  ;;  %v4190_v38 = vor.u32 %v4878_v32, %v4189_v31  ;;  %v4844_v39 = vld [vmem:[%s8196_s1 + $0xc4] sm:$0xf0]  ;;  %v4117_v40 = vld [vmem:[%s8196_s1 + $0x140] sm:$0xf]  ;;  %v3981_v47 = vld [vmem:[%s8196_s1 + $0x30] sm:$0xf] }
   0xb   :  { %474 = vmatpush.bf16.msra.mxu3 %v4198_v25  ;;  %v4860_v41 = vld [vmem:[%s8196_s1 + $0x144] sm:$0xf0]  ;;  %v4181_v42 = vld [vmem:[%s8196_s1 + $0x1c0] sm:$0xf]  ;;  %v4054_v45 = vor.u32 %v4844_v39, %v4053_v37  ;;  %v4826_v48 = vld [vmem:[%s8196_s1 + $0x34] sm:$0xf0] }
   0xc   :  { %v4876_v43 = vld [vmem:[%s8196_s1 + $0x1c4] sm:$0xf0]  ;;  %436 = vmatpush.bf16.msra.mxu0 %v3998_v29  ;;  %v4118_v46 = vor.u32 %v4860_v41, %v4117_v40  ;;  %v4045_v49 = vld [vmem:[%s8196_s1 + $0xb0] sm:$0xf]  ;;  %v4842_v51 = vld [vmem:[%s8196_s1 + $0xb4] sm:$0xf0]  ;;  %v3982_v56 = vor.u32 %v4826_v48, %v3981_v47 }
   0xd   :  { %449 = vmatpush.bf16.msra.mxu1 %v4062_v33  ;;  %v4182_v50 = vor.u32 %v4876_v43, %v4181_v42  ;;  %v4109_v52 = vld [vmem:[%s8196_s1 + $0x130] sm:$0xf]  ;;  %v4858_v53 = vld [vmem:[%s8196_s1 + $0x134] sm:$0xf0]  ;;  %v4046_v57 = vor.u32 %v4842_v51, %v4045_v49  ;;  %v3973_v59 = vld [vmem:[%s8196_s1 + $0x20] sm:$0xf] }
   0xe   :  { %462 = vmatpush.bf16.msra.mxu2 %v4126_v34  ;;  %v4173_v54 = vld [vmem:[%s8196_s1 + $0x1b0] sm:$0xf]  ;;  %v4874_v55 = vld [vmem:[%s8196_s1 + $0x1b4] sm:$0xf0]  ;;  %v4110_v58 = vor.u32 %v4858_v53, %v4109_v52  ;;  %v4824_v60 = vld [vmem:[%s8196_s1 + $0x24] sm:$0xf0] }
   0xf   :  { %475 = vmatpush.bf16.msra.mxu3 %v4190_v38  ;;  %v4037_v61 = vld [vmem:[%s8196_s1 + $0xa0] sm:$0xf]  ;;  %v4174_v62 = vor.u32 %v4874_v55, %v4173_v54  ;;  %v4840_v63 = vld [vmem:[%s8196_s1 + $0xa4] sm:$0xf0]  ;;  %v3974_v4 = vor.u32 %v4824_v60, %v3973_v59  ;;  %v3965_v7 = vld [vmem:[%s8196_s1 + $0x10] sm:$0xf] }
  0x10   :  { %437 = vmatpush.bf16.msra.mxu0 %v3990_v44  ;;  %v4101_v0 = vld [vmem:[%s8196_s1 + $0x120] sm:$0xf]  ;;  %v4856_v1 = vld [vmem:[%s8196_s1 + $0x124] sm:$0xf0]  ;;  %v4038_v5 = vor.u32 %v4840_v63, %v4037_v61  ;;  %v4822_v8 = vld [vmem:[%s8196_s1 + $0x14] sm:$0xf0] }
  0x11   :  { %450 = vmatpush.bf16.msra.mxu1 %v4054_v45  ;;  %v4165_v2 = vld [vmem:[%s8196_s1 + $0x1a0] sm:$0xf]  ;;  %v4872_v3 = vld [vmem:[%s8196_s1 + $0x1a4] sm:$0xf0]  ;;  %v4102_v6 = vor.u32 %v4856_v1, %v4101_v0  ;;  %v4029_v9 = vld [vmem:[%s8196_s1 + $0x90] sm:$0xf]  ;;  %v3966_v16 = vor.u32 %v4822_v8, %v3965_v7 }
  0x12   :  { %463 = vmatpush.bf16.msra.mxu2 %v4118_v46  ;;  %v4166_v10 = vor.u32 %v4872_v3, %v4165_v2  ;;  %v4838_v11 = vld [vmem:[%s8196_s1 + $0x94] sm:$0xf0]  ;;  %v4093_v12 = vld [vmem:[%s8196_s1 + $0x110] sm:$0xf]  ;;  %v3957_v17 = vld [vmem:[%s8196_s1] sm:$0xf] }
  0x13   :  { %476 = vmatpush.bf16.msra.mxu3 %v4182_v50  ;;  %v4854_v13 = vld [vmem:[%s8196_s1 + $0x114] sm:$0xf0]  ;;  %v4157_v14 = vld [vmem:[%s8196_s1 + $0x190] sm:$0xf]  ;;  %v4820_v18 = vld [vmem:[%s8196_s1 + $0x4] sm:$0xf0]  ;;  %v4030_v19 = vor.u32 %v4838_v11, %v4029_v9 }
  0x14   :  { %438 = vmatpush.bf16.msra.mxu0 %v3982_v56  ;;  %v4870_v15 = vld [vmem:[%s8196_s1 + $0x194] sm:$0xf0]  ;;  %v4094_v20 = vor.u32 %v4854_v13, %v4093_v12  ;;  %v4021_v21 = vld [vmem:[%s8196_s1 + $0x80] sm:$0xf]  ;;  %v4836_v22 = vld [vmem:[%s8196_s1 + $0x84] sm:$0xf0]  ;;  %v3958_v31 = vor.u32 %v4820_v18, %v3957_v17 }
  0x15   :  { %451 = vmatpush.bf16.msra.mxu1 %v4046_v57  ;;  %v4085_v23 = vld [vmem:[%s8196_s1 + $0x100] sm:$0xf]  ;;  %v4158_v24 = vor.u32 %v4870_v15, %v4157_v14  ;;  %v4852_v25 = vld [vmem:[%s8196_s1 + $0x104] sm:$0xf0]  ;;  %v4833_v28 = vld [vmem:[%s8196_s1 + $0x74] sm:$0xf]  ;;  %v4022_v35 = vor.u32 %v4836_v22, %v4021_v21 }
  0x16   :  { %464 = vmatpush.bf16.msra.mxu2 %v4110_v58  ;;  %v4149_v26 = vld [vmem:[%s8196_s1 + $0x180] sm:$0xf]  ;;  %v4868_v27 = vld [vmem:[%s8196_s1 + $0x184] sm:$0xf0]  ;;  %v4015_v29 = vld [vmem:[%s8196_s1 + $0x78] sm:$0xf0]  ;;  %v4086_v36 = vor.u32 %v4852_v25, %v4085_v23 }
  0x17   :  { %477 = vmatpush.bf16.msra.mxu3 %v4174_v62  ;;  %v4849_v30 = vld [vmem:[%s8196_s1 + $0xf4] sm:$0xf]  ;;  %v4079_v32 = vld [vmem:[%s8196_s1 + $0xf8] sm:$0xf0]  ;;  %v4150_v39 = vor.u32 %v4868_v27, %v4149_v26  ;;  %v4018_v40 = vor.u32 %v4833_v28, %v4015_v29  ;;  %v4831_v43 = vld [vmem:[%s8196_s1 + $0x64] sm:$0xf] }
  0x18   :  { %439 = vmatpush.bf16.msra.mxu0 %v3974_v4  ;;  %v4865_v33 = vld [vmem:[%s8196_s1 + $0x174] sm:$0xf]  ;;  %v4143_v34 = vld [vmem:[%s8196_s1 + $0x178] sm:$0xf0]  ;;  %v4082_v41 = vor.u32 %v4849_v30, %v4079_v32  ;;  %v4007_v44 = vld [vmem:[%s8196_s1 + $0x68] sm:$0xf0] }
  0x19   :  { %452 = vmatpush.bf16.msra.mxu1 %v4038_v5  ;;  %v4881_v37 = vld [vmem:[%s8196_s1 + $0x1f4] sm:$0xf]  ;;  %v4207_v38 = vld [vmem:[%s8196_s1 + $0x1f8] sm:$0xf0]  ;;  %v4146_v42 = vor.u32 %v4865_v33, %v4143_v34  ;;  %v4847_v45 = vld [vmem:[%s8196_s1 + $0xe4] sm:$0xf]  ;;  %v4010_v53 = vor.u32 %v4831_v43, %v4007_v44 }
  0x1a   :  { %465 = vmatpush.bf16.msra.mxu2 %v4102_v6  ;;  %v4210_v46 = vor.u32 %v4881_v37, %v4207_v38  ;;  %v4071_v47 = vld [vmem:[%s8196_s1 + $0xe8] sm:$0xf0]  ;;  %v4863_v48 = vld [vmem:[%s8196_s1 + $0x164] sm:$0xf]  ;;  %v33_v52 = vld [vmem:[%s8195_s0] sm:$0xf] }
  0x1b   :  { %478 = vmatpush.bf16.msra.mxu3 %v4166_v10  ;;  %v4135_v49 = vld [vmem:[%s8196_s1 + $0x168] sm:$0xf0]  ;;  %v4879_v50 = vld [vmem:[%s8196_s1 + $0x1e4] sm:$0xf]  ;;  %105 = vst [vmem:[#allocation1] ss:$9 sm:$0xff] %v33_v52  ;;  %v4074_v54 = vor.u32 %v4847_v45, %v4071_v47 }
  0x1c   :  { %440 = vmatpush.bf16.msra.mxu0 %v3966_v16  ;;  %v4199_v51 = vld [vmem:[%s8196_s1 + $0x1e8] sm:$0xf0]  ;;  %v4138_v55 = vor.u32 %v4863_v48, %v4135_v49  ;;  %v4829_v56 = vld [vmem:[%s8196_s1 + $0x54] sm:$0xf]  ;;  %v3999_v57 = vld [vmem:[%s8196_s1 + $0x58] sm:$0xf0] }
  0x1d   :  { %453 = vmatpush.bf16.msra.mxu1 %v4030_v19  ;;  %v4845_v58 = vld [vmem:[%s8196_s1 + $0xd4] sm:$0xf]  ;;  %v4202_v59 = vor.u32 %v4879_v50, %v4199_v51  ;;  %v4063_v60 = vld [vmem:[%s8196_s1 + $0xd8] sm:$0xf0]  ;;  %v4002_v1 = vor.u32 %v4829_v56, %v3999_v57  ;;  %v4827_v2 = vld [vmem:[%s8196_s1 + $0x44] sm:$0xf] }
  0x1e   :  { %466 = vmatpush.bf16.msra.mxu2 %v4094_v20  ;;  %v4861_v61 = vld [vmem:[%s8196_s1 + $0x154] sm:$0xf]  ;;  %v4127_v62 = vld [vmem:[%s8196_s1 + $0x158] sm:$0xf0]  ;;  %v4066_v3 = vor.u32 %v4845_v58, %v4063_v60  ;;  %v3991_v5 = vld [vmem:[%s8196_s1 + $0x48] sm:$0xf0] }
  0x1f   :  { %479 = vmatpush.bf16.msra.mxu3 %v4158_v24  ;;  %v4877_v63 = vld [vmem:[%s8196_s1 + $0x1d4] sm:$0xf]  ;;  %v4191_v0 = vld [vmem:[%s8196_s1 + $0x1d8] sm:$0xf0]  ;;  %v4130_v4 = vor.u32 %v4861_v61, %v4127_v62  ;;  %v4843_v6 = vld [vmem:[%s8196_s1 + $0xc4] sm:$0xf]  ;;  %v3994_v15 = vor.u32 %v4827_v2, %v3991_v5 }
  0x20   :  { %441 = vmatpush.bf16.msra.mxu0 %v3958_v31  ;;  %v4055_v7 = vld [vmem:[%s8196_s1 + $0xc8] sm:$0xf0]  ;;  %v4194_v8 = vor.u32 %v4877_v63, %v4191_v0  ;;  %v4859_v9 = vld [vmem:[%s8196_s1 + $0x144] sm:$0xf]  ;;  %v4825_v20 = vld [vmem:[%s8196_s1 + $0x34] sm:$0xf] }
  0x21   :  { %454 = vmatpush.bf16.msra.mxu1 %v4022_v35  ;;  %v4119_v10 = vld [vmem:[%s8196_s1 + $0x148] sm:$0xf0]  ;;  %v4875_v11 = vld [vmem:[%s8196_s1 + $0x1c4] sm:$0xf]  ;;  %v4058_v18 = vor.u32 %v4843_v6, %v4055_v7  ;;  %v3983_v21 = vld [vmem:[%s8196_s1 + $0x38] sm:$0xf0] }
  0x22   :  { %467 = vmatpush.bf16.msra.mxu2 %v4086_v36  ;;  %v4183_v12 = vld [vmem:[%s8196_s1 + $0x1c8] sm:$0xf0]  ;;  %v5459_v13 = vld [vmem:[#allocation1 + $0x12] sm:$0xff]  ;;  %v5461_v14 = vld [vmem:[#allocation1] sm:$0xff]  ;;  %v4122_v19 = vor.u32 %v4859_v9, %v4119_v10  ;;  %v3986_v29 = vor.u32 %v4825_v20, %v3983_v21 }
  0x23   :  { %480 = vmatpush.bf16.msra.mxu3 %v4150_v39  ;;  %v5464_v16 = vld [vmem:[#allocation1 + $0x1b] sm:$0xff]  ;;  %v5466_v17 = vld [vmem:[#allocation1 + $0x9] sm:$0xff]  ;;  %v4841_v22 = vld [vmem:[%s8196_s1 + $0xb4] sm:$0xf]  ;;  %v4186_v23 = vor.u32 %v4875_v11, %v4183_v12  ;;  %442 = vmatmul.bf16.vlgmr.msra.gmra.mxu0 %v5461_v14 }
  0x24   :  { %486 = vmatpush.bf16.msrb.mxu0 %v4018_v40  ;;  %v4047_v24 = vld [vmem:[%s8196_s1 + $0xb8] sm:$0xf0]  ;;  %v4857_v25 = vld [vmem:[%s8196_s1 + $0x134] sm:$0xf]  ;;  %455 = vmatmul.bf16.vlgmr.msra.gmra.mxu1 %v5466_v17  ;;  %v4823_v32 = vld [vmem:[%s8196_s1 + $0x24] sm:$0xf] }
  0x25   :  { %499 = vmatpush.bf16.msrb.mxu1 %v4082_v41  ;;  %468 = vmatmul.bf16.vlgmr.msra.gmra.mxu2 %v5459_v13  ;;  %v4111_v26 = vld [vmem:[%s8196_s1 + $0x138] sm:$0xf0]  ;;  %v4873_v27 = vld [vmem:[%s8196_s1 + $0x1b4] sm:$0xf]  ;;  %v4050_v30 = vor.u32 %v4841_v22, %v4047_v24  ;;  %v3975_v33 = vld [vmem:[%s8196_s1 + $0x28] sm:$0xf0] }
  0x26   :  { %512 = vmatpush.bf16.msrb.mxu2 %v4146_v42  ;;  %v4175_v28 = vld [vmem:[%s8196_s1 + $0x1b8] sm:$0xf0]  ;;  %481 = vmatmul.bf16.vlgmr.msra.gmra.mxu3 %v5464_v16  ;;  %v4114_v31 = vor.u32 %v4857_v25, %v4111_v26  ;;  %v4839_v34 = vld [vmem:[%s8196_s1 + $0xa4] sm:$0xf]  ;;  %v4039_v36 = vld [vmem:[%s8196_s1 + $0xa8] sm:$0xf0]  ;;  %v3978_v41 = vor.u32 %v4823_v32, %v3975_v33 }
  0x27   :  { %525 = vmatpush.bf16.msrb.mxu3 %v4210_v46  ;;  %v4178_v35 = vor.u32 %v4873_v27, %v4175_v28  ;;  %v4855_v37 = vld [vmem:[%s8196_s1 + $0x124] sm:$0xf]  ;;  %v4103_v38 = vld [vmem:[%s8196_s1 + $0x128] sm:$0xf0]  ;;  %v4042_v42 = vor.u32 %v4839_v34, %v4039_v36  ;;  %v4821_v44 = vld [vmem:[%s8196_s1 + $0x14] sm:$0xf] }
  0x28   :  { %487 = vmatpush.bf16.msrb.mxu0 %v4010_v53  ;;  %v4871_v39 = vld [vmem:[%s8196_s1 + $0x1a4] sm:$0xf]  ;;  %v4167_v40 = vld [vmem:[%s8196_s1 + $0x1a8] sm:$0xf0]  ;;  %v4106_v43 = vor.u32 %v4855_v37, %v4103_v38  ;;  %v3967_v45 = vld [vmem:[%s8196_s1 + $0x18] sm:$0xf0] }
  0x29   :  { %500 = vmatpush.bf16.msrb.mxu1 %v4074_v54  ;;  %v4837_v46 = vld [vmem:[%s8196_s1 + $0x94] sm:$0xf]  ;;  %v4170_v47 = vor.u32 %v4871_v39, %v4167_v40  ;;  %v4031_v48 = vld [vmem:[%s8196_s1 + $0x98] sm:$0xf0]  ;;  %v3970_v53 = vor.u32 %v4821_v44, %v3967_v45  ;;  %v4819_v54 = vld [vmem:[%s8196_s1 + $0x4] sm:$0xf] }
  0x2a   :  { %513 = vmatpush.bf16.msrb.mxu2 %v4138_v55  ;;  %v4853_v49 = vld [vmem:[%s8196_s1 + $0x114] sm:$0xf]  ;;  %v4095_v50 = vld [vmem:[%s8196_s1 + $0x118] sm:$0xf0]  ;;  %v3959_v55 = vld [vmem:[%s8196_s1 + $0x8] sm:$0xf0]  ;;  %v4034_v56 = vor.u32 %v4837_v46, %v4031_v48 }
  0x2b   :  { %526 = vmatpush.bf16.msrb.mxu3 %v4202_v59  ;;  %v4869_v51 = vld [vmem:[%s8196_s1 + $0x194] sm:$0xf]  ;;  %v4159_v52 = vld [vmem:[%s8196_s1 + $0x198] sm:$0xf0]  ;;  %v4098_v57 = vor.u32 %v4853_v49, %v4095_v50  ;;  %v4835_v58 = vld [vmem:[%s8196_s1 + $0x84] sm:$0xf] }
  0x2c   :  { %488 = vmatpush.bf16.msrb.mxu0 %v4002_v1  ;;  %v4023_v59 = vld [vmem:[%s8196_s1 + $0x88] sm:$0xf0]  ;;  %v4851_v60 = vld [vmem:[%s8196_s1 + $0x104] sm:$0xf]  ;;  %v4162_v61 = vor.u32 %v4869_v51, %v4159_v52  ;;  %v4453_v1 = vld [vmem:[%s8198_s3 + $0xe0] sm:$0xf] }
  0x2d   :  { %501 = vmatpush.bf16.msrb.mxu1 %v4066_v3  ;;  %v4087_v62 = vld [vmem:[%s8196_s1 + $0x108] sm:$0xf0]  ;;  %v4867_v63 = vld [vmem:[%s8196_s1 + $0x184] sm:$0xf]  ;;  %v4945_v2 = vld [vmem:[%s8198_s3 + $0xec] sm:$0xf0] }
  0x2e   :  { %514 = vmatpush.bf16.msrb.mxu2 %v4130_v4  ;;  %v4151_v0 = vld [vmem:[%s8196_s1 + $0x188] sm:$0xf0]  ;;  %v4581_v3 = vld [vmem:[%s8198_s3 + $0x1e0] sm:$0xf]  ;;  %v3962_v4 = vor.u32 %v4819_v54, %v3959_v55  ;;  %v4977_v5 = vld [vmem:[%s8198_s3 + $0x1ec] sm:$0xf0]  ;;  %v4090_v9 = vor.u32 %v4851_v60, %v4087_v62 }
  0x2f   :  { %527 = vmatpush.bf16.msrb.mxu3 %v4194_v8  ;;  %v4943_v6 = vld [vmem:[%s8198_s3 + $0xe4] sm:$0xf]  ;;  %v4455_v7 = vld [vmem:[%s8198_s3 + $0xf0] sm:$0xf0]  ;;  %v4026_v8 = vor.u32 %v4835_v58, %v4023_v59  ;;  %v4154_v12 = vor.u32 %v4867_v63, %v4151_v0  ;;  %v4437_v20 = vld [vmem:[%s8198_s3 + $0xc0] sm:$0xf] }
  0x30   :  { %489 = vmatpush.bf16.msrb.mxu0 %v3994_v15  ;;  %v4975_v10 = vld [vmem:[%s8198_s3 + $0x1e4] sm:$0xf]  ;;  %v4583_v11 = vld [vmem:[%s8198_s3 + $0x1f0] sm:$0xf0]  ;;  %v4454_v15 = vor.u32 %v4945_v2, %v4453_v1  ;;  %v4941_v21 = vld [vmem:[%s8198_s3 + $0xcc] sm:$0xf0] }
  0x31   :  { %502 = vmatpush.bf16.msrb.mxu1 %v4058_v18  ;;  %v4582_v18 = vor.u32 %v4977_v5, %v4581_v3  ;;  %v4565_v22 = vld [vmem:[%s8198_s3 + $0x1c0] sm:$0xf]  ;;  %v4973_v24 = vld [vmem:[%s8198_s3 + $0x1cc] sm:$0xf0]  ;;  %v4939_v25 = vld [vmem:[%s8198_s3 + $0xc4] sm:$0xf] }
  0x32   :  { %515 = vmatpush.bf16.msrb.mxu2 %v4122_v19  ;;  %v4458_v19 = vor.u32 %v4943_v6, %v4455_v7  ;;  %v4439_v26 = vld [vmem:[%s8198_s3 + $0xd0] sm:$0xf0]  ;;  %v4971_v27 = vld [vmem:[%s8198_s3 + $0x1c4] sm:$0xf]  ;;  %v4421_v32 = vld [vmem:[%s8198_s3 + $0xa0] sm:$0xf] }
  0x33   :  { %528 = vmatpush.bf16.msrb.mxu3 %v4186_v23  ;;  %v4586_v23 = vor.u32 %v4975_v10, %v4583_v11  ;;  %v4567_v28 = vld [vmem:[%s8198_s3 + $0x1d0] sm:$0xf0]  ;;  %v4937_v33 = vld [vmem:[%s8198_s3 + $0xac] sm:$0xf0]  ;;  %v4549_v34 = vld [vmem:[%s8198_s3 + $0x1a0] sm:$0xf] }
  0x34   :  { %490 = vmatpush.bf16.msrb.mxu0 %v3986_v29  ;;  %v4438_v29 = vor.u32 %v4941_v21, %v4437_v20  ;;  %v4969_v36 = vld [vmem:[%s8198_s3 + $0x1ac] sm:$0xf0]  ;;  %v4935_v37 = vld [vmem:[%s8198_s3 + $0xa4] sm:$0xf]  ;;  %v4423_v38 = vld [vmem:[%s8198_s3 + $0xb0] sm:$0xf0]  ;;  %v4422_v40 = vor.u32 %v4937_v33, %v4421_v32 }
  0x35   :  { %503 = vmatpush.bf16.msrb.mxu1 %v4050_v30  ;;  %v4566_v30 = vor.u32 %v4973_v24, %v4565_v22  ;;  %v4551_v39 = vld [vmem:[%s8198_s3 + $0x1b0] sm:$0xf0]  ;;  %v4965_v45 = vld [vmem:[%s8198_s3 + $0x18c] sm:$0xf0]  ;;  %v4931_v46 = vld [vmem:[%s8198_s3 + $0x84] sm:$0xf] }
  0x36   :  { %516 = vmatpush.bf16.msrb.mxu2 %v4114_v31  ;;  %v4442_v31 = vor.u32 %v4939_v25, %v4439_v26  ;;  %v5116_v48 = vmov 0   ;;  %v4963_v49 = vld [vmem:[%s8198_s3 + $0x184] sm:$0xf]  ;;  %v4535_v50 = vld [vmem:[%s8198_s3 + $0x190] sm:$0xf0] }
  0x37   :  { %529 = vmatpush.bf16.msrb.mxu3 %v4178_v35  ;;  %v4570_v35 = vor.u32 %v4971_v27, %v4567_v28  ;;  %5023 = vset.pattern.permute.xlu2 %v5116_v48  ;;  %v661_v51 = vld [vmem:[%s8200_s5] sm:$0xff] }
  0x38   :  { %491 = vmatpush.bf16.msrb.mxu0 %v3978_v41  ;;  %v665_v41 = vld [vmem:[%s8200_s5 + $0x20] sm:$0xff]  ;;  %5021 = vset.pattern.permute.xlu0 %v5116_v48 }
  0x39   :  { %504 = vmatpush.bf16.msrb.mxu1 %v4042_v42  ;;  %v4405_v42 = vld [vmem:[%s8198_s3 + $0x80] sm:$0xf]  ;;  %715 = vperm.xlu2 %5023, %v665_v41  }
  0x3a   :  { %517 = vmatpush.bf16.msrb.mxu2 %v4106_v43  ;;  %v4933_v43 = vld [vmem:[%s8198_s3 + $0x8c] sm:$0xf0]  ;;  %695 = vperm.xlu0 %5021, %v661_v51  }
  0x3b   :  { %530 = vmatpush.bf16.msrb.mxu3 %v4170_v47  ;;  %v4407_v47 = vld [vmem:[%s8198_s3 + $0x90] sm:$0xf0]  ;;  %v4406_v52 = vor.u32 %v4933_v43, %v4405_v42 }
  0x3c   :  { %492 = vmatpush.bf16.msrb.mxu0 %v3970_v53  ;;  %v4389_v53 = vld [vmem:[%s8198_s3 + $0x60] sm:$0xf]  ;;  %v4410_v55 = vor.u32 %v4931_v46, %v4407_v47 }
  0x3d   :  { %505 = vmatpush.bf16.msrb.mxu1 %v4034_v56  ;;  %v4929_v56 = vld [vmem:[%s8198_s3 + $0x6c] sm:$0xf0] }
  0x3e   :  { %518 = vmatpush.bf16.msrb.mxu2 %v4098_v57  ;;  %v4517_v57 = vld [vmem:[%s8198_s3 + $0x160] sm:$0xf] }
  0x3f   :  { %531 = vmatpush.bf16.msrb.mxu3 %v4162_v61 }
  0x40   :  { %493 = vmatpush.bf16.msrb.mxu0 %v3962_v4 }
  0x41   :  { %506 = vmatpush.bf16.msrb.mxu1 %v4026_v8 }
  0x42   :  { %519 = vmatpush.bf16.msrb.mxu2 %v4090_v9 }
  0x43   :  { %532 = vmatpush.bf16.msrb.mxu3 %v4154_v12  ;;  %494 = vmatmul.bf16.vlgmr.msrb.gmra.mxu0 %v5461_v14  ;;  %v4550_v14 = vor.u32 %v4969_v36, %v4549_v34 }
  0x44   :  { %1333 = vmatpush.bf16.msra.mxu0 %v4454_v15  ;;  %507 = vmatmul.bf16.vlgmr.msrb.gmra.mxu1 %v5466_v17  ;;  %v4533_v17 = vld [vmem:[%s8198_s3 + $0x180] sm:$0xf] }
  0x45   :  { %1422 = vmatpush.bf16.msra.mxu1 %v4582_v18  ;;  %520 = vmatmul.bf16.vlgmr.msrb.gmra.mxu2 %v5459_v13  ;;  %v4967_v13 = vld [vmem:[%s8198_s3 + $0x1a4] sm:$0xf]  ;;  %v4534_v54 = vor.u32 %v4965_v45, %v4533_v17 }
  0x46   :  { %1511 = vmatpush.bf16.msra.mxu2 %v4458_v19  ;;  %533 = vmatmul.bf16.vlgmr.msrb.gmra.mxu3 %v5464_v16  ;;  %v4426_v16 = vor.u32 %v4935_v37, %v4423_v38  ;;  %v4554_v44 = vor.u32 %v4967_v13, %v4551_v39 }
  0x47   :  { %1600 = vmatpush.bf16.msra.mxu3 %v4586_v23 }
  0x48   :  { %1334 = vmatpush.bf16.msra.mxu0 %v4438_v29 }
  0x49   :  { %1423 = vmatpush.bf16.msra.mxu1 %v4566_v30 }
  0x4a   :  { %1512 = vmatpush.bf16.msra.mxu2 %v4442_v31 }
  0x4b   :  { %1601 = vmatpush.bf16.msra.mxu3 %v4570_v35 }
  0x4c   :  { %1335 = vmatpush.bf16.msra.mxu0 %v4422_v40 }
  0x4d   :  { %1424 = vmatpush.bf16.msra.mxu1 %v4550_v14 }
  0x4e   :  { %1513 = vmatpush.bf16.msra.mxu2 %v4426_v16 }
  0x4f   :  { %15 = vsyncpa [#allocation3], 0  ;;  %1602 = vmatpush.bf16.msra.mxu3 %v4554_v44  ;;  %v4538_v58 = vor.u32 %v4963_v49, %v4535_v50  ;;  %v4961_v59 = vld [vmem:[%s8198_s3 + $0x16c] sm:$0xf0]  ;;  %v4927_v60 = vld [vmem:[%s8198_s3 + $0x64] sm:$0xf]  ;;  %5022 = vset.pattern.permute.xlu1 %v5116_v48  ;;  %v4390_v0 = vor.u32 %v4929_v56, %v4389_v53 }
  0x50   :  { %v4391_v61 = vld [vmem:[%s8198_s3 + $0x70] sm:$0xf0]  ;;  %v4959_v62 = vld [vmem:[%s8198_s3 + $0x164] sm:$0xf]  ;;  %1336 = vmatpush.bf16.msra.mxu0 %v4406_v52  ;;  %v666_v1 = vld [vmem:[%s8200_s5 + $0x28] sm:$0xff]  ;;  %v4518_v2 = vor.u32 %v4961_v59, %v4517_v57  ;;  %vm540_vm0 = vcmask 1041408  }
  0x51   :  { %v4519_v63 = vld [vmem:[%s8198_s3 + $0x170] sm:$0xf0]  ;;  %1425 = vmatpush.bf16.msra.mxu1 %v4534_v54  ;;  %v4394_v3 = vor.u32 %v4927_v60, %v4391_v61  ;;  %v4373_v4 = vld [vmem:[%s8198_s3 + $0x40] sm:$0xf]  ;;  %v4925_v5 = vld [vmem:[%s8198_s3 + $0x4c] sm:$0xf0]  ;;  %720 = vperm.xlu2 %5023, %v666_v1  }
  0x52   :  { %1514 = vmatpush.bf16.msra.mxu2 %v4410_v55  ;;  %v4501_v6 = vld [vmem:[%s8198_s3 + $0x140] sm:$0xf]  ;;  %v4522_v7 = vor.u32 %v4959_v62, %v4519_v63  ;;  %v4957_v8 = vld [vmem:[%s8198_s3 + $0x14c] sm:$0xf0]  ;;  %v4923_v9 = vld [vmem:[%s8198_s3 + $0x44] sm:$0xf]  ;;  %v4374_v15 = vor.u32 %v4925_v5, %v4373_v4 }
  0x53   :  { %1603 = vmatpush.bf16.msra.mxu3 %v4538_v58  ;;  %v4375_v10 = vld [vmem:[%s8198_s3 + $0x50] sm:$0xf0]  ;;  %v4955_v11 = vld [vmem:[%s8198_s3 + $0x144] sm:$0xf]  ;;  %v4357_v18 = vld [vmem:[%s8198_s3 + $0x20] sm:$0xf]  ;;  %v4502_v20 = vor.u32 %v4957_v8, %v4501_v6 }
  0x54   :  { %v4503_v12 = vld [vmem:[%s8198_s3 + $0x150] sm:$0xf0]  ;;  %1337 = vmatpush.bf16.msra.mxu0 %v4390_v0  ;;  %v4921_v19 = vld [vmem:[%s8198_s3 + $0x2c] sm:$0xf0]  ;;  %v4378_v21 = vor.u32 %v4923_v9, %v4375_v10  ;;  %v4485_v22 = vld [vmem:[%s8198_s3 + $0x120] sm:$0xf] }
  0x55   :  { %1426 = vmatpush.bf16.msra.mxu1 %v4518_v2  ;;  %v662_v23 = vld [vmem:[%s8200_s5 + $0x8] sm:$0xff]  ;;  %v663_v24 = vld [vmem:[%s8200_s5 + $0x10] sm:$0xff]  ;;  %v4506_v25 = vor.u32 %v4955_v11, %v4503_v12  ;;  %v4919_v27 = vld [vmem:[%s8198_s3 + $0x24] sm:$0xf]  ;;  %v4358_v31 = vor.u32 %v4921_v19, %v4357_v18  ;;  %vm3310_vm4 = vcmask 1045504   ;;  %s5117_s0 = smov [#allocation2]  }
  0x56   :  { %1515 = vmatpush.bf16.msra.mxu2 %v4394_v3  ;;  %v4953_v26 = vld [vmem:[%s8198_s3 + $0x12c] sm:$0xf0]  ;;  %v4359_v28 = vld [vmem:[%s8198_s3 + $0x30] sm:$0xf0]  ;;  %700 = vperm.xlu0 %5021, %v662_v23   ;;  %v4951_v29 = vld [vmem:[%s8198_s3 + $0x124] sm:$0xf] }
  0x57   :  { %1604 = vmatpush.bf16.msra.mxu3 %v4522_v7  ;;  %v4487_v30 = vld [vmem:[%s8198_s3 + $0x130] sm:$0xf0]  ;;  %705 = vperm.xlu1 %5022, %v663_v24   ;;  %v4341_v32 = vld [vmem:[%s8198_s3] sm:$0xf]  ;;  %v4917_v33 = vld [vmem:[%s8198_s3 + $0xc] sm:$0xf0]  ;;  %v4486_v35 = vor.u32 %v4953_v26, %v4485_v22  ;;  %v4362_v36 = vor.u32 %v4919_v27, %v4359_v28 }
  0x58   :  { %1338 = vmatpush.bf16.msra.mxu0 %v4374_v15  ;;  %v669_v34 = vld [vmem:[%s8200_s5 + $0x40] sm:$0xff]  ;;  %v4949_v38 = vld [vmem:[%s8198_s3 + $0x10c] sm:$0xf0]  ;;  %v4490_v39 = vor.u32 %v4951_v29, %v4487_v30  ;;  %v4343_v40 = vld [vmem:[%s8198_s3 + $0x10] sm:$0xf0]  ;;  %v4342_v17 = vor.u32 %v4917_v33, %v4341_v32  ;;  %s3940_s30 = sshll.u32 %s5117_s0, 4  ;;  %s3941_s30 = int_to_ptr.vmem [resolvable:$true] %s3940_s30 }
  0x59   :  { %1427 = vmatpush.bf16.msra.mxu1 %v4502_v20  ;;  %v4469_v37 = vld [vmem:[%s8198_s3 + $0x100] sm:$0xf]  ;;  %v4915_v13 = vld [vmem:[%s8198_s3 + $0x4] sm:$0xf]  ;;  %v4471_v14 = vld [vmem:[%s8198_s3 + $0x110] sm:$0xf0]  ;;  %735 = vperm.xlu2 %5023, %v669_v34  }
  0x5a   :  { %1516 = vmatpush.bf16.msra.mxu2 %v4378_v21  ;;  %v4947_v41 = vld [vmem:[%s8198_s3 + $0x104] sm:$0xf]  ;;  %v4213_v16 = vld [vmem:[%s8199_s4] sm:$0xf]  ;;  %v4944_v42 = vld [vmem:[%s8198_s3 + $0xec] sm:$0xf]  ;;  %v4470_v47 = vor.u32 %v4949_v38, %v4469_v37  ;;  %v4346_v48 = vor.u32 %v4915_v13, %v4343_v40 }
  0x5b   :  { %1605 = vmatpush.bf16.msra.mxu3 %v4506_v25  ;;  %v4463_v43 = vld [vmem:[%s8198_s3 + $0xf8] sm:$0xf0]  ;;  %v4884_v44 = vld [vmem:[%s8199_s4 + $0x4] sm:$0xf0]  ;;  %v4976_v45 = vld [vmem:[%s8198_s3 + $0x1ec] sm:$0xf]  ;;  %v4474_v51 = vor.u32 %v4947_v41, %v4471_v14 }
  0x5c   :  { %1339 = vmatpush.bf16.msra.mxu0 %v4358_v31  ;;  %v4591_v46 = vld [vmem:[%s8198_s3 + $0x1f8] sm:$0xf0]  ;;  %v4883_v49 = vld [vmem:[%s8199_s4 + $0x4] sm:$0xf]  ;;  %v4215_v50 = vld [vmem:[%s8199_s4 + $0x8] sm:$0xf0]  ;;  %v4466_v52 = vor.u32 %v4944_v42, %v4463_v43  ;;  %v5811_v55 = vor.u32 %v4884_v44, %v4213_v16 }
  0x5d   :  { %1428 = vmatpush.bf16.msra.mxu1 %v4486_v35  ;;  %v4461_v53 = vld [vmem:[%s8198_s3 + $0xe8] sm:$0xf]  ;;  %v4946_v54 = vld [vmem:[%s8198_s3 + $0xf4] sm:$0xf0]  ;;  %v4594_v56 = vor.u32 %v4976_v45, %v4591_v46  ;;  %v5819_v59 = vor.u32 %v4883_v49, %v4215_v50  ;;  %v4940_v63 = vld [vmem:[%s8198_s3 + $0xcc] sm:$0xf] }
  0x5e   :  { %1517 = vmatpush.bf16.msra.mxu2 %v4362_v36  ;;  %v4589_v57 = vld [vmem:[%s8198_s3 + $0x1e8] sm:$0xf]  ;;  %v4978_v58 = vld [vmem:[%s8198_s3 + $0x1f4] sm:$0xf0]  ;;  %v4462_v60 = vor.u32 %v4946_v54, %v4461_v53  ;;  %v4447_v0 = vld [vmem:[%s8198_s3 + $0xd8] sm:$0xf0] }
  0x5f   :  { %1606 = vmatpush.bf16.msra.mxu3 %v4490_v39  ;;  %v4590_v61 = vor.u32 %v4978_v58, %v4589_v57  ;;  %v672_v62 = vld [vmem:[%s8200_s5 + $0x58] sm:$0xff]  ;;  %v4972_v1 = vld [vmem:[%s8198_s3 + $0x1cc] sm:$0xf]  ;;  %v4450_v2 = vor.u32 %v4940_v63, %v4447_v0  ;;  %v4445_v5 = vld [vmem:[%s8198_s3 + $0xc8] sm:$0xf]  ;;  %s3942_s11 = sshll.u32 %s8203_s8, 4  ;;  %s3943_s11 = int_to_ptr.hbm [resolvable:$true] %s3942_s11 }
  0x60   :  { %1340 = vmatpush.bf16.msra.mxu0 %v4342_v17  ;;  %v4575_v3 = vld [vmem:[%s8198_s3 + $0x1d8] sm:$0xf0]  ;;  %v4942_v7 = vld [vmem:[%s8198_s3 + $0xd4] sm:$0xf0]  ;;  %v4573_v8 = vld [vmem:[%s8198_s3 + $0x1c8] sm:$0xf] }
  0x61   :  { %1429 = vmatpush.bf16.msra.mxu1 %v4470_v47  ;;  %750 = vperm.xlu2 %5023, %v672_v62   ;;  %v664_v4 = vld [vmem:[%s8200_s5 + $0x18] sm:$0xff]  ;;  %v4578_v6 = vor.u32 %v4972_v1, %v4575_v3  ;;  %v4446_v10 = vor.u32 %v4942_v7, %v4445_v5  ;;  %v675_v12 = vld [vmem:[%s8200_s5 + $0x70] sm:$0xff]  ;;  %v678_v23 = vld [vmem:[%s8200_s5 + $0x88] sm:$0xff] }
  0x62   :  { %1518 = vmatpush.bf16.msra.mxu2 %v4346_v48  ;;  %710 = vperm.xlu1 %5022, %v664_v4   ;;  %v4974_v9 = vld [vmem:[%s8198_s3 + $0x1d4] sm:$0xf0]  ;;  %v4221_v15 = vld [vmem:[%s8199_s4 + $0x10] sm:$0xf]  ;;  %v4885_v19 = vld [vmem:[%s8199_s4 + $0x14] sm:$0xf] }
  0x63   :  { %1607 = vmatpush.bf16.msra.mxu3 %v4474_v51  ;;  %1341 = vmatmul.bf16.vlgmr.msra.gmra.mxu0 %v5811_v55  ;;  %v4574_v11 = vor.u32 %v4974_v9, %v4573_v8  ;;  %v4886_v18 = vld [vmem:[%s8199_s4 + $0x14] sm:$0xf0]  ;;  %v4223_v20 = vld [vmem:[%s8199_s4 + $0x18] sm:$0xf0]  ;;  %v667_v24 = vld [vmem:[%s8200_s5 + $0x30] sm:$0xff] }
  0x64   :  { %1430 = vmatmul.bf16.vlgmr.msra.gmra.mxu1 %v5819_v59  ;;  %1689 = vmatpush.bf16.msrb.mxu0 %v4462_v60  ;;  %v5870_v21 = vor.u32 %v4886_v18, %v4221_v15  ;;  %v5872_v22 = vor.u32 %v4885_v19, %v4223_v20  ;;  %v681_v25 = vld [vmem:[%s8200_s5 + $0xa0] sm:$0xff]  ;;  %v4888_v27 = vld [vmem:[%s8199_s4 + $0x24] sm:$0xf0]  ;;  %v4231_v29 = vld [vmem:[%s8199_s4 + $0x28] sm:$0xf0] }
  0x65   :  { %1519 = vmatmul.bf16.vlgmr.msra.gmra.mxu2 %v5811_v55  ;;  %1778 = vmatpush.bf16.msrb.mxu1 %v4590_v61  ;;  %v4229_v26 = vld [vmem:[%s8199_s4 + $0x20] sm:$0xf]  ;;  %v4887_v28 = vld [vmem:[%s8199_s4 + $0x24] sm:$0xf]  ;;  %v684_v32 = vld [vmem:[%s8200_s5 + $0xb8] sm:$0xff] }
  0x66   :  { %1867 = vmatpush.bf16.msrb.mxu2 %v4466_v52  ;;  %1608 = vmatmul.bf16.vlgmr.msra.gmra.mxu3 %v5819_v59  ;;  %v5899_v30 = vor.u32 %v4888_v27, %v4229_v26  ;;  %v5901_v31 = vor.u32 %v4887_v28, %v4231_v29  ;;  %v4936_v33 = vld [vmem:[%s8198_s3 + $0xac] sm:$0xf]  ;;  %v4431_v34 = vld [vmem:[%s8198_s3 + $0xb8] sm:$0xf0]  ;;  %v4429_v13 = vld [vmem:[%s8198_s3 + $0xa8] sm:$0xf] }
  0x67   :  { %1956 = vmatpush.bf16.msrb.mxu3 %v4594_v56  ;;  %725 = vperm.xlu0 %5021, %v667_v24   ;;  %v4968_v35 = vld [vmem:[%s8198_s3 + $0x1ac] sm:$0xf]  ;;  %v4434_v36 = vor.u32 %v4936_v33, %v4431_v34  ;;  %v4559_v37 = vld [vmem:[%s8198_s3 + $0x1b8] sm:$0xf0]  ;;  %v4938_v40 = vld [vmem:[%s8198_s3 + $0xb4] sm:$0xf0] }
  0x68   :  { %1690 = vmatpush.bf16.msrb.mxu0 %v4446_v10  ;;  %v668_v38 = vld [vmem:[%s8200_s5 + $0x38] sm:$0xff]  ;;  %v4562_v39 = vor.u32 %v4968_v35, %v4559_v37  ;;  %v4557_v41 = vld [vmem:[%s8198_s3 + $0x1a8] sm:$0xf]  ;;  %v4430_v16 = vor.u32 %v4938_v40, %v4429_v13  ;;  %v687_v43 = vld [vmem:[%s8200_s5 + $0xd0] sm:$0xff] }
  0x69   :  { %1779 = vmatpush.bf16.msrb.mxu1 %v4574_v11  ;;  %765 = vperm.xlu2 %5023, %v675_v12   ;;  %v4970_v14 = vld [vmem:[%s8198_s3 + $0x1b4] sm:$0xf0]  ;;  %v4237_v17 = vld [vmem:[%s8199_s4 + $0x30] sm:$0xf]  ;;  %v4889_v45 = vld [vmem:[%s8199_s4 + $0x34] sm:$0xf] }
  0x6a   :  { %1868 = vmatpush.bf16.msrb.mxu2 %v4450_v2  ;;  %730 = vperm.xlu1 %5022, %v668_v38   ;;  %v4558_v42 = vor.u32 %v4970_v14, %v4557_v41  ;;  %v4890_v44 = vld [vmem:[%s8199_s4 + $0x34] sm:$0xf0]  ;;  %v4239_v46 = vld [vmem:[%s8199_s4 + $0x38] sm:$0xf0]  ;;  %v690_v49 = vld [vmem:[%s8200_s5 + $0xe8] sm:$0xff] }
  0x6b   :  { %1957 = vmatpush.bf16.msrb.mxu3 %v4578_v6  ;;  %v5952_v47 = vor.u32 %v4890_v44, %v4237_v17  ;;  %v5954_v48 = vor.u32 %v4889_v45, %v4239_v46  ;;  %v670_v50 = vld [vmem:[%s8200_s5 + $0x48] sm:$0xff]  ;;  %v671_v51 = vld [vmem:[%s8200_s5 + $0x50] sm:$0xff]  ;;  %v4245_v52 = vld [vmem:[%s8199_s4 + $0x40] sm:$0xf] }
  0x6c   :  { %1691 = vmatpush.bf16.msrb.mxu0 %v4430_v16  ;;  %v4892_v53 = vld [vmem:[%s8199_s4 + $0x44] sm:$0xf0]  ;;  %v4891_v54 = vld [vmem:[%s8199_s4 + $0x44] sm:$0xf]  ;;  %v4247_v56 = vld [vmem:[%s8199_s4 + $0x48] sm:$0xf0] }
  0x6d   :  { %1780 = vmatpush.bf16.msrb.mxu1 %v4558_v42  ;;  %v5981_v57 = vor.u32 %v4892_v53, %v4245_v52  ;;  %v5983_v58 = vor.u32 %v4891_v54, %v4247_v56  ;;  %v4932_v60 = vld [vmem:[%s8198_s3 + $0x8c] sm:$0xf]  ;;  %v4415_v61 = vld [vmem:[%s8198_s3 + $0x98] sm:$0xf0]  ;;  %v4413_v2 = vld [vmem:[%s8198_s3 + $0x88] sm:$0xf] }
  0x6e   :  { %1869 = vmatpush.bf16.msrb.mxu2 %v4434_v36  ;;  %v4964_v62 = vld [vmem:[%s8198_s3 + $0x18c] sm:$0xf]  ;;  %v4418_v63 = vor.u32 %v4932_v60, %v4415_v61  ;;  %v4543_v0 = vld [vmem:[%s8198_s3 + $0x198] sm:$0xf0]  ;;  %v4934_v3 = vld [vmem:[%s8198_s3 + $0x94] sm:$0xf0] }
  0x6f   :  { %1958 = vmatpush.bf16.msrb.mxu3 %v4562_v39  ;;  %740 = vperm.xlu0 %5021, %v670_v50   ;;  %v4546_v1 = vor.u32 %v4964_v62, %v4543_v0  ;;  %v4541_v4 = vld [vmem:[%s8198_s3 + $0x188] sm:$0xf]  ;;  %v4414_v5 = vor.u32 %v4934_v3, %v4413_v2  ;;  %v4966_v6 = vld [vmem:[%s8198_s3 + $0x194] sm:$0xf0]  ;;  %v4253_v7 = vld [vmem:[%s8199_s4 + $0x50] sm:$0xf] }
  0x70   :  { %v4894_v8 = vld [vmem:[%s8199_s4 + $0x54] sm:$0xf0]  ;;  %v4542_v9 = vor.u32 %v4966_v6, %v4541_v4  ;;  %v4893_v10 = vld [vmem:[%s8199_s4 + $0x54] sm:$0xf]  ;;  %v4255_v11 = vld [vmem:[%s8199_s4 + $0x58] sm:$0xf0] }
  0x71   :  { %780 = vperm.xlu2 %5023, %v678_v23   ;;  %1692 = vmatpush.bf16.msrb.mxu0 %v4414_v5  ;;  %v673_v18 = vld [vmem:[%s8200_s5 + $0x60] sm:$0xff]  ;;  %v6028_v19 = vor.u32 %v4894_v8, %v4253_v7  ;;  %v6030_v20 = vor.u32 %v4893_v10, %v4255_v11  ;;  %v674_v27 = vld [vmem:[%s8200_s5 + $0x68] sm:$0xff]  ;;  %v4399_v44 = vld [vmem:[%s8198_s3 + $0x78] sm:$0xf0] }
  0x72   :  { %745 = vperm.xlu1 %5022, %v671_v51   ;;  %1870 = vmatpush.bf16.msrb.mxu2 %v4418_v63  ;;  %v4261_v35 = vld [vmem:[%s8199_s4 + $0x60] sm:$0xf]  ;;  %v4896_v36 = vld [vmem:[%s8199_s4 + $0x64] sm:$0xf0]  ;;  %v4895_v37 = vld [vmem:[%s8199_s4 + $0x64] sm:$0xf] }
  0x73   :  { %1346 = vmatmul.bf16.gmra.mxu0 %v5870_v21  ;;  %1959 = vmatpush.bf16.msrb.mxu3 %v4546_v1  ;;  %v4263_v38 = vld [vmem:[%s8199_s4 + $0x68] sm:$0xf0]  ;;  %v6054_v13 = vor.u32 %v4896_v36, %v4261_v35  ;;  %v676_v50 = vld [vmem:[%s8200_s5 + $0x78] sm:$0xff]  ;;  %v4269_v63 = vld [vmem:[%s8199_s4 + $0x70] sm:$0xf] }
  0x74   :  { %1435 = vmatmul.bf16.gmra.mxu1 %v5872_v22  ;;  %v6056_v40 = vor.u32 %v4895_v37, %v4263_v38  ;;  %v4928_v17 = vld [vmem:[%s8198_s3 + $0x6c] sm:$0xf]  ;;  %v4898_v0 = vld [vmem:[%s8199_s4 + $0x74] sm:$0xf0]  ;;  %v4897_v2 = vld [vmem:[%s8199_s4 + $0x74] sm:$0xf] }
  0x75   :  { %1524 = vmatmul.bf16.gmra.mxu2 %v5870_v21  ;;  %1781 = vmatpush.bf16.msrb.mxu1 %v4542_v9  ;;  %v4960_v45 = vld [vmem:[%s8198_s3 + $0x16c] sm:$0xf]  ;;  %v4402_v46 = vor.u32 %v4928_v17, %v4399_v44  ;;  %v4271_v3 = vld [vmem:[%s8199_s4 + $0x78] sm:$0xf0]  ;;  %v6097_v6 = vor.u32 %v4898_v0, %v4269_v63  ;;  %v4397_v7 = vld [vmem:[%s8198_s3 + $0x68] sm:$0xf] }
  0x76   :  { %1613 = vmatmul.bf16.gmra.mxu3 %v5872_v22  ;;  %v4930_v8 = vld [vmem:[%s8198_s3 + $0x74] sm:$0xf0]  ;;  %v4525_v9 = vld [vmem:[%s8198_s3 + $0x168] sm:$0xf]  ;;  %v6108_v10 = vor.u32 %v4897_v2, %v4271_v3  ;;  %v4956_v17 = vld [vmem:[%s8198_s3 + $0x14c] sm:$0xf] }
  0x77   :  { %755 = vperm.xlu0 %5021, %v673_v18   ;;  %1871 = vmatpush.bf16.msrb.mxu2 %v4402_v46  ;;  %v4962_v18 = vld [vmem:[%s8198_s3 + $0x174] sm:$0xf0]  ;;  %v4511_v46 = vld [vmem:[%s8198_s3 + $0x158] sm:$0xf0] }
  0x79   :  { %795 = vperm.xlu2 %5023, %v681_v25   ;;  %v98_v25 = vld [vmem:[%s8197_s2] sm:$0x3] }
  0x7a   :  { %760 = vperm.xlu1 %5022, %v674_v27   ;;  %v100_v29 = vperm.slane %v98_v25, 0  ;;  %v101_v41 = vperm.slane %v98_v25, 1  ;;  %v4526_v25 = vor.u32 %v4962_v18, %v4525_v9  ;;  %v677_v27 = vld [vmem:[%s8200_s5 + $0x80] sm:$0xff]  ;;  %v4926_v9 = vld [vmem:[%s8198_s3 + $0x54] sm:$0xf0] }
  0x7c   :  { %1782 = vmatpush.bf16.msrb.mxu1 %v4526_v25 }
  0x7f   :  { %770 = vperm.xlu0 %5021, %v676_v50  }
  0x81   :  { %810 = vperm.xlu2 %5023, %v684_v32  }
  0x82   :  { %775 = vperm.xlu1 %5022, %v677_v27  }
  0x83   :  { %1351 = vmatmul.bf16.gmra.mxu0 %v5899_v30 }
  0x84   :  { %1440 = vmatmul.bf16.gmra.mxu1 %v5901_v31 }
  0x85   :  { %1529 = vmatmul.bf16.gmra.mxu2 %v5899_v30 }
  0x86   :  { %1618 = vmatmul.bf16.gmra.mxu3 %v5901_v31 }
  0x89   :  { %825 = vperm.xlu2 %5023, %v687_v43  }
  0x91   :  { %840 = vperm.xlu2 %5023, %v690_v49   ;;  %v4527_v49 = vld [vmem:[%s8198_s3 + $0x178] sm:$0xf0] }
  0x92   :  { %v4530_v52 = vor.u32 %v4960_v45, %v4527_v49  ;;  %v680_v49 = vld [vmem:[%s8200_s5 + $0x98] sm:$0xff] }
  0x93   :  { %1356 = vmatmul.bf16.gmra.mxu0 %v5952_v47  ;;  %790 = vperm.xlu1 %5022, %v680_v49  }
  0x94   :  { %1445 = vmatmul.bf16.gmra.mxu1 %v5954_v48  ;;  %1960 = vmatpush.bf16.msrb.mxu3 %v4530_v52 }
  0x95   :  { %1534 = vmatmul.bf16.gmra.mxu2 %v5952_v47 }
  0x96   :  { %1623 = vmatmul.bf16.gmra.mxu3 %v5954_v48 }
  0xa0   :  { %v443_v12 = vpop.f32.mrf.mxu0 }
  0xa1   :  { %v456_v15 = vpop.f32.mrf.mxu1  ;;  %v444_v33 = vadd.f32 %v443_v12, %v100_v29  ;;  %v4277_v29 = vld [vmem:[%s8199_s4 + $0x80] sm:$0xf] }
  0xa3   :  { %1361 = vmatmul.bf16.gmra.mxu0 %v5981_v57  ;;  %v457_v39 = vadd.f32 %v456_v15, %v444_v33  ;;  %v4398_v15 = vor.u32 %v4930_v8, %v4397_v7  ;;  %v4899_v33 = vld [vmem:[%s8199_s4 + $0x84] sm:$0xf]  ;;  %v4287_v7 = vld [vmem:[%s8199_s4 + $0x98] sm:$0xf0]  ;;  %v4381_v8 = vld [vmem:[%s8198_s3 + $0x48] sm:$0xf] }
  0xa4   :  { %1450 = vmatmul.bf16.gmra.mxu1 %v5983_v58 }
  0xa5   :  { %1539 = vmatmul.bf16.gmra.mxu2 %v5981_v57  ;;  %1693 = vmatpush.bf16.msrb.mxu0 %v4398_v15  ;;  %v4958_v15 = vld [vmem:[%s8198_s3 + $0x154] sm:$0xf0] }
  0xa6   :  { %1628 = vmatmul.bf16.gmra.mxu3 %v5983_v58 }
  0xa8   :  { %v469_v23 = vpop.f32.mrf.mxu2  ;;  %v445_v26 = vpop.f32.mrf.mxu0 }
  0xa9   :  { %v482_v24 = vpop.f32.mrf.mxu3  ;;  %v458_v28 = vpop.f32.mrf.mxu1  ;;  %v470_v14 = vadd.f32 %v469_v23, %v457_v39 }
  0xab   :  { %v6077_v53 = vadd.f32 %v482_v24, %v470_v14 }
  0xac   :  { %v6122_v28 = vpop.permute.xlu0 %695 }
  0xad   :  { %v538_v61 = vmul.f32 %v6077_v53, %v6077_v53 }
  0xaf   :  { %v541_v11 = vsel %vm540_vm0, %v538_v61, 0.0 }
  0xb0   :  { %v471_v32 = vpop.f32.mrf.mxu2 }
  0xb1   :  { %v484_v34 = vpop.f32.mrf.mxu3  ;;  %v4900_v32 = vld [vmem:[%s8199_s4 + $0x84] sm:$0xf0] }
  0xb2   :  { %v4279_v34 = vld [vmem:[%s8199_s4 + $0x88] sm:$0xf0]  ;;  %v6136_v35 = vor.u32 %v4900_v32, %v4277_v29 }
  0xb3   :  { %1366 = vmatmul.bf16.gmra.mxu0 %v6028_v19  ;;  %v6138_v37 = vor.u32 %v4899_v33, %v4279_v34 }
  0xb4   :  { %1455 = vmatmul.bf16.gmra.mxu1 %v6030_v20 }
  0xb5   :  { %1544 = vmatmul.bf16.gmra.mxu2 %v6028_v19 }
  0xb6   :  { %1633 = vmatmul.bf16.gmra.mxu3 %v6030_v20 }
  0xc0   :  { %v495_v16 = vpop.f32.mrf.mxu0 }
  0xc1   :  { %v496_v42 = vadd.f32 %v495_v16, %v101_v41  ;;  %v508_v43 = vpop.f32.mrf.mxu1  ;;  %v6141_v41 = vpop.permute.xlu2 %715  ;;  %v679_v16 = vld [vmem:[%s8200_s5 + $0x90] sm:$0xff] }
  0xc2   :  { %785 = vperm.xlu0 %5021, %v679_v16  }
  0xc3   :  { %1371 = vmatmul.bf16.gmra.mxu0 %v6054_v13  ;;  %v509_v51 = vadd.f32 %v508_v43, %v496_v42  ;;  %v4924_v42 = vld [vmem:[%s8198_s3 + $0x4c] sm:$0xf]  ;;  %v4383_v43 = vld [vmem:[%s8198_s3 + $0x58] sm:$0xf0] }
  0xc4   :  { %1460 = vmatmul.bf16.gmra.mxu1 %v6056_v40  ;;  %v4386_v45 = vor.u32 %v4924_v42, %v4383_v43 }
  0xc5   :  { %1549 = vmatmul.bf16.gmra.mxu2 %v6054_v13 }
  0xc6   :  { %1638 = vmatmul.bf16.gmra.mxu3 %v6056_v40  ;;  %1872 = vmatpush.bf16.msrb.mxu2 %v4386_v45 }
  0xc8   :  { %v521_v54 = vpop.f32.mrf.mxu2  ;;  %v497_v1 = vpop.f32.mrf.mxu0 }
  0xc9   :  { %v522_v56 = vadd.f32 %v521_v54, %v509_v51  ;;  %v534_v60 = vpop.f32.mrf.mxu3  ;;  %v510_v4 = vpop.f32.mrf.mxu1  ;;  %v4514_v51 = vor.u32 %v4956_v17, %v4511_v46  ;;  %v4285_v1 = vld [vmem:[%s8199_s4 + $0x90] sm:$0xf] }
  0xca   :  { %v6161_v44 = vpop.permute.xlu0 %700  ;;  %v6178_v2 = vpop.permute.xlu2 %720  ;;  %v4902_v4 = vld [vmem:[%s8199_s4 + $0x94] sm:$0xf0] }
  0xcb   :  { %v6081_v62 = vadd.f32 %v534_v60, %v522_v56  ;;  %1961 = vmatpush.bf16.msrb.mxu3 %v4514_v51  ;;  %v6180_v3 = vpop.permute.xlu1 %705 }
  0xcd   :  { %v539_v5 = vmul.f32 %v6081_v62, %v6081_v62 }
  0xcf   :  { %v542_v12 = vsel %vm540_vm0, %v539_v5, 0.0  ;;  %v4901_v5 = vld [vmem:[%s8199_s4 + $0x94] sm:$0xf] }
  0xd0   :  { %v543_v23 = vadd.f32 %v542_v12, %v541_v11  ;;  %v523_v24 = vpop.f32.mrf.mxu2  ;;  %v4509_v11 = vld [vmem:[%s8198_s3 + $0x148] sm:$0xf]  ;;  %v4382_v12 = vor.u32 %v4926_v9, %v4381_v8  ;;  %v6206_v29 = vor.u32 %v4901_v5, %v4287_v7 }
  0xd1   :  { %v536_v26 = vpop.f32.mrf.mxu3  ;;  %v4510_v24 = vor.u32 %v4958_v15, %v4509_v11 }
  0xd2   :  { %544 = vadd.xlane.f32.xlu2 %v543_v23  ;;  %v6203_v23 = vor.u32 %v4902_v4, %v4285_v1  ;;  %1694 = vmatpush.bf16.msrb.mxu0 %v4382_v12 }
  0xd3   :  { %1376 = vmatmul.bf16.gmra.mxu0 %v6097_v6  ;;  %1783 = vmatpush.bf16.msrb.mxu1 %v4510_v24  ;;  %v683_v24 = vld [vmem:[%s8200_s5 + $0xb0] sm:$0xff] }
  0xd4   :  { %1465 = vmatmul.bf16.gmra.mxu1 %v6108_v10  ;;  %v6222_v16 = vpop.permute.xlu1 %710  ;;  %805 = vperm.xlu1 %5022, %v683_v24  }
  0xd5   :  { %1554 = vmatmul.bf16.gmra.mxu2 %v6097_v6 }
  0xd6   :  { %1643 = vmatmul.bf16.gmra.mxu3 %v6108_v10 }
  0xd9   :  { %v6302_v24 = vpop.permute.xlu0 %725 }
  0xe0   :  { %v1342_v36 = vpop.f32.mrf.mxu0 }
  0xe1   :  { %v1343_v38 = vadd.f32 %v1342_v36, %v6122_v28  ;;  %v1431_v39 = vpop.f32.mrf.mxu1 }
  0xe3   :  { %v6143_v14 = vadd.f32 %v1431_v39, %v1343_v38  ;;  %1381 = vmatmul.bf16.gmra.mxu0 %v6136_v35  ;;  %v6217_v38 = vpop.permute.xlu2 %735  ;;  %v682_v39 = vld [vmem:[%s8200_s5 + $0xa8] sm:$0xff] }
  0xe4   :  { %1470 = vmatmul.bf16.gmra.mxu1 %v6138_v37  ;;  %800 = vperm.xlu0 %5021, %v682_v39  }
  0xe5   :  { %8347 = vst [vmem:[#allocation5_spill] sm:$0xff] %v6143_v14  ;;  %1559 = vmatmul.bf16.gmra.mxu2 %v6136_v35 }
  0xe6   :  { %1648 = vmatmul.bf16.gmra.mxu3 %v6138_v37 }
  0xe8   :  { %v1520_v50 = vpop.f32.mrf.mxu2  ;;  %v1344_v56 = vpop.f32.mrf.mxu0 }
  0xe9   :  { %v1521_v52 = vadd.f32 %v1520_v50, %v6122_v28  ;;  %v1609_v54 = vpop.f32.mrf.mxu3  ;;  %v1345_v60 = vadd.f32 %v1344_v56, %v6161_v44  ;;  %v1433_v61 = vpop.f32.mrf.mxu1  ;;  %v4903_v56 = vld [vmem:[%s8199_s4 + $0xa4] sm:$0xf] }
  0xeb   :  { %v6171_v63 = vadd.f32 %v1609_v54, %v1521_v52  ;;  %v6173_v0 = vadd.f32 %v1433_v61, %v1345_v60  ;;  %v4293_v52 = vld [vmem:[%s8199_s4 + $0xa0] sm:$0xf]  ;;  %v4904_v54 = vld [vmem:[%s8199_s4 + $0xa4] sm:$0xf0]  ;;  %v4295_v60 = vld [vmem:[%s8199_s4 + $0xa8] sm:$0xf0]  ;;  %v6244_v4 = vpop.permute.xlu2 %750 }
  0xec   :  { %v6242_v1 = vor.u32 %v4904_v54, %v4293_v52  ;;  %8354 = vst [vmem:[#allocation12_spill] sm:$0xff] %v6244_v4  ;;  %v6247_v9 = vor.u32 %v4903_v56, %v4295_v60  ;;  %v4301_v60 = vld [vmem:[%s8199_s4 + $0xb0] sm:$0xf] }
  0xed   :  { %8348 = vst [vmem:[#allocation6_spill] sm:$0xff] %v6171_v63 }
  0xee   :  { %8349 = vst [vmem:[#allocation7_spill] sm:$0xff] %v6173_v0 }
  0xf0   :  { %v1522_v18 = vpop.f32.mrf.mxu2  ;;  %v1347_v27 = vpop.f32.mrf.mxu0 }
  0xf1   :  { %v1523_v25 = vadd.f32 %v1522_v18, %v6161_v44  ;;  %v1611_v26 = vpop.f32.mrf.mxu3  ;;  %v1348_v32 = vadd.f32 %v1347_v27, %v6180_v3  ;;  %v1436_v33 = vpop.f32.mrf.mxu1  ;;  %v4952_v27 = vld [vmem:[%s8198_s3 + $0x12c] sm:$0xf] }
  0xf3   :  { %v6209_v34 = vadd.f32 %v1611_v26, %v1523_v25  ;;  %v6211_v36 = vadd.f32 %v1436_v33, %v1348_v32  ;;  %1386 = vmatmul.bf16.gmra.mxu0 %v6203_v23  ;;  %v4920_v25 = vld [vmem:[%s8198_s3 + $0x2c] sm:$0xf]  ;;  %v4367_v26 = vld [vmem:[%s8198_s3 + $0x38] sm:$0xf0]  ;;  %v6275_v52 = vpop.permute.xlu2 %765 }
  0xf4   :  { %1475 = vmatmul.bf16.gmra.mxu1 %v6206_v29  ;;  %v4370_v32 = vor.u32 %v4920_v25, %v4367_v26  ;;  %v4495_v33 = vld [vmem:[%s8198_s3 + $0x138] sm:$0xf0]  ;;  %v4954_v26 = vld [vmem:[%s8198_s3 + $0x134] sm:$0xf0] }
  0xf5   :  { %8350 = vst [vmem:[#allocation8_spill] sm:$0xff] %v6209_v34  ;;  %1564 = vmatmul.bf16.gmra.mxu2 %v6203_v23 }
  0xf6   :  { %8351 = vst [vmem:[#allocation9_spill] sm:$0xff] %v6211_v36  ;;  %1653 = vmatmul.bf16.gmra.mxu3 %v6206_v29  ;;  %1873 = vmatpush.bf16.msrb.mxu2 %v4370_v32 }
  0xf8   :  { %v1525_v42 = vpop.f32.mrf.mxu2  ;;  %v1349_v45 = vpop.f32.mrf.mxu0 }
  0xf9   :  { %v1526_v43 = vadd.f32 %v1525_v42, %v6180_v3  ;;  %v1614_v17 = vpop.f32.mrf.mxu3  ;;  %v1350_v46 = vadd.f32 %v1349_v45, %v6222_v16  ;;  %v1438_v49 = vpop.f32.mrf.mxu1  ;;  %v4498_v42 = vor.u32 %v4952_v27, %v4495_v33 }
  0xfb   :  { %v6226_v50 = vadd.f32 %v1614_v17, %v1526_v43  ;;  %v6228_v51 = vadd.f32 %v1438_v49, %v1350_v46  ;;  %1962 = vmatpush.bf16.msrb.mxu3 %v4498_v42 }
  0xfd   :  { %8352 = vst [vmem:[#allocation10_spill] sm:$0xff] %v6226_v50  ;;  %v4317_v50 = vld [vmem:[%s8199_s4 + $0xd0] sm:$0xf] }
  0xfe   :  { %8353 = vst [vmem:[#allocation11_spill] sm:$0xff] %v6228_v51 }
 0x100   :  { %v1527_v61 = vpop.f32.mrf.mxu2  ;;  %v1352_v8 = vpop.f32.mrf.mxu0 }
 0x101   :  { %v1528_v5 = vadd.f32 %v1527_v61, %v6222_v16  ;;  %v1616_v7 = vpop.f32.mrf.mxu3  ;;  %v1353_v11 = vadd.f32 %v1352_v8, %v6141_v41  ;;  %v1441_v12 = vpop.f32.mrf.mxu1  ;;  %v4906_v61 = vld [vmem:[%s8199_s4 + $0xb4] sm:$0xf0]  ;;  %v4365_v8 = vld [vmem:[%s8198_s3 + $0x28] sm:$0xf] }
 0x102   :  { %v6307_v32 = vor.u32 %v4906_v61, %v4301_v60  ;;  %v6318_v60 = vpop.permute.xlu2 %780  ;;  %v685_v61 = vld [vmem:[%s8200_s5 + $0xc0] sm:$0xff] }
 0x103   :  { %v6250_v15 = vadd.f32 %v1616_v7, %v1528_v5  ;;  %v6252_v18 = vadd.f32 %v1441_v12, %v1353_v11  ;;  %1391 = vmatmul.bf16.gmra.mxu0 %v6242_v1  ;;  %v4905_v5 = vld [vmem:[%s8199_s4 + $0xb4] sm:$0xf]  ;;  %v4303_v7 = vld [vmem:[%s8199_s4 + $0xb8] sm:$0xf0]  ;;  %v4922_v11 = vld [vmem:[%s8198_s3 + $0x34] sm:$0xf0]  ;;  %815 = vperm.xlu0 %5021, %v685_v61  }
 0x104   :  { %1480 = vmatmul.bf16.gmra.mxu1 %v6247_v9  ;;  %v4493_v12 = vld [vmem:[%s8198_s3 + $0x128] sm:$0xf]  ;;  %v4366_v25 = vor.u32 %v4922_v11, %v4365_v8  ;;  %v4311_v61 = vld [vmem:[%s8199_s4 + $0xc8] sm:$0xf0] }
 0x105   :  { %8355 = vst [vmem:[#allocation13_spill] sm:$0xff] %v6250_v15  ;;  %1569 = vmatmul.bf16.gmra.mxu2 %v6242_v1  ;;  %v4494_v33 = vor.u32 %v4954_v26, %v4493_v12 }
 0x106   :  { %8356 = vst [vmem:[#allocation14_spill] sm:$0xff] %v6252_v18  ;;  %1658 = vmatmul.bf16.gmra.mxu3 %v6247_v9  ;;  %1695 = vmatpush.bf16.msrb.mxu0 %v4366_v25 }
 0x107   :  { %1784 = vmatpush.bf16.msrb.mxu1 %v4494_v33 }
 0x108   :  { %v1530_v39 = vpop.f32.mrf.mxu2  ;;  %v1354_v45 = vpop.f32.mrf.mxu0 }
 0x109   :  { %v1531_v43 = vadd.f32 %v1530_v39, %v6141_v41  ;;  %v1619_v17 = vpop.f32.mrf.mxu3  ;;  %v1355_v46 = vadd.f32 %v1354_v45, %v6178_v2  ;;  %v1443_v49 = vpop.f32.mrf.mxu1 }
 0x10b   :  { %v6277_v54 = vadd.f32 %v1619_v17, %v1531_v43  ;;  %v6279_v56 = vadd.f32 %v1443_v49, %v1355_v46  ;;  %v6310_v17 = vor.u32 %v4905_v5, %v4303_v7  ;;  %v686_v5 = vld [vmem:[%s8200_s5 + $0xc8] sm:$0xff]  ;;  %v6329_v7 = vpop.permute.xlu1 %730 }
 0x10c   :  { %820 = vperm.xlu1 %5022, %v686_v5   ;;  %v6349_v5 = vpop.permute.xlu2 %795 }
 0x10d   :  { %8357 = vst [vmem:[#allocation15_spill] sm:$0xff] %v6277_v54 }
 0x10e   :  { %8358 = vst [vmem:[#allocation16_spill] sm:$0xff] %v6279_v56 }
 0x110   :  { %v1532_v27 = vpop.f32.mrf.mxu2  ;;  %v1357_v43 = vpop.f32.mrf.mxu0 }
 0x111   :  { %v1533_v39 = vadd.f32 %v1532_v27, %v6178_v2  ;;  %v1621_v42 = vpop.f32.mrf.mxu3  ;;  %v1446_v45 = vpop.f32.mrf.mxu1  ;;  %v1358_v46 = vadd.f32 %v1357_v43, %v6302_v24  ;;  %v4309_v43 = vld [vmem:[%s8199_s4 + $0xc0] sm:$0xf] }
 0x113   :  { %v6313_v49 = vadd.f32 %v1621_v42, %v1533_v39  ;;  %1396 = vmatmul.bf16.gmra.mxu0 %v6307_v32  ;;  %v6316_v8 = vadd.f32 %v1446_v45, %v1358_v46  ;;  %v4908_v45 = vld [vmem:[%s8199_s4 + $0xc4] sm:$0xf0]  ;;  %v4907_v46 = vld [vmem:[%s8199_s4 + $0xc4] sm:$0xf] }
 0x114   :  { %1485 = vmatmul.bf16.gmra.mxu1 %v6310_v17 }
 0x115   :  { %8359 = vst [vmem:[#allocation17_spill] sm:$0xff] %v6313_v49  ;;  %1574 = vmatmul.bf16.gmra.mxu2 %v6307_v32 }
 0x116   :  { %8360 = vst [vmem:[#allocation18_spill] sm:$0xff] %v6316_v8  ;;  %1663 = vmatmul.bf16.gmra.mxu3 %v6310_v17 }
 0x118   :  { %v1535_v11 = vpop.f32.mrf.mxu2  ;;  %v1359_v26 = vpop.f32.mrf.mxu0 }
 0x119   :  { %v1536_v12 = vadd.f32 %v1535_v11, %v6302_v24  ;;  %v1624_v25 = vpop.f32.mrf.mxu3  ;;  %v1360_v27 = vadd.f32 %v1359_v26, %v6329_v7  ;;  %v1448_v33 = vpop.f32.mrf.mxu1 }
 0x11b   :  { %v6333_v39 = vadd.f32 %v1624_v25, %v1536_v12  ;;  %v6335_v42 = vadd.f32 %v1448_v33, %v1360_v27  ;;  %v6351_v12 = vor.u32 %v4908_v45, %v4309_v43  ;;  %v6354_v33 = vor.u32 %v4907_v46, %v4311_v61  ;;  %v4916_v43 = vld [vmem:[%s8198_s3 + $0xc] sm:$0xf]  ;;  %v4351_v45 = vld [vmem:[%s8198_s3 + $0x18] sm:$0xf0] }
 0x11c   :  { %v4354_v46 = vor.u32 %v4916_v43, %v4351_v45  ;;  %v4479_v61 = vld [vmem:[%s8198_s3 + $0x118] sm:$0xf0] }
 0x11d   :  { %8361 = vst [vmem:[#allocation19_spill] sm:$0xff] %v6333_v39 }
 0x11e   :  { %8362 = vst [vmem:[#allocation20_spill] sm:$0xff] %v6335_v42  ;;  %1874 = vmatpush.bf16.msrb.mxu2 %v4354_v46  ;;  %v4909_v46 = vld [vmem:[%s8199_s4 + $0xd4] sm:$0xf] }
 0x120   :  { %v1537_v11 = vpop.f32.mrf.mxu2  ;;  %v1362_v27 = vpop.f32.mrf.mxu0 }
 0x121   :  { %v1538_v25 = vadd.f32 %v1537_v11, %v6329_v7  ;;  %v1626_v26 = vpop.f32.mrf.mxu3  ;;  %v1363_v39 = vadd.f32 %v1362_v27, %v6217_v38  ;;  %v1451_v8 = vpop.f32.mrf.mxu1  ;;  %v688_v11 = vld [vmem:[%s8200_s5 + $0xd8] sm:$0xff] }
 0x122   :  { %830 = vperm.xlu0 %5021, %v688_v11  }
 0x123   :  { %v6357_v42 = vadd.f32 %v1626_v26, %v1538_v25  ;;  %v6359_v54 = vadd.f32 %v1451_v8, %v1363_v39  ;;  %1401 = vmatmul.bf16.gmra.mxu0 %v6351_v12  ;;  %v4948_v8 = vld [vmem:[%s8198_s3 + $0x10c] sm:$0xf]  ;;  %v6374_v39 = vpop.permute.xlu0 %740  ;;  %v6382_v26 = vpop.permute.xlu2 %810 }
 0x124   :  { %1490 = vmatmul.bf16.gmra.mxu1 %v6354_v33  ;;  %8365 = vst [vmem:[#allocation23_spill] sm:$0xff] %v6374_v39  ;;  %v4482_v27 = vor.u32 %v4948_v8, %v4479_v61  ;;  %v4910_v8 = vld [vmem:[%s8199_s4 + $0xd4] sm:$0xf0] }
 0x125   :  { %8363 = vst [vmem:[#allocation21_spill] sm:$0xff] %v6357_v42  ;;  %1579 = vmatmul.bf16.gmra.mxu2 %v6351_v12  ;;  %v6404_v61 = vor.u32 %v4910_v8, %v4317_v50  ;;  %v689_v50 = vld [vmem:[%s8200_s5 + $0xe0] sm:$0xff] }
 0x126   :  { %8364 = vst [vmem:[#allocation22_spill] sm:$0xff] %v6359_v54  ;;  %1668 = vmatmul.bf16.gmra.mxu3 %v6354_v33  ;;  %835 = vperm.xlu1 %5022, %v689_v50   ;;  %v4918_v50 = vld [vmem:[%s8198_s3 + $0x14] sm:$0xf0] }
 0x127   :  { %1963 = vmatpush.bf16.msrb.mxu3 %v4482_v27  ;;  %8369 = vst [vmem:[#allocation27_spill] sm:$0xff] %v6404_v61 }
 0x128   :  { %v1540_v25 = vpop.f32.mrf.mxu2  ;;  %v1364_v18 = vpop.f32.mrf.mxu0 }
 0x129   :  { %v1541_v54 = vadd.f32 %v1540_v25, %v6217_v38  ;;  %v1629_v42 = vpop.f32.mrf.mxu3  ;;  %v1365_v43 = vadd.f32 %v1364_v18, %v6374_v39  ;;  %v1453_v45 = vpop.f32.mrf.mxu1  ;;  %v4319_v18 = vld [vmem:[%s8199_s4 + $0xd8] sm:$0xf0] }
 0x12b   :  { %v6386_v49 = vadd.f32 %v1629_v42, %v1541_v54  ;;  %v6388_v56 = vadd.f32 %v1453_v45, %v1365_v43  ;;  %v6402_v54 = vpop.permute.xlu1 %745  ;;  %v6407_v43 = vor.u32 %v4909_v46, %v4319_v18  ;;  %v6412_v36 = vpop.permute.xlu2 %825 }
 0x12c   :  { %8368 = vst [vmem:[#allocation26_spill] sm:$0xff] %v6402_v54 }
 0x12d   :  { %8366 = vst [vmem:[#allocation24_spill] sm:$0xff] %v6386_v49 }
 0x12e   :  { %8367 = vst [vmem:[#allocation25_spill] sm:$0xff] %v6388_v56 }
 0x12f   :  { %8370 = vst [vmem:[#allocation28_spill] sm:$0xff] %v6407_v43 }
 0x130   :  { %v1542_v42 = vpop.f32.mrf.mxu2  ;;  %v1367_v27 = vpop.f32.mrf.mxu0 }
 0x131   :  { %v1543_v11 = vadd.f32 %v1542_v42, %v6374_v39  ;;  %v1631_v25 = vpop.f32.mrf.mxu3  ;;  %v1456_v45 = vpop.f32.mrf.mxu1  ;;  %v1368_v49 = vadd.f32 %v1367_v27, %v6402_v54 }
 0x133   :  { %v6410_v56 = vadd.f32 %v1631_v25, %v1543_v11  ;;  %1406 = vmatmul.bf16.gmra.mxu0 %v6404_v61  ;;  %v6415_v15 = vadd.f32 %v1456_v45, %v1368_v49  ;;  %v4349_v45 = vld [vmem:[%s8198_s3 + $0x8] sm:$0xf] }
 0x134   :  { %1495 = vmatmul.bf16.gmra.mxu1 %v6407_v43 }
 0x135   :  { %8371 = vst [vmem:[#allocation29_spill] sm:$0xff] %v6410_v56  ;;  %1584 = vmatmul.bf16.gmra.mxu2 %v6404_v61  ;;  %v6455_v56 = vpop.permute.xlu0 %755 }
 0x136   :  { %8372 = vst [vmem:[#allocation30_spill] sm:$0xff] %v6415_v15  ;;  %1673 = vmatmul.bf16.gmra.mxu3 %v6407_v43  ;;  %v6438_v15 = vpop.permute.xlu2 %840 }
 0x137   :  { %8375 = vst [vmem:[#allocation33_spill] sm:$0xff] %v6455_v56 }
 0x138   :  { %v1545_v8 = vpop.f32.mrf.mxu2  ;;  %v1369_v42 = vpop.f32.mrf.mxu0 }
 0x139   :  { %v1546_v46 = vadd.f32 %v1545_v8, %v6402_v54  ;;  %v1634_v18 = vpop.f32.mrf.mxu3  ;;  %v1370_v11 = vadd.f32 %v1369_v42, %v6244_v4  ;;  %v1458_v49 = vpop.f32.mrf.mxu1  ;;  %v4477_v8 = vld [vmem:[%s8198_s3 + $0x108] sm:$0xf]  ;;  %v4350_v42 = vor.u32 %v4918_v50, %v4349_v45 }
 0x13b   :  { %v6425_v25 = vadd.f32 %v1634_v18, %v1546_v46  ;;  %v6427_v27 = vadd.f32 %v1458_v49, %v1370_v11  ;;  %v4325_v46 = vld [vmem:[%s8199_s4 + $0xe0] sm:$0xf]  ;;  %v4912_v18 = vld [vmem:[%s8199_s4 + $0xe4] sm:$0xf0]  ;;  %v4950_v11 = vld [vmem:[%s8198_s3 + $0x114] sm:$0xf0]  ;;  %1696 = vmatpush.bf16.msrb.mxu0 %v4350_v42 }
 0x13c   :  { %v4911_v49 = vld [vmem:[%s8199_s4 + $0xe4] sm:$0xf]  ;;  %v6457_v63 = vor.u32 %v4912_v18, %v4325_v46  ;;  %v691_v46 = vld [vmem:[%s8200_s5 + $0xf0] sm:$0xff] }
 0x13d   :  { %8373 = vst [vmem:[#allocation31_spill] sm:$0xff] %v6425_v25  ;;  %v4327_v25 = vld [vmem:[%s8199_s4 + $0xe8] sm:$0xf0]  ;;  %845 = vperm.xlu0 %5021, %v691_v46  }
 0x13e   :  { %8374 = vst [vmem:[#allocation32_spill] sm:$0xff] %v6427_v27  ;;  %v4478_v27 = vor.u32 %v4950_v11, %v4477_v8  ;;  %v6460_v34 = vor.u32 %v4911_v49, %v4327_v25  ;;  %v6483_v25 = vpop.permute.xlu1 %760 }
 0x13f   :  { %8376 = vst [vmem:[#allocation34_spill] sm:$0xff] %v6457_v63 }
 0x140   :  { %v1547_v51 = vpop.f32.mrf.mxu2  ;;  %1785 = vmatpush.bf16.msrb.mxu1 %v4478_v27  ;;  %v1372_v14 = vpop.f32.mrf.mxu0  ;;  %8377 = vst [vmem:[#allocation35_spill] sm:$0xff] %v6460_v34 }
 0x141   :  { %v1548_v45 = vadd.f32 %v1547_v51, %v6244_v4  ;;  %v1636_v50 = vpop.f32.mrf.mxu3  ;;  %v1461_v0 = vpop.f32.mrf.mxu1  ;;  %v1373_v43 = vadd.f32 %v1372_v14, %v6455_v56  ;;  %v5002_v14 = vld [vmem:[%s8201_s6 + $0xb8] sm:$0xff] }
 0x142   :  { %v692_v51 = vld [vmem:[%s8200_s5 + $0xf8] sm:$0xff]  ;;  %2671 = vmatpush.bf16.msra.mxu2 %v5002_v14 }
 0x143   :  { %v6463_v61 = vadd.f32 %v1636_v50, %v1548_v45  ;;  %1411 = vmatmul.bf16.gmra.mxu0 %v6457_v63  ;;  %v6466_v8 = vadd.f32 %v1461_v0, %v1373_v43  ;;  %v5010_v0 = vld [vmem:[%s8201_s6 + $0xf8] sm:$0xff]  ;;  %850 = vperm.xlu1 %5022, %v692_v51   ;;  %v4333_v51 = vld [vmem:[%s8199_s4 + $0xf0] sm:$0xf] }
 0x144   :  { %1500 = vmatmul.bf16.gmra.mxu1 %v6460_v34  ;;  %2760 = vmatpush.bf16.msra.mxu3 %v5010_v0  ;;  %v4914_v14 = vld [vmem:[%s8199_s4 + $0xf4] sm:$0xf0]  ;;  %v4913_v0 = vld [vmem:[%s8199_s4 + $0xf4] sm:$0xf] }
 0x145   :  { %8378 = vst [vmem:[#allocation36_spill] sm:$0xff] %v6463_v61  ;;  %1589 = vmatmul.bf16.gmra.mxu2 %v6457_v63  ;;  %v545_v43 = vpop.xlane.xlu2 %544 }
 0x146   :  { %8379 = vst [vmem:[#allocation37_spill] sm:$0xff] %v6466_v8  ;;  %1678 = vmatmul.bf16.gmra.mxu3 %v6460_v34  ;;  %v546_v18 = vmax.f32 %v545_v43, 1e-24  ;;  %v4335_v43 = vld [vmem:[%s8199_s4 + $0xf8] sm:$0xf0] }
 0x147   :  { %v6512_v34 = vor.u32 %v4913_v0, %v4335_v43  ;;  %v6523_v0 = vpop.permute.xlu0 %770 }
 0x148   :  { %v1550_v27 = vpop.f32.mrf.mxu2  ;;  %v1374_v49 = vpop.f32.mrf.mxu0  ;;  %5024 = vrsqrt.f32 %v546_v18  ;;  %vm553_vm2 = vweird.f32 %v546_v18 }
 0x149   :  { %v1551_v42 = vadd.f32 %v1550_v27, %v6455_v56  ;;  %v1639_v11 = vpop.f32.mrf.mxu3  ;;  %v1375_v45 = vadd.f32 %v1374_v49, %v6483_v25  ;;  %v1463_v50 = vpop.f32.mrf.mxu1  ;;  %v4986_v27 = vld [vmem:[%s8201_s6 + $0x38] sm:$0xff]  ;;  %8382 = vst [vmem:[#allocation40_spill] sm:$0xff] %v6512_v34 }
 0x14a   :  { %2493 = vmatpush.bf16.msra.mxu0 %v4986_v27 }
 0x14b   :  { %v6487_v46 = vadd.f32 %v1639_v11, %v1551_v42  ;;  %v6489_v8 = vadd.f32 %v1463_v50, %v1375_v45  ;;  %v4994_v42 = vld [vmem:[%s8201_s6 + $0x78] sm:$0xff]  ;;  %v6509_v45 = vor.u32 %v4914_v14, %v4333_v51 }
 0x14c   :  { %2582 = vmatpush.bf16.msra.mxu1 %v4994_v42 }
 0x14d   :  { %8380 = vst [vmem:[#allocation38_spill] sm:$0xff] %v6487_v46 }
 0x14e   :  { %8381 = vst [vmem:[#allocation39_spill] sm:$0xff] %v6489_v8  ;;  %v5025_v11 = vpop.eup %5024 }
 0x14f   :  { %v548_v50 = vmul.f32 %v5025_v11, %v546_v18  ;;  %vm554_vm1 = vweird.f32 %v5025_v11 }
 0x150   :  { %v1552_v49 = vpop.f32.mrf.mxu2  ;;  %v1377_v61 = vpop.f32.mrf.mxu0  ;;  %vm555_vm3 = vmor %vm553_vm2, %vm554_vm1 }
 0x151   :  { %v1553_v46 = vadd.f32 %v1552_v49, %v6483_v25  ;;  %v1641_v8 = vpop.f32.mrf.mxu3  ;;  %v1378_v63 = vadd.f32 %v1377_v61, %v6275_v52  ;;  %v1466_v56 = vpop.f32.mrf.mxu1  ;;  %v549_v4 = vmul.f32 %v5025_v11, %v548_v50 }
 0x153   :  { %v6515_v54 = vadd.f32 %v1641_v8, %v1553_v46  ;;  %v6517_v39 = vadd.f32 %v1466_v56, %v1378_v63  ;;  %1416 = vmatmul.bf16.gmra.mxu0 %v6509_v45  ;;  %v550_v51 = vmul.f32 0.5, %v549_v4 }
 0x154   :  { %1505 = vmatmul.bf16.gmra.mxu1 %v6512_v34 }
 0x155   :  { %8383 = vst [vmem:[#allocation41_spill] sm:$0xff] %v6515_v54  ;;  %1594 = vmatmul.bf16.gmra.mxu2 %v6509_v45  ;;  %v551_v14 = vsub.f32 1.5, %v550_v51 }
 0x156   :  { %8384 = vst [vmem:[#allocation42_spill] sm:$0xff] %v6517_v39  ;;  %1683 = vmatmul.bf16.gmra.mxu3 %v6512_v34 }
 0x157   :  { %v552_v43 = vmul.f32 %v5025_v11, %v551_v14  ;;  %v6533_v14 = vpop.permute.xlu1 %775 }
 0x158   :  { %v1555_v61 = vpop.f32.mrf.mxu2  ;;  %v1379_v56 = vpop.f32.mrf.mxu0 }
 0x159   :  { %v1556_v8 = vadd.f32 %v1555_v61, %v6275_v52  ;;  %v1644_v63 = vpop.f32.mrf.mxu3  ;;  %v1380_v4 = vadd.f32 %v1379_v56, %v6523_v0  ;;  %v1468_v46 = vpop.f32.mrf.mxu1  ;;  %v556_v27 = vsel %vm555_vm3, %v5025_v11, %v552_v43 }
 0x15a   :  { %v558_v49 = vmul.f32 %v556_v27, %v6081_v62  ;;  %v557_v51 = vmul.f32 %v556_v27, %v6077_v53  ;;  %v5001_v53 = vld [vmem:[%s8201_s6 + $0xb0] sm:$0xff] }
 0x15b   :  { %v6527_v42 = vadd.f32 %v1644_v63, %v1556_v8  ;;  %v6530_v50 = vadd.f32 %v1468_v46, %v1380_v4  ;;  %2672 = vmatpush.bf16.msra.mxu2 %v5001_v53 }
 0x15c   :  { %v561_v39 = vrot.slane %v558_v49, 6  ;;  %v4985_v49 = vld [vmem:[%s8201_s6 + $0x30] sm:$0xff] }
 0x15d   :  { %8385 = vst [vmem:[#allocation43_spill] sm:$0xff] %v6527_v42  ;;  %2494 = vmatpush.bf16.msra.mxu0 %v4985_v49 }
 0x15e   :  { %8386 = vst [vmem:[#allocation44_spill] sm:$0xff] %v6530_v50  ;;  %v562_v61 = vsel %vm540_vm0, %v557_v51, %v561_v39  ;;  %v5009_v39 = vld [vmem:[%s8201_s6 + $0xf0] sm:$0xff] }
 0x15f   :  { %564 = vst [vmem:[#allocation2] sm:$0xf] %v562_v61  ;;  %2761 = vmatpush.bf16.msra.mxu3 %v5009_v39  ;;  %v4993_v51 = vld [vmem:[%s8201_s6 + $0x70] sm:$0xff] }
 0x160   :  { %v1557_v18 = vpop.f32.mrf.mxu2  ;;  %v1382_v56 = vpop.f32.mrf.mxu0  ;;  %2583 = vmatpush.bf16.msra.mxu1 %v4993_v51  ;;  %3945 = dma.vmem_to_hbm [thread:$0]  %s3941_s30, 64, %s3943_s11, [#allocation3]  }
 0x161   :  { %v1558_v54 = vadd.f32 %v1557_v18, %v6523_v0  ;;  %v1646_v34 = vpop.f32.mrf.mxu3  ;;  %v1471_v11 = vpop.f32.mrf.mxu1  ;;  %v1383_v43 = vadd.f32 %v1382_v56, %v6533_v14 }
 0x162   :  { %v6564_v18 = vpop.permute.xlu0 %785 }
 0x163   :  { %v6538_v8 = vadd.f32 %v1646_v34, %v1558_v54  ;;  %1697 = vmatmul.bf16.vlgmr.msrb.gmra.mxu0 %v5811_v55  ;;  %v6541_v62 = vadd.f32 %v1471_v11, %v1383_v43 }
 0x164   :  { %1786 = vmatmul.bf16.vlgmr.msrb.gmra.mxu1 %v5819_v59 }
 0x165   :  { %8387 = vst [vmem:[#allocation45_spill] sm:$0xff] %v6538_v8  ;;  %1875 = vmatmul.bf16.vlgmr.msrb.gmra.mxu2 %v5811_v55 }
 0x166   :  { %8388 = vst [vmem:[#allocation46_spill] sm:$0xff] %v6541_v62  ;;  %1964 = vmatmul.bf16.vlgmr.msrb.gmra.mxu3 %v5819_v59 }
 0x168   :  { %v1560_v34 = vpop.f32.mrf.mxu2  ;;  %v1384_v4 = vpop.f32.mrf.mxu0 }
 0x169   :  { %v1561_v54 = vadd.f32 %v1560_v34, %v6533_v14  ;;  %v1649_v63 = vpop.f32.mrf.mxu3  ;;  %v1385_v46 = vadd.f32 %v1384_v4, %v6318_v60  ;;  %v1473_v55 = vpop.f32.mrf.mxu1 }
 0x16b   :  { %v6554_v27 = vadd.f32 %v1649_v63, %v1561_v54  ;;  %v6556_v59 = vadd.f32 %v1473_v55, %v1385_v46  ;;  %v6576_v63 = vpop.permute.xlu1 %790 }
 0x16d   :  { %8389 = vst [vmem:[#allocation47_spill] sm:$0xff] %v6554_v27 }
 0x16e   :  { %8390 = vst [vmem:[#allocation48_spill] sm:$0xff] %v6556_v59 }
 0x170   :  { %v1562_v61 = vpop.f32.mrf.mxu2  ;;  %v1387_v43 = vpop.f32.mrf.mxu0 }
 0x171   :  { %v1563_v56 = vadd.f32 %v1562_v61, %v6318_v60  ;;  %v1651_v11 = vpop.f32.mrf.mxu3  ;;  %v1476_v53 = vpop.f32.mrf.mxu1  ;;  %v1388_v39 = vadd.f32 %v1387_v43, %v6564_v18 }
 0x173   :  { %v6568_v34 = vadd.f32 %v1651_v11, %v1563_v56  ;;  %1702 = vmatmul.bf16.gmra.mxu0 %v5870_v21  ;;  %v6571_v54 = vadd.f32 %v1476_v53, %v1388_v39 }
 0x174   :  { %1791 = vmatmul.bf16.gmra.mxu1 %v5872_v22 }
 0x175   :  { %8391 = vst [vmem:[#allocation49_spill] sm:$0xff] %v6568_v34  ;;  %1880 = vmatmul.bf16.gmra.mxu2 %v5870_v21 }
 0x176   :  { %8392 = vst [vmem:[#allocation50_spill] sm:$0xff] %v6571_v54  ;;  %1969 = vmatmul.bf16.gmra.mxu3 %v5872_v22 }
 0x178   :  { %v1565_v4 = vpop.f32.mrf.mxu2  ;;  %v1389_v49 = vpop.f32.mrf.mxu0 }
 0x179   :  { %v1566_v46 = vadd.f32 %v1565_v4, %v6564_v18  ;;  %v1654_v55 = vpop.f32.mrf.mxu3  ;;  %v1390_v51 = vadd.f32 %v1389_v49, %v6576_v63  ;;  %v1478_v61 = vpop.f32.mrf.mxu1 }
 0x17a   :  { %v6600_v49 = vpop.permute.xlu0 %800 }
 0x17b   :  { %v6580_v56 = vadd.f32 %v1654_v55, %v1566_v46  ;;  %v6582_v11 = vadd.f32 %v1478_v61, %v1390_v51  ;;  %v5000_v46 = vld [vmem:[%s8201_s6 + $0xa8] sm:$0xff] }
 0x17c   :  { %v5008_v55 = vld [vmem:[%s8201_s6 + $0xe8] sm:$0xff]  ;;  %2673 = vmatpush.bf16.msra.mxu2 %v5000_v46  ;;  %v6614_v46 = vpop.permute.xlu1 %805 }
 0x17d   :  { %8393 = vst [vmem:[#allocation51_spill] sm:$0xff] %v6580_v56  ;;  %2762 = vmatpush.bf16.msra.mxu3 %v5008_v55 }
 0x17e   :  { %8394 = vst [vmem:[#allocation52_spill] sm:$0xff] %v6582_v11 }
 0x180   :  { %v1567_v43 = vpop.f32.mrf.mxu2  ;;  %v1392_v39 = vpop.f32.mrf.mxu0 }
 0x181   :  { %v1568_v53 = vadd.f32 %v1567_v43, %v6576_v63  ;;  %v1656_v21 = vpop.f32.mrf.mxu3  ;;  %v1393_v22 = vadd.f32 %v1392_v39, %v6349_v5  ;;  %v1481_v54 = vpop.f32.mrf.mxu1  ;;  %v4984_v39 = vld [vmem:[%s8201_s6 + $0x28] sm:$0xff] }
 0x182   :  { %2495 = vmatpush.bf16.msra.mxu0 %v4984_v39 }
 0x183   :  { %v6586_v27 = vadd.f32 %v1656_v21, %v1568_v53  ;;  %v6588_v4 = vadd.f32 %v1481_v54, %v1393_v22  ;;  %1707 = vmatmul.bf16.gmra.mxu0 %v5899_v30  ;;  %v4992_v22 = vld [vmem:[%s8201_s6 + $0x68] sm:$0xff] }
 0x184   :  { %1796 = vmatmul.bf16.gmra.mxu1 %v5901_v31 }
 0x185   :  { %8395 = vst [vmem:[#allocation53_spill] sm:$0xff] %v6586_v27  ;;  %1885 = vmatmul.bf16.gmra.mxu2 %v5899_v30  ;;  %2584 = vmatpush.bf16.msra.mxu1 %v4992_v22 }
 0x186   :  { %8396 = vst [vmem:[#allocation54_spill] sm:$0xff] %v6588_v4  ;;  %1974 = vmatmul.bf16.gmra.mxu3 %v5901_v31 }
 0x188   :  { %v1570_v54 = vpop.f32.mrf.mxu2  ;;  %v1394_v43 = vpop.f32.mrf.mxu0 }
 0x189   :  { %v1571_v51 = vadd.f32 %v1570_v54, %v6349_v5  ;;  %v1659_v61 = vpop.f32.mrf.mxu3  ;;  %v1395_v30 = vadd.f32 %v1394_v43, %v6600_v49  ;;  %v1483_v31 = vpop.f32.mrf.mxu1 }
 0x18b   :  { %v6604_v53 = vadd.f32 %v1659_v61, %v1571_v51  ;;  %v6606_v21 = vadd.f32 %v1483_v31, %v1395_v30 }
 0x18d   :  { %8397 = vst [vmem:[#allocation55_spill] sm:$0xff] %v6604_v53 }
 0x18e   :  { %8398 = vst [vmem:[#allocation56_spill] sm:$0xff] %v6606_v21 }
 0x190   :  { %v1572_v55 = vpop.f32.mrf.mxu2  ;;  %v1397_v51 = vpop.f32.mrf.mxu0 }
 0x191   :  { %v1573_v54 = vadd.f32 %v1572_v55, %v6600_v49  ;;  %v1661_v43 = vpop.f32.mrf.mxu3  ;;  %v1486_v61 = vpop.f32.mrf.mxu1  ;;  %v1398_v30 = vadd.f32 %v1397_v51, %v6614_v46 }
 0x193   :  { %v6618_v31 = vadd.f32 %v1661_v43, %v1573_v54  ;;  %1712 = vmatmul.bf16.gmra.mxu0 %v5952_v47  ;;  %v6621_v53 = vadd.f32 %v1486_v61, %v1398_v30  ;;  %v6632_v61 = vpop.permute.xlu0 %815 }
 0x194   :  { %1801 = vmatmul.bf16.gmra.mxu1 %v5954_v48 }
 0x195   :  { %8399 = vst [vmem:[#allocation57_spill] sm:$0xff] %v6618_v31  ;;  %1890 = vmatmul.bf16.gmra.mxu2 %v5952_v47 }
 0x196   :  { %8400 = vst [vmem:[#allocation58_spill] sm:$0xff] %v6621_v53  ;;  %1979 = vmatmul.bf16.gmra.mxu3 %v5954_v48 }
 0x198   :  { %v1575_v39 = vpop.f32.mrf.mxu2  ;;  %v1399_v4 = vpop.f32.mrf.mxu0 }
 0x199   :  { %v1576_v22 = vadd.f32 %v1575_v39, %v6614_v46  ;;  %v1664_v55 = vpop.f32.mrf.mxu3  ;;  %v1400_v21 = vadd.f32 %v1399_v4, %v6382_v26  ;;  %v1488_v51 = vpop.f32.mrf.mxu1 }
 0x19b   :  { %v6628_v54 = vadd.f32 %v1664_v55, %v1576_v22  ;;  %v6630_v43 = vadd.f32 %v1488_v51, %v1400_v21  ;;  %v4999_v21 = vld [vmem:[%s8201_s6 + $0xa0] sm:$0xff] }
 0x19c   :  { %2674 = vmatpush.bf16.msra.mxu2 %v4999_v21  ;;  %v4991_v21 = vld [vmem:[%s8201_s6 + $0x60] sm:$0xff] }
 0x19d   :  { %8401 = vst [vmem:[#allocation59_spill] sm:$0xff] %v6628_v54  ;;  %2585 = vmatpush.bf16.msra.mxu1 %v4991_v21 }
 0x19e   :  { %8402 = vst [vmem:[#allocation60_spill] sm:$0xff] %v6630_v43 }
 0x1a0   :  { %v1577_v30 = vpop.f32.mrf.mxu2  ;;  %v1402_v31 = vpop.f32.mrf.mxu0 }
 0x1a1   :  { %v1578_v53 = vadd.f32 %v1577_v30, %v6382_v26  ;;  %v1666_v47 = vpop.f32.mrf.mxu3  ;;  %v1491_v48 = vpop.f32.mrf.mxu1  ;;  %v1403_v56 = vadd.f32 %v1402_v31, %v6632_v61  ;;  %v5007_v31 = vld [vmem:[%s8201_s6 + $0xe0] sm:$0xff] }
 0x1a2   :  { %2763 = vmatpush.bf16.msra.mxu3 %v5007_v31 }
 0x1a3   :  { %v6636_v39 = vadd.f32 %v1666_v47, %v1578_v53  ;;  %1717 = vmatmul.bf16.gmra.mxu0 %v5981_v57  ;;  %v6639_v4 = vadd.f32 %v1491_v48, %v1403_v56  ;;  %v6650_v53 = vpop.permute.xlu1 %820  ;;  %v4983_v48 = vld [vmem:[%s8201_s6 + $0x20] sm:$0xff] }
 0x1a4   :  { %1806 = vmatmul.bf16.gmra.mxu1 %v5983_v58  ;;  %2496 = vmatpush.bf16.msra.mxu0 %v4983_v48  ;;  %v6674_v48 = vpop.permute.xlu0 %830 }
 0x1a5   :  { %8403 = vst [vmem:[#allocation61_spill] sm:$0xff] %v6636_v39  ;;  %1895 = vmatmul.bf16.gmra.mxu2 %v5981_v57 }
 0x1a6   :  { %8404 = vst [vmem:[#allocation62_spill] sm:$0xff] %v6639_v4  ;;  %1984 = vmatmul.bf16.gmra.mxu3 %v5983_v58 }
 0x1a8   :  { %v1580_v22 = vpop.f32.mrf.mxu2  ;;  %v1404_v51 = vpop.f32.mrf.mxu0 }
 0x1a9   :  { %v1581_v56 = vadd.f32 %v1580_v22, %v6632_v61  ;;  %v1669_v55 = vpop.f32.mrf.mxu3  ;;  %v1405_v57 = vadd.f32 %v1404_v51, %v6650_v53  ;;  %v1493_v58 = vpop.f32.mrf.mxu1 }
 0x1ab   :  { %v6654_v30 = vadd.f32 %v1669_v55, %v1581_v56  ;;  %v6656_v47 = vadd.f32 %v1493_v58, %v1405_v57 }
 0x1ad   :  { %8405 = vst [vmem:[#allocation63_spill] sm:$0xff] %v6654_v30 }
 0x1ae   :  { %8406 = vst [vmem:[#allocation64_spill] sm:$0xff] %v6656_v47 }
 0x1b0   :  { %v1582_v31 = vpop.f32.mrf.mxu2  ;;  %v1407_v51 = vpop.f32.mrf.mxu0 }
 0x1b1   :  { %v1583_v22 = vadd.f32 %v1582_v31, %v6650_v53  ;;  %v1671_v4 = vpop.f32.mrf.mxu3  ;;  %v1408_v56 = vadd.f32 %v1407_v51, %v6412_v36  ;;  %v1496_v55 = vpop.f32.mrf.mxu1 }
 0x1b3   :  { %v6666_v57 = vadd.f32 %v1671_v4, %v1583_v22  ;;  %v6668_v58 = vadd.f32 %v1496_v55, %v1408_v56  ;;  %1722 = vmatmul.bf16.gmra.mxu0 %v6028_v19 }
 0x1b4   :  { %1811 = vmatmul.bf16.gmra.mxu1 %v6030_v20 }
 0x1b5   :  { %8407 = vst [vmem:[#allocation65_spill] sm:$0xff] %v6666_v57  ;;  %1900 = vmatmul.bf16.gmra.mxu2 %v6028_v19 }
 0x1b6   :  { %8408 = vst [vmem:[#allocation66_spill] sm:$0xff] %v6668_v58  ;;  %1989 = vmatmul.bf16.gmra.mxu3 %v6030_v20  ;;  %v6682_v58 = vpop.permute.xlu1 %835 }
 0x1b8   :  { %v1585_v21 = vpop.f32.mrf.mxu2  ;;  %v1409_v51 = vpop.f32.mrf.mxu0 }
 0x1b9   :  { %v1586_v31 = vadd.f32 %v1585_v21, %v6412_v36  ;;  %v1674_v30 = vpop.f32.mrf.mxu3  ;;  %v1410_v4 = vadd.f32 %v1409_v51, %v6674_v48  ;;  %v1498_v22 = vpop.f32.mrf.mxu1 }
 0x1bb   :  { %v6678_v56 = vadd.f32 %v1674_v30, %v1586_v31  ;;  %v6680_v55 = vadd.f32 %v1498_v22, %v1410_v4  ;;  %v4998_v30 = vld [vmem:[%s8201_s6 + $0x98] sm:$0xff] }
 0x1bc   :  { %2675 = vmatpush.bf16.msra.mxu2 %v4998_v30  ;;  %v4990_v30 = vld [vmem:[%s8201_s6 + $0x58] sm:$0xff] }
 0x1bd   :  { %8409 = vst [vmem:[#allocation67_spill] sm:$0xff] %v6678_v56  ;;  %2586 = vmatpush.bf16.msra.mxu1 %v4990_v30 }
 0x1be   :  { %8410 = vst [vmem:[#allocation68_spill] sm:$0xff] %v6680_v55 }
 0x1c0   :  { %v1587_v57 = vpop.f32.mrf.mxu2  ;;  %v1412_v47 = vpop.f32.mrf.mxu0 }
 0x1c1   :  { %v1588_v19 = vadd.f32 %v1587_v57, %v6674_v48  ;;  %v1676_v20 = vpop.f32.mrf.mxu3  ;;  %v1501_v54 = vpop.f32.mrf.mxu1  ;;  %v1413_v39 = vadd.f32 %v1412_v47, %v6682_v58  ;;  %v5006_v47 = vld [vmem:[%s8201_s6 + $0xd8] sm:$0xff] }
 0x1c2   :  { %2764 = vmatpush.bf16.msra.mxu3 %v5006_v47 }
 0x1c3   :  { %v6686_v21 = vadd.f32 %v1676_v20, %v1588_v19  ;;  %1727 = vmatmul.bf16.gmra.mxu0 %v6054_v13  ;;  %v6689_v51 = vadd.f32 %v1501_v54, %v1413_v39  ;;  %v6706_v19 = vpop.permute.xlu0 %845 }
 0x1c4   :  { %1816 = vmatmul.bf16.gmra.mxu1 %v6056_v40  ;;  %8415 = vst [vmem:[#allocation73_spill] sm:$0xff] %v6706_v19 }
 0x1c5   :  { %8411 = vst [vmem:[#allocation69_spill] sm:$0xff] %v6686_v21  ;;  %1905 = vmatmul.bf16.gmra.mxu2 %v6054_v13 }
 0x1c6   :  { %8412 = vst [vmem:[#allocation70_spill] sm:$0xff] %v6689_v51  ;;  %1994 = vmatmul.bf16.gmra.mxu3 %v6056_v40  ;;  %v4982_v51 = vld [vmem:[%s8201_s6 + $0x18] sm:$0xff] }
 0x1c7   :  { %2497 = vmatpush.bf16.msra.mxu0 %v4982_v51 }
 0x1c8   :  { %v1590_v57 = vpop.f32.mrf.mxu2  ;;  %v1414_v31 = vpop.f32.mrf.mxu0 }
 0x1c9   :  { %v1591_v54 = vadd.f32 %v1590_v57, %v6682_v58  ;;  %v1679_v39 = vpop.f32.mrf.mxu3  ;;  %v1415_v4 = vadd.f32 %v1414_v31, %v6438_v15  ;;  %v1503_v13 = vpop.f32.mrf.mxu1 }
 0x1cb   :  { %v6702_v22 = vadd.f32 %v1679_v39, %v1591_v54  ;;  %v6704_v40 = vadd.f32 %v1503_v13, %v1415_v4  ;;  %v6724_v13 = vpop.permute.xlu1 %850 }
 0x1cc   :  { %8418 = vst [vmem:[#allocation76_spill] sm:$0xff] %v6724_v13 }
 0x1cd   :  { %8413 = vst [vmem:[#allocation71_spill] sm:$0xff] %v6702_v22 }
 0x1ce   :  { %8414 = vst [vmem:[#allocation72_spill] sm:$0xff] %v6704_v40 }
 0x1d0   :  { %v1592_v20 = vpop.f32.mrf.mxu2  ;;  %v1417_v31 = vpop.f32.mrf.mxu0 }
 0x1d1   :  { %v1593_v47 = vadd.f32 %v1592_v20, %v6438_v15  ;;  %v1681_v57 = vpop.f32.mrf.mxu3  ;;  %v1506_v56 = vpop.f32.mrf.mxu1  ;;  %v1418_v54 = vadd.f32 %v1417_v31, %v6706_v19 }
 0x1d3   :  { %v6716_v39 = vadd.f32 %v1681_v57, %v1593_v47  ;;  %1732 = vmatmul.bf16.gmra.mxu0 %v6097_v6  ;;  %v6719_v4 = vadd.f32 %v1506_v56, %v1418_v54 }
 0x1d4   :  { %1821 = vmatmul.bf16.gmra.mxu1 %v6108_v10 }
 0x1d5   :  { %8416 = vst [vmem:[#allocation74_spill] sm:$0xff] %v6716_v39  ;;  %1910 = vmatmul.bf16.gmra.mxu2 %v6097_v6 }
 0x1d6   :  { %8417 = vst [vmem:[#allocation75_spill] sm:$0xff] %v6719_v4  ;;  %1999 = vmatmul.bf16.gmra.mxu3 %v6108_v10 }
 0x1d8   :  { %v1595_v20 = vpop.f32.mrf.mxu2  ;;  %v1419_v51 = vpop.f32.mrf.mxu0 }
 0x1d9   :  { %v1596_v22 = vadd.f32 %v1595_v20, %v6706_v19  ;;  %v1684_v31 = vpop.f32.mrf.mxu3  ;;  %v1420_v30 = vadd.f32 %v1419_v51, %v6724_v13  ;;  %v1508_v47 = vpop.f32.mrf.mxu1 }
 0x1db   :  { %v6728_v57 = vadd.f32 %v1684_v31, %v1596_v22  ;;  %v6730_v56 = vadd.f32 %v1508_v47, %v1420_v30  ;;  %v4997_v22 = vld [vmem:[%s8201_s6 + $0x90] sm:$0xff] }
 0x1dc   :  { %2676 = vmatpush.bf16.msra.mxu2 %v4997_v22 }
 0x1dd   :  { %8419 = vst [vmem:[#allocation77_spill] sm:$0xff] %v6728_v57 }
 0x1de   :  { %8420 = vst [vmem:[#allocation78_spill] sm:$0xff] %v6730_v56  ;;  %v8447_v56 = vld [vmem:[#allocation12_spill] sm:$0xff] }
 0x1e0   :  { %v1597_v54 = vpop.f32.mrf.mxu2  ;;  %v1698_v39 = vpop.f32.mrf.mxu0 }
 0x1e1   :  { %v1598_v4 = vadd.f32 %v1597_v54, %v6724_v13  ;;  %v1686_v6 = vpop.f32.mrf.mxu3  ;;  %v1699_v10 = vadd.f32 %v1698_v39, %v6122_v28  ;;  %v1787_v40 = vpop.f32.mrf.mxu1  ;;  %v5005_v39 = vld [vmem:[%s8201_s6 + $0xd0] sm:$0xff] }
 0x1e2   :  { %2765 = vmatpush.bf16.msra.mxu3 %v5005_v39  ;;  %v4981_v54 = vld [vmem:[%s8201_s6 + $0x10] sm:$0xff] }
 0x1e3   :  { %v6734_v21 = vadd.f32 %v1686_v6, %v1598_v4  ;;  %v6736_v20 = vadd.f32 %v1787_v40, %v1699_v10  ;;  %1737 = vmatmul.bf16.gmra.mxu0 %v6136_v35  ;;  %v4989_v6 = vld [vmem:[%s8201_s6 + $0x50] sm:$0xff] }
 0x1e4   :  { %1826 = vmatmul.bf16.gmra.mxu1 %v6138_v37  ;;  %2498 = vmatpush.bf16.msra.mxu0 %v4981_v54 }
 0x1e5   :  { %8421 = vst [vmem:[#allocation79_spill] sm:$0xff] %v6734_v21  ;;  %1915 = vmatmul.bf16.gmra.mxu2 %v6136_v35  ;;  %2587 = vmatpush.bf16.msra.mxu1 %v4989_v6 }
 0x1e6   :  { %8422 = vst [vmem:[#allocation80_spill] sm:$0xff] %v6736_v20  ;;  %2004 = vmatmul.bf16.gmra.mxu3 %v6138_v37 }
 0x1e8   :  { %v1876_v4 = vpop.f32.mrf.mxu2  ;;  %v1700_v51 = vpop.f32.mrf.mxu0 }
 0x1e9   :  { %v1877_v40 = vadd.f32 %v1876_v4, %v6122_v28  ;;  %v1965_v31 = vpop.f32.mrf.mxu3  ;;  %v1701_v30 = vadd.f32 %v1700_v51, %v6161_v44  ;;  %v1789_v35 = vpop.f32.mrf.mxu1 }
 0x1eb   :  { %v6750_v47 = vadd.f32 %v1965_v31, %v1877_v40  ;;  %v6752_v37 = vadd.f32 %v1789_v35, %v1701_v30 }
 0x1ed   :  { %8423 = vst [vmem:[#allocation81_spill] sm:$0xff] %v6750_v47 }
 0x1ee   :  { %8424 = vst [vmem:[#allocation82_spill] sm:$0xff] %v6752_v37 }
 0x1f0   :  { %v1878_v10 = vpop.f32.mrf.mxu2  ;;  %v1703_v39 = vpop.f32.mrf.mxu0 }
 0x1f1   :  { %v1879_v28 = vadd.f32 %v1878_v10, %v6161_v44  ;;  %v1967_v22 = vpop.f32.mrf.mxu3  ;;  %v1704_v4 = vadd.f32 %v1703_v39, %v6180_v3  ;;  %v1792_v40 = vpop.f32.mrf.mxu1 }
 0x1f3   :  { %v6762_v31 = vadd.f32 %v1967_v22, %v1879_v28  ;;  %v6764_v51 = vadd.f32 %v1792_v40, %v1704_v4  ;;  %1742 = vmatmul.bf16.gmra.mxu0 %v6203_v23 }
 0x1f4   :  { %1831 = vmatmul.bf16.gmra.mxu1 %v6206_v29 }
 0x1f5   :  { %8425 = vst [vmem:[#allocation83_spill] sm:$0xff] %v6762_v31  ;;  %1920 = vmatmul.bf16.gmra.mxu2 %v6203_v23 }
 0x1f6   :  { %8426 = vst [vmem:[#allocation84_spill] sm:$0xff] %v6764_v51  ;;  %2009 = vmatmul.bf16.gmra.mxu3 %v6206_v29 }
 0x1f8   :  { %v1881_v30 = vpop.f32.mrf.mxu2  ;;  %v1705_v54 = vpop.f32.mrf.mxu0 }
 0x1f9   :  { %v1882_v44 = vadd.f32 %v1881_v30, %v6180_v3  ;;  %v1970_v35 = vpop.f32.mrf.mxu3  ;;  %v1706_v6 = vadd.f32 %v1705_v54, %v6222_v16  ;;  %v1794_v10 = vpop.f32.mrf.mxu1 }
 0x1fb   :  { %v6772_v28 = vadd.f32 %v1970_v35, %v1882_v44  ;;  %v6774_v22 = vadd.f32 %v1794_v10, %v1706_v6 }
 0x1fd   :  { %8427 = vst [vmem:[#allocation85_spill] sm:$0xff] %v6772_v28 }
 0x1fe   :  { %8428 = vst [vmem:[#allocation86_spill] sm:$0xff] %v6774_v22 }
 0x200   :  { %v1883_v39 = vpop.f32.mrf.mxu2  ;;  %v1708_v57 = vpop.f32.mrf.mxu0 }
 0x201   :  { %v1884_v4 = vadd.f32 %v1883_v39, %v6222_v16  ;;  %v1972_v40 = vpop.f32.mrf.mxu3  ;;  %v1709_v23 = vadd.f32 %v1708_v57, %v6141_v41  ;;  %v1797_v29 = vpop.f32.mrf.mxu1  ;;  %v4996_v16 = vld [vmem:[%s8201_s6 + $0x88] sm:$0xff] }
 0x202   :  { %v5004_v57 = vld [vmem:[%s8201_s6 + $0xc8] sm:$0xff]  ;;  %2677 = vmatpush.bf16.msra.mxu2 %v4996_v16 }
 0x203   :  { %v6778_v21 = vadd.f32 %v1972_v40, %v1884_v4  ;;  %v6780_v3 = vadd.f32 %v1797_v29, %v1709_v23  ;;  %1747 = vmatmul.bf16.gmra.mxu0 %v6242_v1  ;;  %2766 = vmatpush.bf16.msra.mxu3 %v5004_v57  ;;  %v4980_v39 = vld [vmem:[%s8201_s6 + $0x8] sm:$0xff] }
 0x204   :  { %1836 = vmatmul.bf16.gmra.mxu1 %v6247_v9  ;;  %v4988_v4 = vld [vmem:[%s8201_s6 + $0x48] sm:$0xff]  ;;  %2499 = vmatpush.bf16.msra.mxu0 %v4980_v39 }
 0x205   :  { %8429 = vst [vmem:[#allocation87_spill] sm:$0xff] %v6778_v21  ;;  %1925 = vmatmul.bf16.gmra.mxu2 %v6242_v1  ;;  %2588 = vmatpush.bf16.msra.mxu1 %v4988_v4 }
 0x206   :  { %8430 = vst [vmem:[#allocation88_spill] sm:$0xff] %v6780_v3  ;;  %2014 = vmatmul.bf16.gmra.mxu3 %v6247_v9 }
 0x208   :  { %v1886_v30 = vpop.f32.mrf.mxu2  ;;  %v1710_v54 = vpop.f32.mrf.mxu0 }
 0x209   :  { %v1887_v44 = vadd.f32 %v1886_v30, %v6141_v41  ;;  %v1975_v35 = vpop.f32.mrf.mxu3  ;;  %v1711_v6 = vadd.f32 %v1710_v54, %v6178_v2  ;;  %v1799_v1 = vpop.f32.mrf.mxu1 }
 0x20b   :  { %v6794_v10 = vadd.f32 %v1975_v35, %v1887_v44  ;;  %v6796_v9 = vadd.f32 %v1799_v1, %v1711_v6 }
 0x20d   :  { %8431 = vst [vmem:[#allocation89_spill] sm:$0xff] %v6794_v10 }
 0x20e   :  { %8432 = vst [vmem:[#allocation90_spill] sm:$0xff] %v6796_v9 }
 0x210   :  { %v1888_v40 = vpop.f32.mrf.mxu2  ;;  %v1713_v29 = vpop.f32.mrf.mxu0 }
 0x211   :  { %v1889_v41 = vadd.f32 %v1888_v40, %v6178_v2  ;;  %v1977_v23 = vpop.f32.mrf.mxu3  ;;  %v1714_v16 = vadd.f32 %v1713_v29, %v6302_v24  ;;  %v1802_v57 = vpop.f32.mrf.mxu1 }
 0x213   :  { %v6806_v30 = vadd.f32 %v1977_v23, %v1889_v41  ;;  %v6808_v44 = vadd.f32 %v1802_v57, %v1714_v16  ;;  %1752 = vmatmul.bf16.gmra.mxu0 %v6307_v32 }
 0x214   :  { %1841 = vmatmul.bf16.gmra.mxu1 %v6310_v17 }
 0x215   :  { %8433 = vst [vmem:[#allocation91_spill] sm:$0xff] %v6806_v30  ;;  %1930 = vmatmul.bf16.gmra.mxu2 %v6307_v32 }
 0x216   :  { %8434 = vst [vmem:[#allocation92_spill] sm:$0xff] %v6808_v44  ;;  %2019 = vmatmul.bf16.gmra.mxu3 %v6310_v17 }
 0x218   :  { %v1891_v35 = vpop.f32.mrf.mxu2  ;;  %v1715_v6 = vpop.f32.mrf.mxu0 }
 0x219   :  { %v1892_v2 = vadd.f32 %v1891_v35, %v6302_v24  ;;  %v1980_v54 = vpop.f32.mrf.mxu3  ;;  %v1716_v1 = vadd.f32 %v1715_v6, %v6329_v7  ;;  %v1804_v39 = vpop.f32.mrf.mxu1  ;;  %v5003_v35 = vld [vmem:[%s8201_s6 + $0xc0] sm:$0xff] }
 0x21a   :  { %2767 = vmatpush.bf16.msra.mxu3 %v5003_v35  ;;  %v8442_v35 = vld [vmem:[#allocation26_spill] sm:$0xff] }
 0x21b   :  { %v6816_v4 = vadd.f32 %v1980_v54, %v1892_v2  ;;  %v6818_v40 = vadd.f32 %v1804_v39, %v1716_v1  ;;  %v8439_v39 = vld [vmem:[#allocation23_spill] sm:$0xff] }
 0x21d   :  { %8435 = vst [vmem:[#allocation93_spill] sm:$0xff] %v6816_v4 }
 0x21e   :  { %8436 = vst [vmem:[#allocation94_spill] sm:$0xff] %v6818_v40 }
 0x220   :  { %v1893_v41 = vpop.f32.mrf.mxu2  ;;  %v1718_v16 = vpop.f32.mrf.mxu0 }
 0x221   :  { %v1894_v23 = vadd.f32 %v1893_v41, %v6329_v7  ;;  %v1982_v29 = vpop.f32.mrf.mxu3  ;;  %v1719_v32 = vadd.f32 %v1718_v16, %v6217_v38  ;;  %v1807_v17 = vpop.f32.mrf.mxu1  ;;  %v4995_v7 = vld [vmem:[%s8201_s6 + $0x80] sm:$0xff] }
 0x222   :  { %2678 = vmatpush.bf16.msra.mxu2 %v4995_v7  ;;  %v4987_v16 = vld [vmem:[%s8201_s6 + $0x40] sm:$0xff] }
 0x223   :  { %v6822_v57 = vadd.f32 %v1982_v29, %v1894_v23  ;;  %v6824_v24 = vadd.f32 %v1807_v17, %v1719_v32  ;;  %1757 = vmatmul.bf16.gmra.mxu0 %v6351_v12  ;;  %v4979_v29 = vld [vmem:[%s8201_s6] sm:$0xff]  ;;  %2589 = vmatpush.bf16.msra.mxu1 %v4987_v16 }
 0x224   :  { %1846 = vmatmul.bf16.gmra.mxu1 %v6354_v33  ;;  %2500 = vmatpush.bf16.msra.mxu0 %v4979_v29 }
 0x225   :  { %8437 = vst [vmem:[#allocation95_spill] sm:$0xff] %v6822_v57  ;;  %1935 = vmatmul.bf16.gmra.mxu2 %v6351_v12 }
 0x226   :  { %8438 = vst [vmem:[#allocation96_spill] sm:$0xff] %v6824_v24  ;;  %2024 = vmatmul.bf16.gmra.mxu3 %v6354_v33 }
 0x228   :  { %v1896_v2 = vpop.f32.mrf.mxu2  ;;  %v1720_v1 = vpop.f32.mrf.mxu0 }
 0x229   :  { %v1897_v54 = vadd.f32 %v1896_v2, %v6217_v38  ;;  %v1985_v6 = vpop.f32.mrf.mxu3  ;;  %v1721_v41 = vadd.f32 %v1720_v1, %v8439_v39  ;;  %v1809_v12 = vpop.f32.mrf.mxu1 }
 0x22b   :  { %v6838_v23 = vadd.f32 %v1985_v6, %v1897_v54  ;;  %v6840_v33 = vadd.f32 %v1809_v12, %v1721_v41  ;;  %v8445_v41 = vld [vmem:[#allocation27_spill] sm:$0xff]  ;;  %v8446_v12 = vld [vmem:[#allocation28_spill] sm:$0xff] }
 0x22d   :  { %8440 = vst [vmem:[#allocation23_spill] sm:$0xff] %v6838_v23 }
 0x22e   :  { %8441 = vst [vmem:[#allocation97_spill] sm:$0xff] %v6840_v33 }
 0x230   :  { %v1898_v32 = vpop.f32.mrf.mxu2  ;;  %v1723_v7 = vpop.f32.mrf.mxu0 }
 0x231   :  { %v1899_v38 = vadd.f32 %v1898_v32, %v8439_v39  ;;  %v1987_v17 = vpop.f32.mrf.mxu3  ;;  %v1724_v2 = vadd.f32 %v1723_v7, %v8442_v35  ;;  %v1812_v54 = vpop.f32.mrf.mxu1 }
 0x233   :  { %v6850_v6 = vadd.f32 %v1987_v17, %v1899_v38  ;;  %v6852_v1 = vadd.f32 %v1812_v54, %v1724_v2  ;;  %1762 = vmatmul.bf16.gmra.mxu0 %v8445_v41 }
 0x234   :  { %1851 = vmatmul.bf16.gmra.mxu1 %v8446_v12 }
 0x235   :  { %8443 = vst [vmem:[#allocation26_spill] sm:$0xff] %v6850_v6  ;;  %1940 = vmatmul.bf16.gmra.mxu2 %v8445_v41  ;;  %v8450_v41 = vld [vmem:[#allocation33_spill] sm:$0xff] }
 0x236   :  { %8444 = vst [vmem:[#allocation98_spill] sm:$0xff] %v6852_v1  ;;  %2029 = vmatmul.bf16.gmra.mxu3 %v8446_v12 }
 0x238   :  { %v1901_v29 = vpop.f32.mrf.mxu2  ;;  %v1725_v32 = vpop.f32.mrf.mxu0 }
 0x239   :  { %v1902_v39 = vadd.f32 %v1901_v29, %v8442_v35  ;;  %v1990_v16 = vpop.f32.mrf.mxu3  ;;  %v1726_v7 = vadd.f32 %v1725_v32, %v8447_v56  ;;  %v1814_v55 = vpop.f32.mrf.mxu1  ;;  %v8453_v29 = vld [vmem:[#allocation34_spill] sm:$0xff]  ;;  %v8454_v32 = vld [vmem:[#allocation35_spill] sm:$0xff] }
 0x23b   :  { %v6860_v38 = vadd.f32 %v1990_v16, %v1902_v39  ;;  %v6862_v17 = vadd.f32 %v1814_v55, %v1726_v7  ;;  %v4749_v55 = vld [vmem:[%s8202_s7 + $0x28] sm:$0xf] }
 0x23d   :  { %8448 = vst [vmem:[#allocation27_spill] sm:$0xff] %v6860_v38 }
 0x23e   :  { %8449 = vst [vmem:[#allocation28_spill] sm:$0xff] %v6862_v17 }
 0x240   :  { %v1903_v2 = vpop.f32.mrf.mxu2  ;;  %v1728_v27 = vpop.f32.mrf.mxu0 }
 0x241   :  { %v1904_v54 = vadd.f32 %v1903_v2, %v8447_v56  ;;  %v1992_v43 = vpop.f32.mrf.mxu3  ;;  %v1729_v11 = vadd.f32 %v1728_v27, %v8450_v41  ;;  %v1817_v12 = vpop.f32.mrf.mxu1  ;;  %v5018_v27 = vld [vmem:[%s8202_s7 + $0x34] sm:$0x30]  ;;  %v4751_v56 = vld [vmem:[%s8202_s7 + $0x38] sm:$0x30] }
 0x243   :  { %v6866_v62 = vadd.f32 %v1992_v43, %v1904_v54  ;;  %v6868_v35 = vadd.f32 %v1817_v12, %v1729_v11  ;;  %1767 = vmatmul.bf16.gmra.mxu0 %v8453_v29  ;;  %v4750_v43 = vor.u32 %v5018_v27, %v4749_v55  ;;  %v5016_v11 = vld [vmem:[%s8202_s7 + $0x2c] sm:$0xf] }
 0x244   :  { %1856 = vmatmul.bf16.gmra.mxu1 %v8454_v32  ;;  %v4754_v16 = vor.u32 %v5016_v11, %v4751_v56  ;;  %v4741_v11 = vld [vmem:[%s8202_s7 + $0x20] sm:$0xf] }
 0x245   :  { %8451 = vst [vmem:[#allocation12_spill] sm:$0xff] %v6866_v62  ;;  %1945 = vmatmul.bf16.gmra.mxu2 %v8453_v29  ;;  %v3318_v12 = vsel %vm3310_vm4, %v4750_v43, 0  ;;  %v5015_v43 = vld [vmem:[%s8202_s7 + $0x24] sm:$0xf] }
 0x246   :  { %8452 = vst [vmem:[#allocation33_spill] sm:$0xff] %v6868_v35  ;;  %2034 = vmatmul.bf16.gmra.mxu3 %v8454_v32  ;;  %3507 = vmatpush.bf16.msrb.mxu2 %v3318_v12  ;;  %v3321_v55 = vsel %vm3310_vm4, %v4754_v16, 0 }
 0x247   :  { %3596 = vmatpush.bf16.msrb.mxu3 %v3321_v55 }
 0x248   :  { %v1906_v39 = vpop.f32.mrf.mxu2  ;;  %v1730_v54 = vpop.f32.mrf.mxu0 }
 0x249   :  { %v1907_v7 = vadd.f32 %v1906_v39, %v8450_v41  ;;  %v1995_v2 = vpop.f32.mrf.mxu3  ;;  %v1731_v29 = vadd.f32 %v1730_v54, %v6483_v25  ;;  %v1819_v32 = vpop.f32.mrf.mxu1  ;;  %v5017_v41 = vld [vmem:[%s8202_s7 + $0x2c] sm:$0x30]  ;;  %v4743_v39 = vld [vmem:[%s8202_s7 + $0x30] sm:$0x30] }
 0x24a   :  { %v4742_v56 = vor.u32 %v5017_v41, %v4741_v11  ;;  %v8459_v41 = vld [vmem:[#allocation40_spill] sm:$0xff] }
 0x24b   :  { %v6890_v27 = vadd.f32 %v1995_v2, %v1907_v7  ;;  %v6892_v34 = vadd.f32 %v1819_v32, %v1731_v29  ;;  %v4746_v7 = vor.u32 %v5015_v43, %v4743_v39 }
 0x24c   :  { %v3312_v29 = vsel %vm3310_vm4, %v4742_v56, 0 }
 0x24d   :  { %8455 = vst [vmem:[#allocation34_spill] sm:$0xff] %v6890_v27  ;;  %3329 = vmatpush.bf16.msrb.mxu0 %v3312_v29  ;;  %v3315_v59 = vsel %vm3310_vm4, %v4746_v7, 0  ;;  %v8463_v29 = vld [vmem:[#allocation8_spill] sm:$0xff] }
 0x24e   :  { %8456 = vst [vmem:[#allocation35_spill] sm:$0xff] %v6892_v34  ;;  %3418 = vmatpush.bf16.msrb.mxu1 %v3315_v59 }
 0x250   :  { %v1908_v16 = vpop.f32.mrf.mxu2  ;;  %v1733_v12 = vpop.f32.mrf.mxu0 }
 0x251   :  { %v1909_v2 = vadd.f32 %v1908_v16, %v6483_v25  ;;  %v1997_v54 = vpop.f32.mrf.mxu3  ;;  %v1734_v32 = vadd.f32 %v1733_v12, %v6275_v52  ;;  %v1822_v55 = vpop.f32.mrf.mxu1 }
 0x253   :  { %v6910_v13 = vadd.f32 %v1997_v54, %v1909_v2  ;;  %v6912_v11 = vadd.f32 %v1822_v55, %v1734_v32  ;;  %1772 = vmatmul.bf16.gmra.mxu0 %v6509_v45  ;;  %v8462_v54 = vld [vmem:[#allocation7_spill] sm:$0xff]  ;;  %v2051_v32 = vmul.f32 %v6752_v37, %v6752_v37  ;;  %v8464_v55 = vld [vmem:[#allocation5_spill] sm:$0xff]  ;;  %v2048_v37 = vmul.f32 %v6750_v47, %v6750_v47 }
 0x254   :  { %1861 = vmatmul.bf16.gmra.mxu1 %v8459_v41  ;;  %v2049_v12 = vmul.f32 %v8462_v54, %v8462_v54 }
 0x255   :  { %8457 = vst [vmem:[#allocation99_spill] sm:$0xff] %v6910_v13  ;;  %1950 = vmatmul.bf16.gmra.mxu2 %v6509_v45  ;;  %v2050_v45 = vmul.f32 %v8463_v29, %v8463_v29 }
 0x256   :  { %8458 = vst [vmem:[#allocation100_spill] sm:$0xff] %v6912_v11  ;;  %2039 = vmatmul.bf16.gmra.mxu3 %v8459_v41  ;;  %v2052_v41 = vmul.f32 %v6762_v31, %v6762_v31 }
 0x258   :  { %v1911_v25 = vpop.f32.mrf.mxu2  ;;  %v1735_v39 = vpop.f32.mrf.mxu0  ;;  %v2176_v42 = vpack.c.bf16 %v2052_v41, %v2048_v37  ;;  %v8471_v37 = vld [vmem:[#allocation13_spill] sm:$0xff]  ;;  %v8473_v41 = vld [vmem:[#allocation10_spill] sm:$0xff] }
 0x259   :  { %v1912_v43 = vadd.f32 %v1911_v25, %v6275_v52  ;;  %v2000_v56 = vpop.f32.mrf.mxu3  ;;  %v1736_v16 = vadd.f32 %v1735_v39, %v6523_v0  ;;  %v1824_v7 = vpop.f32.mrf.mxu1  ;;  %v2045_v52 = vmul.f32 %v8464_v55, %v8464_v55  ;;  %v2047_v39 = vmul.f32 %v6736_v20, %v6736_v20 }
 0x25b   :  { %v6920_v2 = vadd.f32 %v2000_v56, %v1912_v43  ;;  %v6922_v59 = vadd.f32 %v1824_v7, %v1736_v16  ;;  %v8465_v43 = vld [vmem:[#allocation6_spill] sm:$0xff]  ;;  %v2173_v54 = vpack.c.bf16 %v2049_v12, %v2045_v52  ;;  %v2175_v31 = vpack.c.bf16 %v2051_v32, %v2047_v39  ;;  %v8470_v32 = vld [vmem:[#allocation11_spill] sm:$0xff] }
 0x25c   :  { %v2046_v56 = vmul.f32 %v8465_v43, %v8465_v43 }
 0x25d   :  { %8460 = vst [vmem:[#allocation40_spill] sm:$0xff] %v6920_v2 }
 0x25e   :  { %8461 = vst [vmem:[#allocation101_spill] sm:$0xff] %v6922_v59  ;;  %v2174_v2 = vpack.c.bf16 %v2050_v45, %v2046_v56  ;;  %v2055_v56 = vmul.f32 %v6764_v51, %v6764_v51 }
 0x260   :  { %v1913_v25 = vpop.f32.mrf.mxu2  ;;  %v1738_v29 = vpop.f32.mrf.mxu0 }
 0x261   :  { %v1914_v16 = vadd.f32 %v1913_v25, %v6523_v0  ;;  %v2002_v7 = vpop.f32.mrf.mxu3  ;;  %v1739_v55 = vadd.f32 %v1738_v29, %v6533_v14  ;;  %v1827_v19 = vpop.f32.mrf.mxu1 }
 0x263   :  { %v6942_v11 = vadd.f32 %v2002_v7, %v1914_v16  ;;  %v6944_v43 = vadd.f32 %v1827_v19, %v1739_v55  ;;  %2501 = vmatmul.bf16.vlgmr.msra.gmra.mxu0 %v2173_v54  ;;  %v2057_v19 = vmul.f32 %v8470_v32, %v8470_v32  ;;  %v2060_v54 = vmul.f32 %v6778_v21, %v6778_v21 }
 0x264   :  { %2590 = vmatmul.bf16.vlgmr.msra.gmra.mxu1 %v2174_v2  ;;  %v2058_v2 = vmul.f32 %v8471_v37, %v8471_v37 }
 0x265   :  { %8466 = vst [vmem:[#allocation102_spill] sm:$0xff] %v6942_v11  ;;  %2679 = vmatmul.bf16.vlgmr.msra.gmra.mxu2 %v2175_v31  ;;  %v8472_v31 = vld [vmem:[#allocation9_spill] sm:$0xff] }
 0x266   :  { %8467 = vst [vmem:[#allocation103_spill] sm:$0xff] %v6944_v43  ;;  %2768 = vmatmul.bf16.vlgmr.msra.gmra.mxu3 %v2176_v42  ;;  %v2059_v42 = vmul.f32 %v6774_v22, %v6774_v22 }
 0x268   :  { %v1916_v0 = vpop.f32.mrf.mxu2  ;;  %v1740_v25 = vpop.f32.mrf.mxu0  ;;  %v2179_v22 = vpack.c.bf16 %v2059_v42, %v2055_v56  ;;  %v2063_v56 = vmul.f32 %v6780_v3, %v6780_v3 }
 0x269   :  { %v1917_v12 = vadd.f32 %v1916_v0, %v6533_v14  ;;  %v2005_v52 = vpop.f32.mrf.mxu3  ;;  %v1741_v47 = vadd.f32 %v1740_v25, %v6318_v60  ;;  %v1829_v29 = vpop.f32.mrf.mxu1  ;;  %v2053_v14 = vmul.f32 %v8472_v31, %v8472_v31  ;;  %v2056_v0 = vmul.f32 %v6772_v28, %v6772_v28 }
 0x26b   :  { %v6948_v20 = vadd.f32 %v2005_v52, %v1917_v12  ;;  %v6950_v45 = vadd.f32 %v1829_v29, %v1741_v47  ;;  %v2054_v47 = vmul.f32 %v8473_v41, %v8473_v41  ;;  %v2177_v25 = vpack.c.bf16 %v2057_v19, %v2053_v14 }
 0x26c   :  { %v2180_v32 = vpack.c.bf16 %v2060_v54, %v2056_v0 }
 0x26d   :  { %8468 = vst [vmem:[#allocation104_spill] sm:$0xff] %v6948_v20  ;;  %v2178_v21 = vpack.c.bf16 %v2058_v2, %v2054_v47  ;;  %v8476_v2 = vld [vmem:[#allocation16_spill] sm:$0xff]  ;;  %v8477_v47 = vld [vmem:[#allocation17_spill] sm:$0xff] }
 0x26e   :  { %8469 = vst [vmem:[#allocation105_spill] sm:$0xff] %v6950_v45  ;;  %v2065_v42 = vmul.f32 %v8476_v2, %v8476_v2 }
 0x270   :  { %v1918_v55 = vpop.f32.mrf.mxu2  ;;  %v1743_v7 = vpop.f32.mrf.mxu0 }
 0x271   :  { %v1919_v39 = vadd.f32 %v1918_v55, %v6318_v60  ;;  %v2007_v16 = vpop.f32.mrf.mxu3  ;;  %v1744_v12 = vadd.f32 %v1743_v7, %v6564_v18  ;;  %v1832_v52 = vpop.f32.mrf.mxu1 }
 0x273   :  { %v6970_v29 = vadd.f32 %v2007_v16, %v1919_v39  ;;  %v6972_v37 = vadd.f32 %v1832_v52, %v1744_v12  ;;  %2506 = vmatmul.bf16.gmra.mxu0 %v2177_v25  ;;  %v2064_v12 = vmul.f32 %v6794_v10, %v6794_v10 }
 0x274   :  { %2595 = vmatmul.bf16.gmra.mxu1 %v2178_v21  ;;  %v2066_v21 = vmul.f32 %v8477_v47, %v8477_v47 }
 0x275   :  { %8474 = vst [vmem:[#allocation9_spill] sm:$0xff] %v6970_v29  ;;  %2684 = vmatmul.bf16.gmra.mxu2 %v2179_v22  ;;  %v2067_v22 = vmul.f32 %v6796_v9, %v6796_v9 }
 0x276   :  { %2773 = vmatmul.bf16.gmra.mxu3 %v2180_v32  ;;  %v8478_v32 = vld [vmem:[#allocation14_spill] sm:$0xff] }
 0x278   :  { %v1921_v60 = vpop.f32.mrf.mxu2  ;;  %v1745_v28 = vpop.f32.mrf.mxu0 }
 0x279   :  { %v1922_v55 = vadd.f32 %v1921_v60, %v6564_v18  ;;  %v2010_v51 = vpop.f32.mrf.mxu3  ;;  %v1746_v7 = vadd.f32 %v1745_v28, %v6576_v63  ;;  %v1834_v41 = vpop.f32.mrf.mxu1  ;;  %v2061_v18 = vmul.f32 %v8478_v32, %v8478_v32  ;;  %v2068_v28 = vmul.f32 %v6806_v30, %v6806_v30 }
 0x27a   :  { %v2183_v30 = vpack.c.bf16 %v2067_v22, %v2063_v56  ;;  %v8485_v56 = vld [vmem:[#allocation18_spill] sm:$0xff] }
 0x27b   :  { %v6976_v19 = vadd.f32 %v2010_v51, %v1922_v55  ;;  %v6978_v14 = vadd.f32 %v1834_v41, %v1746_v7  ;;  %v8479_v51 = vld [vmem:[#allocation15_spill] sm:$0xff]  ;;  %v2181_v60 = vpack.c.bf16 %v2065_v42, %v2061_v18  ;;  %v2184_v47 = vpack.c.bf16 %v2068_v28, %v2064_v12 }
 0x27c   :  { %v2062_v41 = vmul.f32 %v8479_v51, %v8479_v51 }
 0x27d   :  { %8475 = vst [vmem:[#allocation106_spill] sm:$0xff] %v6978_v14 }
 0x27e   :  { %v2182_v7 = vpack.c.bf16 %v2066_v21, %v2062_v41  ;;  %v8483_v21 = vld [vmem:[#allocation20_spill] sm:$0xff]  ;;  %v8484_v41 = vld [vmem:[#allocation21_spill] sm:$0xff] }
 0x27f   :  { %v2073_v22 = vmul.f32 %v8483_v21, %v8483_v21  ;;  %v2074_v28 = vmul.f32 %v8484_v41, %v8484_v41 }
 0x280   :  { %v1923_v54 = vpop.f32.mrf.mxu2  ;;  %v1748_v0 = vpop.f32.mrf.mxu0 }
 0x281   :  { %v1924_v39 = vadd.f32 %v1923_v54, %v6576_v63  ;;  %v2012_v16 = vpop.f32.mrf.mxu3  ;;  %v1749_v52 = vadd.f32 %v1748_v0, %v6349_v5  ;;  %v1837_v25 = vpop.f32.mrf.mxu1 }
 0x283   :  { %v6998_v55 = vadd.f32 %v2012_v16, %v1924_v39  ;;  %v7000_v9 = vadd.f32 %v1837_v25, %v1749_v52  ;;  %2511 = vmatmul.bf16.gmra.mxu0 %v2181_v60  ;;  %v2071_v39 = vmul.f32 %v6808_v44, %v6808_v44  ;;  %v2072_v25 = vmul.f32 %v6816_v4, %v6816_v4 }
 0x284   :  { %2600 = vmatmul.bf16.gmra.mxu1 %v2182_v7 }
 0x285   :  { %8480 = vst [vmem:[#allocation14_spill] sm:$0xff] %v6998_v55  ;;  %2689 = vmatmul.bf16.gmra.mxu2 %v2183_v30  ;;  %v2075_v30 = vmul.f32 %v6818_v40, %v6818_v40 }
 0x286   :  { %2778 = vmatmul.bf16.gmra.mxu3 %v2184_v47 }
 0x288   :  { %v1926_v63 = vpop.f32.mrf.mxu2  ;;  %v1750_v10 = vpop.f32.mrf.mxu0 }
 0x289   :  { %v1927_v54 = vadd.f32 %v1926_v63, %v6349_v5  ;;  %v2015_v2 = vpop.f32.mrf.mxu3  ;;  %v1751_v0 = vadd.f32 %v1750_v10, %v6600_v49  ;;  %v1839_v3 = vpop.f32.mrf.mxu1  ;;  %v2076_v5 = vmul.f32 %v6822_v57, %v6822_v57  ;;  %v2069_v10 = vmul.f32 %v8485_v56, %v8485_v56 }
 0x28a   :  { %v2187_v57 = vpack.c.bf16 %v2075_v30, %v2071_v39 }
 0x28b   :  { %v7004_v42 = vadd.f32 %v2015_v2, %v1927_v54  ;;  %v7006_v18 = vadd.f32 %v1839_v3, %v1751_v0  ;;  %v8486_v2 = vld [vmem:[#allocation19_spill] sm:$0xff]  ;;  %v2185_v63 = vpack.c.bf16 %v2073_v22, %v2069_v10  ;;  %v2188_v41 = vpack.c.bf16 %v2076_v5, %v2072_v25 }
 0x28c   :  { %v2070_v3 = vmul.f32 %v8486_v2, %v8486_v2 }
 0x28d   :  { %8481 = vst [vmem:[#allocation15_spill] sm:$0xff] %v7004_v42 }
 0x28e   :  { %8482 = vst [vmem:[#allocation107_spill] sm:$0xff] %v7006_v18  ;;  %v2186_v0 = vpack.c.bf16 %v2074_v28, %v2070_v3  ;;  %v8490_v28 = vld [vmem:[#allocation25_spill] sm:$0xff] }
 0x28f   :  { %v2081_v30 = vmul.f32 %v8490_v28, %v8490_v28  ;;  %v8491_v3 = vld [vmem:[#allocation29_spill] sm:$0xff] }
 0x290   :  { %v1928_v47 = vpop.f32.mrf.mxu2  ;;  %v1753_v52 = vpop.f32.mrf.mxu0  ;;  %v2082_v5 = vmul.f32 %v8491_v3, %v8491_v3 }
 0x291   :  { %v1929_v16 = vadd.f32 %v1928_v47, %v6600_v49  ;;  %v2017_v12 = vpop.f32.mrf.mxu3  ;;  %v1754_v60 = vadd.f32 %v1753_v52, %v6614_v46  ;;  %v1842_v7 = vpop.f32.mrf.mxu1 }
 0x293   :  { %v7026_v54 = vadd.f32 %v2017_v12, %v1929_v16  ;;  %v7028_v40 = vadd.f32 %v1842_v7, %v1754_v60  ;;  %2516 = vmatmul.bf16.gmra.mxu0 %v2185_v63  ;;  %v2079_v16 = vmul.f32 %v6824_v24, %v6824_v24  ;;  %v2080_v7 = vmul.f32 %v6838_v23, %v6838_v23 }
 0x294   :  { %2605 = vmatmul.bf16.gmra.mxu1 %v2186_v0 }
 0x295   :  { %8487 = vst [vmem:[#allocation18_spill] sm:$0xff] %v7026_v54  ;;  %2694 = vmatmul.bf16.gmra.mxu2 %v2187_v57  ;;  %v2083_v57 = vmul.f32 %v6840_v33, %v6840_v33 }
 0x296   :  { %2783 = vmatmul.bf16.gmra.mxu3 %v2188_v41  ;;  %v8492_v41 = vld [vmem:[#allocation22_spill] sm:$0xff] }
 0x298   :  { %v1931_v49 = vpop.f32.mrf.mxu2  ;;  %v1755_v4 = vpop.f32.mrf.mxu0 }
 0x299   :  { %v1932_v47 = vadd.f32 %v1931_v49, %v6614_v46  ;;  %v2020_v21 = vpop.f32.mrf.mxu3  ;;  %v1756_v52 = vadd.f32 %v1755_v4, %v6382_v26  ;;  %v1844_v44 = vpop.f32.mrf.mxu1  ;;  %v2077_v46 = vmul.f32 %v8492_v41, %v8492_v41  ;;  %v2084_v4 = vmul.f32 %v6850_v6, %v6850_v6 }
 0x29a   :  { %v2191_v6 = vpack.c.bf16 %v2083_v57, %v2079_v16  ;;  %v8499_v16 = vld [vmem:[#allocation30_spill] sm:$0xff] }
 0x29b   :  { %v7032_v22 = vadd.f32 %v2020_v21, %v1932_v47  ;;  %v7034_v10 = vadd.f32 %v1844_v44, %v1756_v52  ;;  %v8493_v21 = vld [vmem:[#allocation24_spill] sm:$0xff]  ;;  %v2189_v49 = vpack.c.bf16 %v2081_v30, %v2077_v46  ;;  %v2192_v3 = vpack.c.bf16 %v2084_v4, %v2080_v7 }
 0x29c   :  { %v2078_v44 = vmul.f32 %v8493_v21, %v8493_v21 }
 0x29d   :  { %8488 = vst [vmem:[#allocation19_spill] sm:$0xff] %v7032_v22 }
 0x29e   :  { %8489 = vst [vmem:[#allocation108_spill] sm:$0xff] %v7034_v10  ;;  %v2190_v52 = vpack.c.bf16 %v2082_v5, %v2078_v44  ;;  %v8497_v5 = vld [vmem:[#allocation32_spill] sm:$0xff] }
 0x29f   :  { %v2089_v57 = vmul.f32 %v8497_v5, %v8497_v5  ;;  %v8498_v44 = vld [vmem:[#allocation36_spill] sm:$0xff] }
 0x2a0   :  { %v1933_v39 = vpop.f32.mrf.mxu2  ;;  %v1758_v60 = vpop.f32.mrf.mxu0  ;;  %v2090_v4 = vmul.f32 %v8498_v44, %v8498_v44 }
 0x2a1   :  { %v1934_v12 = vadd.f32 %v1933_v39, %v6382_v26  ;;  %v2022_v25 = vpop.f32.mrf.mxu3  ;;  %v1759_v63 = vadd.f32 %v1758_v60, %v6632_v61  ;;  %v1847_v0 = vpop.f32.mrf.mxu1 }
 0x2a3   :  { %v7054_v47 = vadd.f32 %v2022_v25, %v1934_v12  ;;  %v7056_v33 = vadd.f32 %v1847_v0, %v1759_v63  ;;  %2521 = vmatmul.bf16.gmra.mxu0 %v2189_v49  ;;  %v2087_v12 = vmul.f32 %v6852_v1, %v6852_v1  ;;  %v2088_v0 = vmul.f32 %v6860_v38, %v6860_v38 }
 0x2a4   :  { %2610 = vmatmul.bf16.gmra.mxu1 %v2190_v52 }
 0x2a5   :  { %8494 = vst [vmem:[#allocation22_spill] sm:$0xff] %v7054_v47  ;;  %2699 = vmatmul.bf16.gmra.mxu2 %v2191_v6  ;;  %v2091_v6 = vmul.f32 %v6862_v17, %v6862_v17 }
 0x2a6   :  { %2788 = vmatmul.bf16.gmra.mxu3 %v2192_v3 }
 0x2a8   :  { %v1936_v26 = vpop.f32.mrf.mxu2  ;;  %v1760_v23 = vpop.f32.mrf.mxu0 }
 0x2a9   :  { %v1937_v39 = vadd.f32 %v1936_v26, %v6632_v61  ;;  %v2025_v28 = vpop.f32.mrf.mxu3  ;;  %v1761_v60 = vadd.f32 %v1760_v23, %v6650_v53  ;;  %v1849_v24 = vpop.f32.mrf.mxu1  ;;  %v2092_v61 = vmul.f32 %v6866_v62, %v6866_v62  ;;  %v2085_v23 = vmul.f32 %v8499_v16, %v8499_v16 }
 0x2aa   :  { %v2195_v62 = vpack.c.bf16 %v2091_v6, %v2087_v12  ;;  %v8506_v12 = vld [vmem:[#allocation37_spill] sm:$0xff] }
 0x2ab   :  { %v7060_v30 = vadd.f32 %v2025_v28, %v1937_v39  ;;  %v7062_v46 = vadd.f32 %v1849_v24, %v1761_v60  ;;  %v8500_v28 = vld [vmem:[#allocation31_spill] sm:$0xff]  ;;  %v2193_v26 = vpack.c.bf16 %v2089_v57, %v2085_v23  ;;  %v2196_v44 = vpack.c.bf16 %v2092_v61, %v2088_v0 }
 0x2ac   :  { %v2086_v24 = vmul.f32 %v8500_v28, %v8500_v28 }
 0x2ad   :  { %8495 = vst [vmem:[#allocation24_spill] sm:$0xff] %v7060_v30 }
 0x2ae   :  { %8496 = vst [vmem:[#allocation109_spill] sm:$0xff] %v7062_v46  ;;  %v2194_v60 = vpack.c.bf16 %v2090_v4, %v2086_v24  ;;  %v8504_v4 = vld [vmem:[#allocation39_spill] sm:$0xff]  ;;  %v8505_v24 = vld [vmem:[#allocation41_spill] sm:$0xff] }
 0x2af   :  { %v2097_v6 = vmul.f32 %v8504_v4, %v8504_v4  ;;  %v2098_v61 = vmul.f32 %v8505_v24, %v8505_v24 }
 0x2b0   :  { %v1938_v3 = vpop.f32.mrf.mxu2  ;;  %v1763_v63 = vpop.f32.mrf.mxu0 }
 0x2b1   :  { %v1939_v25 = vadd.f32 %v1938_v3, %v6650_v53  ;;  %v2027_v7 = vpop.f32.mrf.mxu3  ;;  %v1764_v49 = vadd.f32 %v1763_v63, %v6412_v36  ;;  %v1852_v52 = vpop.f32.mrf.mxu1 }
 0x2b3   :  { %v7082_v39 = vadd.f32 %v2027_v7, %v1939_v25  ;;  %v7084_v17 = vadd.f32 %v1852_v52, %v1764_v49  ;;  %2526 = vmatmul.bf16.gmra.mxu0 %v2193_v26  ;;  %v2095_v25 = vmul.f32 %v6868_v35, %v6868_v35  ;;  %v2096_v52 = vmul.f32 %v6890_v27, %v6890_v27  ;;  %v8517_v27 = vld [vmem:[#allocation76_spill] sm:$0xff] }
 0x2b4   :  { %2615 = vmatmul.bf16.gmra.mxu1 %v2194_v60 }
 0x2b5   :  { %8501 = vst [vmem:[#allocation30_spill] sm:$0xff] %v7082_v39  ;;  %2704 = vmatmul.bf16.gmra.mxu2 %v2195_v62  ;;  %v2099_v62 = vmul.f32 %v6892_v34, %v6892_v34 }
 0x2b6   :  { %2793 = vmatmul.bf16.gmra.mxu3 %v2196_v44 }
 0x2b8   :  { %v1941_v53 = vpop.f32.mrf.mxu2  ;;  %v1765_v38 = vpop.f32.mrf.mxu0 }
 0x2b9   :  { %v1942_v3 = vadd.f32 %v1941_v53, %v6412_v36  ;;  %v2030_v5 = vpop.f32.mrf.mxu3  ;;  %v1766_v63 = vadd.f32 %v1765_v38, %v6674_v48  ;;  %v1854_v1 = vpop.f32.mrf.mxu1  ;;  %v2100_v36 = vmul.f32 %v6910_v13, %v6910_v13  ;;  %v2093_v38 = vmul.f32 %v8506_v12, %v8506_v12 }
 0x2ba   :  { %v2199_v13 = vpack.c.bf16 %v2099_v62, %v2095_v25  ;;  %v4735_v62 = vld [vmem:[%s8202_s7 + $0x18] sm:$0xf0] }
 0x2bb   :  { %v7088_v57 = vadd.f32 %v2030_v5, %v1942_v3  ;;  %v7090_v23 = vadd.f32 %v1854_v1, %v1766_v63  ;;  %v8507_v5 = vld [vmem:[#allocation38_spill] sm:$0xff]  ;;  %v2197_v53 = vpack.c.bf16 %v2097_v6, %v2093_v38  ;;  %v2200_v24 = vpack.c.bf16 %v2100_v36, %v2096_v52  ;;  %v5012_v6 = vld [vmem:[%s8202_s7 + $0xc] sm:$0xf] }
 0x2bc   :  { %v2094_v1 = vmul.f32 %v8507_v5, %v8507_v5  ;;  %v2105_v52 = vmul.f32 %v6530_v50, %v6530_v50 }
 0x2bd   :  { %8502 = vst [vmem:[#allocation31_spill] sm:$0xff] %v7088_v57 }
 0x2be   :  { %8503 = vst [vmem:[#allocation110_spill] sm:$0xff] %v7090_v23  ;;  %v2198_v63 = vpack.c.bf16 %v2098_v61, %v2094_v1 }
 0x2c0   :  { %v1943_v44 = vpop.f32.mrf.mxu2  ;;  %v1768_v49 = vpop.f32.mrf.mxu0 }
 0x2c1   :  { %v1944_v7 = vadd.f32 %v1943_v44, %v6674_v48  ;;  %v2032_v0 = vpop.f32.mrf.mxu3  ;;  %v1769_v26 = vadd.f32 %v1768_v49, %v6682_v58  ;;  %v1857_v60 = vpop.f32.mrf.mxu1  ;;  %v4733_v48 = vld [vmem:[%s8202_s7 + $0x8] sm:$0xf]  ;;  %v5014_v44 = vld [vmem:[%s8202_s7 + $0x14] sm:$0xf0] }
 0x2c2   :  { %v4734_v61 = vor.u32 %v5014_v44, %v4733_v48  ;;  %v8512_v44 = vld [vmem:[#allocation43_spill] sm:$0xff] }
 0x2c3   :  { %v7110_v3 = vadd.f32 %v2032_v0, %v1944_v7  ;;  %v7112_v34 = vadd.f32 %v1857_v60, %v1769_v26  ;;  %2531 = vmatmul.bf16.gmra.mxu0 %v2197_v53  ;;  %v2106_v26 = vmul.f32 %v6538_v8, %v6538_v8  ;;  %v8511_v60 = vld [vmem:[#allocation42_spill] sm:$0xff] }
 0x2c4   :  { %2620 = vmatmul.bf16.gmra.mxu1 %v2198_v63  ;;  %3508 = vmatpush.bf16.msrb.mxu2 %v4734_v61  ;;  %v2101_v53 = vmul.f32 %v8511_v60, %v8511_v60  ;;  %v2108_v63 = vmul.f32 %v6942_v11, %v6942_v11  ;;  %v8513_v61 = vld [vmem:[#allocation100_spill] sm:$0xff] }
 0x2c5   :  { %8508 = vst [vmem:[#allocation111_spill] sm:$0xff] %v7110_v3  ;;  %2709 = vmatmul.bf16.gmra.mxu2 %v2199_v13  ;;  %v4738_v13 = vor.u32 %v5012_v6, %v4735_v62  ;;  %v2102_v6 = vmul.f32 %v8512_v44, %v8512_v44  ;;  %v2103_v62 = vmul.f32 %v8513_v61, %v8513_v61 }
 0x2c6   :  { %2798 = vmatmul.bf16.gmra.mxu3 %v2200_v24  ;;  %v2201_v8 = vpack.c.bf16 %v2105_v52, %v2101_v53 }
 0x2c7   :  { %3597 = vmatpush.bf16.msrb.mxu3 %v4738_v13  ;;  %v2202_v11 = vpack.c.bf16 %v2106_v26, %v2102_v6  ;;  %v8520_v26 = vld [vmem:[#allocation48_spill] sm:$0xff] }
 0x2c8   :  { %v1946_v36 = vpop.f32.mrf.mxu2  ;;  %v1770_v1 = vpop.f32.mrf.mxu0 }
 0x2c9   :  { %v1947_v24 = vadd.f32 %v1946_v36, %v6682_v58  ;;  %v2035_v38 = vpop.f32.mrf.mxu3  ;;  %v1771_v25 = vadd.f32 %v1770_v1, %v6438_v15  ;;  %v1859_v7 = vpop.f32.mrf.mxu1  ;;  %v2107_v58 = vmul.f32 %v6922_v59, %v6922_v59 }
 0x2cb   :  { %v7128_v0 = vadd.f32 %v2035_v38, %v1947_v24  ;;  %v7130_v49 = vadd.f32 %v1859_v7, %v1771_v25  ;;  %v8514_v38 = vld [vmem:[#allocation40_spill] sm:$0xff]  ;;  %v8515_v25 = vld [vmem:[#allocation73_spill] sm:$0xff]  ;;  %v2203_v60 = vpack.c.bf16 %v2107_v58, %v2103_v62  ;;  %v2115_v58 = vmul.f32 %v6950_v45, %v6950_v45 }
 0x2cc   :  { %v2104_v1 = vmul.f32 %v8514_v38, %v8514_v38  ;;  %v5011_v62 = vld [vmem:[%s8202_s7 + $0x4] sm:$0xf] }
 0x2cd   :  { %8509 = vst [vmem:[#allocation112_spill] sm:$0xff] %v7128_v0 }
 0x2ce   :  { %8510 = vst [vmem:[#allocation113_spill] sm:$0xff] %v7130_v49  ;;  %v2204_v44 = vpack.c.bf16 %v2108_v63, %v2104_v1 }
 0x2d0   :  { %v1948_v48 = vpop.f32.mrf.mxu2  ;;  %v1773_v24 = vpop.f32.mrf.mxu0 }
 0x2d1   :  { %v1949_v36 = vadd.f32 %v1948_v48, %v6438_v15  ;;  %v2037_v13 = vpop.f32.mrf.mxu3  ;;  %v1774_v7 = vadd.f32 %v1773_v24, %v8515_v25  ;;  %v1862_v59 = vpop.f32.mrf.mxu1 }
 0x2d3   :  { %v7150_v50 = vadd.f32 %v2037_v13, %v1949_v36  ;;  %v7152_v4 = vadd.f32 %v1862_v59, %v1774_v7  ;;  %2536 = vmatmul.bf16.gmra.mxu0 %v2201_v8  ;;  %v2113_v59 = vmul.f32 %v8520_v26, %v8520_v26  ;;  %v8521_v8 = vld [vmem:[#allocation49_spill] sm:$0xff]  ;;  %v8523_v36 = vld [vmem:[#allocation47_spill] sm:$0xff] }
 0x2d4   :  { %2625 = vmatmul.bf16.gmra.mxu1 %v2202_v11  ;;  %v2114_v11 = vmul.f32 %v8521_v8, %v8521_v8  ;;  %v2110_v13 = vmul.f32 %v8523_v36, %v8523_v36 }
 0x2d5   :  { %8516 = vst [vmem:[#allocation73_spill] sm:$0xff] %v7150_v50  ;;  %2714 = vmatmul.bf16.gmra.mxu2 %v2203_v60  ;;  %v2116_v60 = vmul.f32 %v6970_v29, %v6970_v29 }
 0x2d6   :  { %2803 = vmatmul.bf16.gmra.mxu3 %v2204_v44  ;;  %v8522_v44 = vld [vmem:[#allocation46_spill] sm:$0xff] }
 0x2d7   :  { %v2109_v6 = vmul.f32 %v8522_v44, %v8522_v44  ;;  %v2206_v44 = vpack.c.bf16 %v2114_v11, %v2110_v13  ;;  %v8526_v11 = vld [vmem:[#allocation53_spill] sm:$0xff] }
 0x2d8   :  { %v1951_v15 = vpop.f32.mrf.mxu2  ;;  %v1775_v38 = vpop.f32.mrf.mxu0 }
 0x2d9   :  { %v1952_v48 = vadd.f32 %v1951_v15, %v8515_v25  ;;  %v2040_v61 = vpop.f32.mrf.mxu3  ;;  %v1776_v24 = vadd.f32 %v1775_v38, %v8517_v27  ;;  %v1864_v35 = vpop.f32.mrf.mxu1  ;;  %v2111_v38 = vmul.f32 %v6944_v43, %v6944_v43  ;;  %v2205_v45 = vpack.c.bf16 %v2113_v59, %v2109_v6 }
 0x2db   :  { %v7156_v52 = vadd.f32 %v2040_v61, %v1952_v48  ;;  %v7158_v53 = vadd.f32 %v1864_v35, %v1776_v24  ;;  %v4725_v35 = vld [vmem:[%s8202_s7] sm:$0xf]  ;;  %v5013_v61 = vld [vmem:[%s8202_s7 + $0xc] sm:$0xf0]  ;;  %v4727_v48 = vld [vmem:[%s8202_s7 + $0x10] sm:$0xf0]  ;;  %v2112_v24 = vmul.f32 %v6948_v20, %v6948_v20  ;;  %v2207_v43 = vpack.c.bf16 %v2115_v58, %v2111_v38 }
 0x2dc   :  { %v4726_v15 = vor.u32 %v5013_v61, %v4725_v35  ;;  %v4730_v8 = vor.u32 %v5011_v62, %v4727_v48  ;;  %v8525_v62 = vld [vmem:[#allocation52_spill] sm:$0xff] }
 0x2dd   :  { %8518 = vst [vmem:[#allocation76_spill] sm:$0xff] %v7156_v52 }
 0x2de   :  { %8519 = vst [vmem:[#allocation114_spill] sm:$0xff] %v7158_v53  ;;  %3330 = vmatpush.bf16.msrb.mxu0 %v4726_v15  ;;  %3419 = vmatpush.bf16.msrb.mxu1 %v4730_v8  ;;  %v2123_v8 = vmul.f32 %v6978_v14, %v6978_v14 }
 0x2e0   :  { %v1953_v63 = vpop.f32.mrf.mxu2  ;;  %v2502_v7 = vpop.f32.mrf.mxu0 }
 0x2e1   :  { %v1954_v1 = vadd.f32 %v1953_v63, %v8517_v27  ;;  %v2042_v25 = vpop.f32.mrf.mxu3  ;;  %v2591_v29 = vpop.f32.mrf.mxu1  ;;  %v2208_v27 = vpack.c.bf16 %v2116_v60, %v2112_v24  ;;  %v8527_v60 = vld [vmem:[#allocation50_spill] sm:$0xff] }
 0x2e2   :  { %v2592_v36 = vadd.f32 %v2591_v29, %v2502_v7  ;;  %v2121_v29 = vmul.f32 %v8525_v62, %v8525_v62 }
 0x2e3   :  { %v7189_v26 = vadd.f32 %v2042_v25, %v1954_v1  ;;  %2541 = vmatmul.bf16.gmra.mxu0 %v2205_v45  ;;  %v2122_v45 = vmul.f32 %v8526_v11, %v8526_v11  ;;  %v2120_v1 = vmul.f32 %v6976_v19, %v6976_v19 }
 0x2e4   :  { %2630 = vmatmul.bf16.gmra.mxu1 %v2206_v44  ;;  %v2119_v44 = vmul.f32 %v6972_v37, %v6972_v37 }
 0x2e5   :  { %8524 = vst [vmem:[#allocation115_spill] sm:$0xff] %v7189_v26  ;;  %2719 = vmatmul.bf16.gmra.mxu2 %v2207_v43  ;;  %v2124_v43 = vmul.f32 %v6998_v55, %v6998_v55 }
 0x2e6   :  { %2808 = vmatmul.bf16.gmra.mxu3 %v2208_v27  ;;  %v2211_v27 = vpack.c.bf16 %v2123_v8, %v2119_v44 }
 0x2e8   :  { %v2680_v63 = vpop.f32.mrf.mxu2  ;;  %v2504_v5 = vpop.f32.mrf.mxu0 }
 0x2e9   :  { %v2681_v35 = vadd.f32 %v2680_v63, %v2592_v36  ;;  %v2769_v61 = vpop.f32.mrf.mxu3  ;;  %v2593_v20 = vpop.f32.mrf.mxu1  ;;  %v2212_v63 = vpack.c.bf16 %v2124_v43, %v2120_v1 }
 0x2ea   :  { %v2594_v59 = vadd.f32 %v2593_v20, %v2504_v5  ;;  %v2117_v20 = vmul.f32 %v8527_v60, %v8527_v60 }
 0x2eb   :  { %v2770_v12 = vadd.f32 %v2769_v61, %v2681_v35 }
 0x2ec   :  { %v2209_v7 = vpack.c.bf16 %v2121_v29, %v2117_v20 }
 0x2ed   :  { %v7191_v6 = vmax.f32 %v2770_v12, 1e-24  ;;  %v8528_v12 = vld [vmem:[#allocation51_spill] sm:$0xff] }
 0x2ee   :  { %v2118_v5 = vmul.f32 %v8528_v12, %v8528_v12 }
 0x2ef   :  { %5026 = vrsqrt.f32 %v7191_v6  ;;  %vm2887_vm7 = vweird.f32 %v7191_v6 }
 0x2f0   :  { %v2682_v58 = vpop.f32.mrf.mxu2  ;;  %v2507_v38 = vpop.f32.mrf.mxu0  ;;  %v2210_v24 = vpack.c.bf16 %v2122_v45, %v2118_v5 }
 0x2f1   :  { %v2683_v36 = vadd.f32 %v2682_v58, %v2594_v59  ;;  %v2771_v13 = vpop.f32.mrf.mxu3  ;;  %v2596_v25 = vpop.f32.mrf.mxu1 }
 0x2f2   :  { %v2597_v48 = vadd.f32 %v2596_v25, %v2507_v38  ;;  %v8529_v38 = vld [vmem:[#allocation56_spill] sm:$0xff]  ;;  %v8530_v25 = vld [vmem:[#allocation57_spill] sm:$0xff] }
 0x2f3   :  { %v2772_v15 = vadd.f32 %v2771_v13, %v2683_v36  ;;  %2546 = vmatmul.bf16.gmra.mxu0 %v2209_v7  ;;  %v2129_v1 = vmul.f32 %v8529_v38, %v8529_v38  ;;  %v2130_v7 = vmul.f32 %v8530_v25, %v8530_v25 }
 0x2f4   :  { %2635 = vmatmul.bf16.gmra.mxu1 %v2210_v24  ;;  %v8531_v24 = vld [vmem:[#allocation54_spill] sm:$0xff] }
 0x2f5   :  { %v7210_v35 = vpop.eup %5026  ;;  %v2850_v61 = vmax.f32 %v2772_v15, 1e-24  ;;  %2724 = vmatmul.bf16.gmra.mxu2 %v2211_v27  ;;  %v2125_v27 = vmul.f32 %v8531_v24, %v8531_v24 }
 0x2f6   :  { %v2882_v59 = vmul.f32 %v7210_v35, %v7191_v6  ;;  %2813 = vmatmul.bf16.gmra.mxu3 %v2212_v63  ;;  %vm2888_vm5 = vweird.f32 %v7210_v35 }
 0x2f7   :  { %5028 = vrsqrt.f32 %v2850_v61  ;;  %v2213_v14 = vpack.c.bf16 %v2129_v1, %v2125_v27  ;;  %vm2889_vm8 = vmor %vm2887_vm7, %vm2888_vm5  ;;  %vm2897_vm9 = vweird.f32 %v2850_v61 }
 0x2f8   :  { %v2883_v58 = vmul.f32 %v7210_v35, %v2882_v59  ;;  %v2685_v55 = vpop.f32.mrf.mxu2  ;;  %v2509_v36 = vpop.f32.mrf.mxu0  ;;  %v2132_v59 = vmul.f32 %v7026_v54, %v7026_v54 }
 0x2f9   :  { %v2686_v29 = vadd.f32 %v2685_v55, %v2597_v48  ;;  %v2774_v20 = vpop.f32.mrf.mxu3  ;;  %v2598_v45 = vpop.f32.mrf.mxu1  ;;  %v2131_v55 = vmul.f32 %v7006_v18, %v7006_v18  ;;  %v8532_v48 = vld [vmem:[#allocation55_spill] sm:$0xff]  ;;  %v2128_v18 = vmul.f32 %v7004_v42, %v7004_v42 }
 0x2fa   :  { %v2599_v5 = vadd.f32 %v2598_v45, %v2509_v36  ;;  %v2884_v43 = vmul.f32 0.5, %v2883_v58  ;;  %v2126_v63 = vmul.f32 %v8532_v48, %v8532_v48  ;;  %v2127_v36 = vmul.f32 %v7000_v9, %v7000_v9 }
 0x2fb   :  { %v2775_v8 = vadd.f32 %v2774_v20, %v2686_v29 }
 0x2fc   :  { %v2885_v58 = vsub.f32 1.5, %v2884_v43  ;;  %v2214_v11 = vpack.c.bf16 %v2130_v7, %v2126_v63  ;;  %v2215_v43 = vpack.c.bf16 %v2131_v55, %v2127_v36 }
 0x2fd   :  { %v5029_v44 = vpop.eup %5028  ;;  %v7215_v13 = vmax.f32 %v2775_v8, 1e-24 }
 0x2fe   :  { %v2892_v15 = vmul.f32 %v5029_v44, %v2850_v61  ;;  %vm2898_vm6 = vweird.f32 %v5029_v44 }
 0x2ff   :  { %5030 = vrsqrt.f32 %v7215_v13  ;;  %vm2899_vm10 = vmor %vm2897_vm9, %vm2898_vm6  ;;  %vm2907_vm13 = vweird.f32 %v7215_v13 }
 0x300   :  { %v2893_v29 = vmul.f32 %v5029_v44, %v2892_v15  ;;  %v2687_v20 = vpop.f32.mrf.mxu2  ;;  %v2512_v25 = vpop.f32.mrf.mxu0  ;;  %v2886_v15 = vmul.f32 %v7210_v35, %v2885_v58  ;;  %v8533_v58 = vld [vmem:[#allocation60_spill] sm:$0xff] }
 0x301   :  { %v2688_v45 = vadd.f32 %v2687_v20, %v2599_v5  ;;  %v2776_v8 = vpop.f32.mrf.mxu3  ;;  %v2601_v24 = vpop.f32.mrf.mxu1  ;;  %v2216_v5 = vpack.c.bf16 %v2132_v59, %v2128_v18 }
 0x302   :  { %v2894_v38 = vmul.f32 0.5, %v2893_v29  ;;  %v2602_v54 = vadd.f32 %v2601_v24, %v2512_v25  ;;  %v2137_v29 = vmul.f32 %v8533_v58, %v8533_v58 }
 0x303   :  { %v2777_v48 = vadd.f32 %v2776_v8, %v2688_v45  ;;  %2551 = vmatmul.bf16.gmra.mxu0 %v2213_v14  ;;  %v2890_v14 = vsel %vm2889_vm8, %v7210_v35, %v2886_v15  ;;  %v8534_v35 = vld [vmem:[#allocation61_spill] sm:$0xff]  ;;  %v8535_v45 = vld [vmem:[#allocation58_spill] sm:$0xff] }
 0x304   :  { %v2895_v62 = vsub.f32 1.5, %v2894_v38  ;;  %2640 = vmatmul.bf16.gmra.mxu1 %v2214_v11  ;;  %v2133_v8 = vmul.f32 %v8535_v45, %v8535_v45 }
 0x305   :  { %v7236_v20 = vpop.eup %5030  ;;  %v7239_v42 = vmax.f32 %v2777_v48, 1e-24  ;;  %2729 = vmatmul.bf16.gmra.mxu2 %v2215_v43  ;;  %v8536_v43 = vld [vmem:[#allocation59_spill] sm:$0xff] }
 0x306   :  { %v2896_v1 = vmul.f32 %v5029_v44, %v2895_v62  ;;  %v2902_v25 = vmul.f32 %v7236_v20, %v7215_v13  ;;  %2818 = vmatmul.bf16.gmra.mxu3 %v2216_v5  ;;  %v2134_v15 = vmul.f32 %v8536_v43, %v8536_v43  ;;  %v2140_v5 = vmul.f32 %v7054_v47, %v7054_v47 }
 0x307   :  { %5032 = vrsqrt.f32 %v7239_v42  ;;  %vm2908_vm11 = vweird.f32 %v7236_v20  ;;  %vm2917_vm15 = vweird.f32 %v7239_v42 }
 0x308   :  { %v2900_v18 = vsel %vm2899_vm10, %v5029_v44, %v2896_v1  ;;  %v2903_v38 = vmul.f32 %v7236_v20, %v2902_v25  ;;  %v2690_v6 = vpop.f32.mrf.mxu2  ;;  %v2514_v27 = vpop.f32.mrf.mxu0  ;;  %v2138_v44 = vmul.f32 %v8534_v35, %v8534_v35  ;;  %vm2909_vm14 = vmor %vm2907_vm13, %vm2908_vm11 }
 0x309   :  { %v7246_v7 = vpack.c.bf16 %v2900_v18, %v2890_v14  ;;  %v2691_v11 = vadd.f32 %v2690_v6, %v2602_v54  ;;  %v2779_v24 = vpop.f32.mrf.mxu3  ;;  %v2603_v62 = vpop.f32.mrf.mxu1  ;;  %v2139_v54 = vmul.f32 %v7034_v10, %v7034_v10  ;;  %v2135_v18 = vmul.f32 %v7028_v40, %v7028_v40 }
 0x30a   :  { %v2604_v55 = vadd.f32 %v2603_v62, %v2514_v27  ;;  %v2904_v48 = vmul.f32 0.5, %v2903_v38  ;;  %v2218_v10 = vpack.c.bf16 %v2138_v44, %v2134_v15 }
 0x30b   :  { %v2780_v61 = vadd.f32 %v2779_v24, %v2691_v11  ;;  %v2136_v24 = vmul.f32 %v7032_v22, %v7032_v22 }
 0x30c   :  { %v2905_v1 = vsub.f32 1.5, %v2904_v48  ;;  %v2219_v48 = vpack.c.bf16 %v2139_v54, %v2135_v18 }
 0x30d   :  { %v5033_v63 = vpop.eup %5032  ;;  %v7248_v59 = vmax.f32 %v2780_v61, 1e-24  ;;  %v2217_v61 = vpack.c.bf16 %v2137_v29, %v2133_v8 }
 0x30e   :  { %v2912_v36 = vmul.f32 %v5033_v63, %v7239_v42  ;;  %vm2918_vm12 = vweird.f32 %v5033_v63 }
 0x30f   :  { %5034 = vrsqrt.f32 %v7248_v59  ;;  %vm2919_vm0 = vmor %vm2917_vm15, %vm2918_vm12  ;;  %vm2927_vm3 = vweird.f32 %v7248_v59 }
 0x310   :  { %v2913_v25 = vmul.f32 %v5033_v63, %v2912_v36  ;;  %v2692_v14 = vpop.f32.mrf.mxu2  ;;  %v2517_v11 = vpop.f32.mrf.mxu0  ;;  %v2906_v36 = vmul.f32 %v7236_v20, %v2905_v1 }
 0x311   :  { %v2693_v38 = vadd.f32 %v2692_v14, %v2604_v55  ;;  %v2781_v6 = vpop.f32.mrf.mxu3  ;;  %v2606_v62 = vpop.f32.mrf.mxu1  ;;  %v2220_v55 = vpack.c.bf16 %v2140_v5, %v2136_v24 }
 0x312   :  { %v2914_v27 = vmul.f32 0.5, %v2913_v25  ;;  %v2607_v47 = vadd.f32 %v2606_v62, %v2517_v11  ;;  %v2910_v13 = vsel %vm2909_vm14, %v7236_v20, %v2906_v36  ;;  %v8537_v11 = vld [vmem:[#allocation64_spill] sm:$0xff] }
 0x313   :  { %v2782_v35 = vadd.f32 %v2781_v6, %v2693_v38  ;;  %2556 = vmatmul.bf16.gmra.mxu0 %v2217_v61  ;;  %v2145_v24 = vmul.f32 %v8537_v11, %v8537_v11 }
 0x314   :  { %v2915_v58 = vsub.f32 1.5, %v2914_v27  ;;  %2645 = vmatmul.bf16.gmra.mxu1 %v2218_v10  ;;  %v8538_v27 = vld [vmem:[#allocation65_spill] sm:$0xff] }
 0x315   :  { %v7270_v14 = vpop.eup %5034  ;;  %v7273_v22 = vmax.f32 %v2782_v35, 1e-24  ;;  %2734 = vmatmul.bf16.gmra.mxu2 %v2219_v48  ;;  %v2146_v62 = vmul.f32 %v8538_v27, %v8538_v27  ;;  %v8540_v48 = vld [vmem:[#allocation63_spill] sm:$0xff] }
 0x316   :  { %v2916_v29 = vmul.f32 %v5033_v63, %v2915_v58  ;;  %v2922_v44 = vmul.f32 %v7270_v14, %v7248_v59  ;;  %2823 = vmatmul.bf16.gmra.mxu3 %v2220_v55  ;;  %v2142_v36 = vmul.f32 %v8540_v48, %v8540_v48  ;;  %v2148_v55 = vmul.f32 %v7082_v39, %v7082_v39 }
 0x317   :  { %5036 = vrsqrt.f32 %v7273_v22  ;;  %vm2928_vm1 = vweird.f32 %v7270_v14  ;;  %vm2937_vm5 = vweird.f32 %v7273_v22 }
 0x318   :  { %v2923_v54 = vmul.f32 %v7270_v14, %v2922_v44  ;;  %v2695_v8 = vpop.f32.mrf.mxu2  ;;  %v2920_v35 = vsel %vm2919_vm0, %v5033_v63, %v2916_v29  ;;  %v2519_v5 = vpop.f32.mrf.mxu0  ;;  %v8539_v63 = vld [vmem:[#allocation62_spill] sm:$0xff]  ;;  %vm2929_vm4 = vmor %vm2927_vm3, %vm2928_vm1 }
 0x319   :  { %v2696_v15 = vadd.f32 %v2695_v8, %v2607_v47  ;;  %v2784_v10 = vpop.f32.mrf.mxu3  ;;  %v7281_v1 = vpack.c.bf16 %v2920_v35, %v2910_v13  ;;  %v2608_v58 = vpop.f32.mrf.mxu1  ;;  %v2147_v47 = vmul.f32 %v7062_v46, %v7062_v46  ;;  %v2141_v61 = vmul.f32 %v8539_v63, %v8539_v63 }
 0x31a   :  { %v2609_v25 = vadd.f32 %v2608_v58, %v2519_v5  ;;  %v2924_v18 = vmul.f32 0.5, %v2923_v54  ;;  %v2143_v8 = vmul.f32 %v7056_v33, %v7056_v33  ;;  %v2222_v46 = vpack.c.bf16 %v2146_v62, %v2142_v36 }
 0x31b   :  { %v2785_v42 = vadd.f32 %v2784_v10, %v2696_v15  ;;  %v2144_v10 = vmul.f32 %v7060_v30, %v7060_v30 }
 0x31c   :  { %v2925_v29 = vsub.f32 1.5, %v2924_v18  ;;  %v2223_v18 = vpack.c.bf16 %v2147_v47, %v2143_v8 }
 0x31d   :  { %v5037_v38 = vpop.eup %5036  ;;  %v7283_v6 = vmax.f32 %v2785_v42, 1e-24  ;;  %v2221_v42 = vpack.c.bf16 %v2145_v24, %v2141_v61 }
 0x31e   :  { %v2932_v20 = vmul.f32 %v5037_v38, %v7273_v22  ;;  %vm2938_vm2 = vweird.f32 %v5037_v38 }
 0x31f   :  { %5038 = vrsqrt.f32 %v7283_v6  ;;  %vm2939_vm6 = vmor %vm2937_vm5, %vm2938_vm2  ;;  %vm2947_vm9 = vweird.f32 %v7283_v6 }
 0x320   :  { %v2933_v44 = vmul.f32 %v5037_v38, %v2932_v20  ;;  %v2697_v54 = vpop.f32.mrf.mxu2  ;;  %v2522_v15 = vpop.f32.mrf.mxu0  ;;  %v2926_v20 = vmul.f32 %v7270_v14, %v2925_v29 }
 0x321   :  { %v2698_v13 = vadd.f32 %v2697_v54, %v2609_v25  ;;  %v2786_v35 = vpop.f32.mrf.mxu3  ;;  %v2611_v58 = vpop.f32.mrf.mxu1  ;;  %v2224_v25 = vpack.c.bf16 %v2148_v55, %v2144_v10 }
 0x322   :  { %v2934_v5 = vmul.f32 0.5, %v2933_v44  ;;  %v2612_v39 = vadd.f32 %v2611_v58, %v2522_v15  ;;  %v2930_v59 = vsel %vm2929_vm4, %v7270_v14, %v2926_v20  ;;  %v8541_v15 = vld [vmem:[#allocation68_spill] sm:$0xff] }
 0x323   :  { %v2787_v27 = vadd.f32 %v2786_v35, %v2698_v13  ;;  %2561 = vmatmul.bf16.gmra.mxu0 %v2221_v42  ;;  %v2153_v10 = vmul.f32 %v8541_v15, %v8541_v15  ;;  %v2155_v42 = vmul.f32 %v7090_v23, %v7090_v23 }
 0x324   :  { %v2935_v11 = vsub.f32 1.5, %v2934_v5  ;;  %2650 = vmatmul.bf16.gmra.mxu1 %v2222_v46  ;;  %v8542_v5 = vld [vmem:[#allocation69_spill] sm:$0xff] }
 0x325   :  { %v7305_v54 = vpop.eup %5038  ;;  %v7308_v30 = vmax.f32 %v2787_v27, 1e-24  ;;  %2739 = vmatmul.bf16.gmra.mxu2 %v2223_v18  ;;  %v2154_v58 = vmul.f32 %v8542_v5, %v8542_v5  ;;  %v8544_v18 = vld [vmem:[#allocation67_spill] sm:$0xff] }
 0x326   :  { %v2936_v24 = vmul.f32 %v5037_v38, %v2935_v11  ;;  %v2942_v62 = vmul.f32 %v7305_v54, %v7283_v6  ;;  %2828 = vmatmul.bf16.gmra.mxu3 %v2224_v25  ;;  %v2150_v20 = vmul.f32 %v8544_v18, %v8544_v18  ;;  %v2156_v25 = vmul.f32 %v7110_v3, %v7110_v3 }
 0x327   :  { %5040 = vrsqrt.f32 %v7308_v30  ;;  %vm2948_vm7 = vweird.f32 %v7305_v54  ;;  %vm2957_vm11 = vweird.f32 %v7308_v30 }
 0x328   :  { %v2943_v47 = vmul.f32 %v7305_v54, %v2942_v62  ;;  %v2700_v61 = vpop.f32.mrf.mxu2  ;;  %v2940_v27 = vsel %vm2939_vm6, %v5037_v38, %v2936_v24  ;;  %v2524_v55 = vpop.f32.mrf.mxu0  ;;  %v2226_v23 = vpack.c.bf16 %v2154_v58, %v2150_v20  ;;  %vm2949_vm10 = vmor %vm2947_vm9, %vm2948_vm7  ;;  %vm3261_vm9 = vcmask 228352  }
 0x329   :  { %v2701_v36 = vadd.f32 %v2700_v61, %v2612_v39  ;;  %v2789_v46 = vpop.f32.mrf.mxu3  ;;  %v7316_v29 = vpack.c.bf16 %v2940_v27, %v2930_v59  ;;  %v2613_v11 = vpop.f32.mrf.mxu1  ;;  %v8543_v39 = vld [vmem:[#allocation66_spill] sm:$0xff]  ;;  %v2151_v61 = vmul.f32 %v7084_v17, %v7084_v17 }
 0x32a   :  { %v2614_v44 = vadd.f32 %v2613_v11, %v2524_v55  ;;  %v2944_v8 = vmul.f32 0.5, %v2943_v47  ;;  %v2149_v38 = vmul.f32 %v8543_v39, %v8543_v39 }
 0x32b   :  { %v2790_v22 = vadd.f32 %v2789_v46, %v2701_v36  ;;  %v2152_v46 = vmul.f32 %v7088_v57, %v7088_v57 }
 0x32c   :  { %v2945_v24 = vsub.f32 1.5, %v2944_v8  ;;  %v2227_v8 = vpack.c.bf16 %v2155_v42, %v2151_v61 }
 0x32d   :  { %v5041_v13 = vpop.eup %5040  ;;  %v7318_v35 = vmax.f32 %v2790_v22, 1e-24  ;;  %v2225_v22 = vpack.c.bf16 %v2153_v10, %v2149_v38 }
 0x32e   :  { %v2952_v14 = vmul.f32 %v5041_v13, %v7308_v30  ;;  %vm2958_vm8 = vweird.f32 %v5041_v13 }
 0x32f   :  { %5042 = vrsqrt.f32 %v7318_v35  ;;  %vm2959_vm12 = vmor %vm2957_vm11, %vm2958_vm8  ;;  %vm2967_vm15 = vweird.f32 %v7318_v35 }
 0x330   :  { %v2953_v62 = vmul.f32 %v5041_v13, %v2952_v14  ;;  %v2702_v47 = vpop.f32.mrf.mxu2  ;;  %v2527_v36 = vpop.f32.mrf.mxu0  ;;  %v2946_v14 = vmul.f32 %v7305_v54, %v2945_v24 }
 0x331   :  { %v2703_v59 = vadd.f32 %v2702_v47, %v2614_v44  ;;  %v2791_v27 = vpop.f32.mrf.mxu3  ;;  %v2616_v11 = vpop.f32.mrf.mxu1  ;;  %v2228_v44 = vpack.c.bf16 %v2156_v25, %v2152_v46 }
 0x332   :  { %v2954_v55 = vmul.f32 0.5, %v2953_v62  ;;  %v2617_v3 = vadd.f32 %v2616_v11, %v2527_v36  ;;  %v2950_v6 = vsel %vm2949_vm10, %v7305_v54, %v2946_v14  ;;  %v8545_v36 = vld [vmem:[#allocation72_spill] sm:$0xff] }
 0x333   :  { %v2792_v5 = vadd.f32 %v2791_v27, %v2703_v59  ;;  %2566 = vmatmul.bf16.gmra.mxu0 %v2225_v22  ;;  %v2161_v46 = vmul.f32 %v8545_v36, %v8545_v36 }
 0x334   :  { %v2955_v15 = vsub.f32 1.5, %v2954_v55  ;;  %2655 = vmatmul.bf16.gmra.mxu1 %v2226_v23  ;;  %v8546_v55 = vld [vmem:[#allocation74_spill] sm:$0xff] }
 0x335   :  { %v7340_v47 = vpop.eup %5042  ;;  %v7343_v57 = vmax.f32 %v2792_v5, 1e-24  ;;  %2744 = vmatmul.bf16.gmra.mxu2 %v2227_v8  ;;  %v2162_v11 = vmul.f32 %v8546_v55, %v8546_v55  ;;  %v8548_v8 = vld [vmem:[#allocation71_spill] sm:$0xff] }
 0x336   :  { %v2956_v10 = vmul.f32 %v5041_v13, %v2955_v15  ;;  %v2962_v58 = vmul.f32 %v7340_v47, %v7318_v35  ;;  %2833 = vmatmul.bf16.gmra.mxu3 %v2228_v44  ;;  %v2158_v14 = vmul.f32 %v8548_v8, %v8548_v8  ;;  %v2164_v44 = vmul.f32 %v7150_v50, %v7150_v50 }
 0x337   :  { %5044 = vrsqrt.f32 %v7343_v57  ;;  %vm2968_vm13 = vweird.f32 %v7340_v47  ;;  %vm2977_vm1 = vweird.f32 %v7343_v57 }
 0x338   :  { %v2963_v38 = vmul.f32 %v7340_v47, %v2962_v58  ;;  %v2705_v42 = vpop.f32.mrf.mxu2  ;;  %v2960_v5 = vsel %vm2959_vm12, %v5041_v13, %v2956_v10  ;;  %v2529_v25 = vpop.f32.mrf.mxu0  ;;  %v8547_v13 = vld [vmem:[#allocation70_spill] sm:$0xff]  ;;  %vm2969_vm0 = vmor %vm2967_vm15, %vm2968_vm13 }
 0x339   :  { %v2706_v20 = vadd.f32 %v2705_v42, %v2617_v3  ;;  %v2794_v23 = vpop.f32.mrf.mxu3  ;;  %v7351_v24 = vpack.c.bf16 %v2960_v5, %v2950_v6  ;;  %v2618_v15 = vpop.f32.mrf.mxu1  ;;  %v2163_v3 = vmul.f32 %v7130_v49, %v7130_v49  ;;  %v2157_v22 = vmul.f32 %v8547_v13, %v8547_v13 }
 0x33a   :  { %v2619_v62 = vadd.f32 %v2618_v15, %v2529_v25  ;;  %v2964_v61 = vmul.f32 0.5, %v2963_v38  ;;  %v2159_v42 = vmul.f32 %v7112_v34, %v7112_v34  ;;  %v2230_v49 = vpack.c.bf16 %v2162_v11, %v2158_v14 }
 0x33b   :  { %v2795_v30 = vadd.f32 %v2794_v23, %v2706_v20  ;;  %v2160_v23 = vmul.f32 %v7128_v0, %v7128_v0 }
 0x33c   :  { %v2965_v10 = vsub.f32 1.5, %v2964_v61  ;;  %v2231_v61 = vpack.c.bf16 %v2163_v3, %v2159_v42 }
 0x33d   :  { %v5045_v59 = vpop.eup %5044  ;;  %v7353_v27 = vmax.f32 %v2795_v30, 1e-24  ;;  %v2229_v30 = vpack.c.bf16 %v2161_v46, %v2157_v22 }
 0x33e   :  { %v2972_v54 = vmul.f32 %v5045_v59, %v7343_v57  ;;  %vm2978_vm14 = vweird.f32 %v5045_v59 }
 0x33f   :  { %5046 = vrsqrt.f32 %v7353_v27  ;;  %vm2979_vm2 = vmor %vm2977_vm1, %vm2978_vm14  ;;  %vm2987_vm5 = vweird.f32 %v7353_v27 }
 0x340   :  { %v2973_v58 = vmul.f32 %v5045_v59, %v2972_v54  ;;  %v2707_v38 = vpop.f32.mrf.mxu2  ;;  %v2532_v20 = vpop.f32.mrf.mxu0  ;;  %v2966_v54 = vmul.f32 %v7340_v47, %v2965_v10 }
 0x341   :  { %v2708_v6 = vadd.f32 %v2707_v38, %v2619_v62  ;;  %v2796_v5 = vpop.f32.mrf.mxu3  ;;  %v2621_v15 = vpop.f32.mrf.mxu1  ;;  %v2232_v62 = vpack.c.bf16 %v2164_v44, %v2160_v23 }
 0x342   :  { %v2974_v25 = vmul.f32 0.5, %v2973_v58  ;;  %v2622_v50 = vadd.f32 %v2621_v15, %v2532_v20  ;;  %v2970_v35 = vsel %vm2969_vm0, %v7340_v47, %v2966_v54  ;;  %v8549_v20 = vld [vmem:[#allocation78_spill] sm:$0xff] }
 0x343   :  { %v2797_v55 = vadd.f32 %v2796_v5, %v2708_v6  ;;  %2571 = vmatmul.bf16.gmra.mxu0 %v2229_v30  ;;  %v2169_v23 = vmul.f32 %v8549_v20, %v8549_v20 }
 0x344   :  { %v2975_v36 = vsub.f32 1.5, %v2974_v25  ;;  %2660 = vmatmul.bf16.gmra.mxu1 %v2230_v49  ;;  %v8550_v25 = vld [vmem:[#allocation79_spill] sm:$0xff] }
 0x345   :  { %v7375_v38 = vpop.eup %5046  ;;  %v7378_v0 = vmax.f32 %v2797_v55, 1e-24  ;;  %2749 = vmatmul.bf16.gmra.mxu2 %v2231_v61  ;;  %v2170_v15 = vmul.f32 %v8550_v25, %v8550_v25  ;;  %v8552_v61 = vld [vmem:[#allocation77_spill] sm:$0xff] }
 0x346   :  { %v2976_v46 = vmul.f32 %v5045_v59, %v2975_v36  ;;  %v2982_v11 = vmul.f32 %v7375_v38, %v7353_v27  ;;  %2838 = vmatmul.bf16.gmra.mxu3 %v2232_v62  ;;  %v2166_v54 = vmul.f32 %v8552_v61, %v8552_v61  ;;  %v2172_v62 = vmul.f32 %v7189_v26, %v7189_v26 }
 0x347   :  { %5048 = vrsqrt.f32 %v7378_v0  ;;  %vm2988_vm3 = vweird.f32 %v7375_v38  ;;  %vm2997_vm7 = vweird.f32 %v7378_v0 }
 0x348   :  { %v2983_v3 = vmul.f32 %v7375_v38, %v2982_v11  ;;  %v2710_v22 = vpop.f32.mrf.mxu2  ;;  %v2980_v55 = vsel %vm2979_vm2, %v5045_v59, %v2976_v46  ;;  %v2534_v44 = vpop.f32.mrf.mxu0  ;;  %v8551_v59 = vld [vmem:[#allocation75_spill] sm:$0xff]  ;;  %vm2989_vm6 = vmor %vm2987_vm5, %vm2988_vm3 }
 0x349   :  { %v2711_v14 = vadd.f32 %v2710_v22, %v2622_v50  ;;  %v2799_v49 = vpop.f32.mrf.mxu3  ;;  %v7386_v10 = vpack.c.bf16 %v2980_v55, %v2970_v35  ;;  %v2623_v36 = vpop.f32.mrf.mxu1  ;;  %v2171_v50 = vmul.f32 %v7158_v53, %v7158_v53  ;;  %v2165_v30 = vmul.f32 %v8551_v59, %v8551_v59 }
 0x34a   :  { %v2624_v58 = vadd.f32 %v2623_v36, %v2534_v44  ;;  %v2984_v42 = vmul.f32 0.5, %v2983_v3  ;;  %v2167_v22 = vmul.f32 %v7152_v4, %v7152_v4  ;;  %v2234_v53 = vpack.c.bf16 %v2170_v15, %v2166_v54 }
 0x34b   :  { %v2800_v57 = vadd.f32 %v2799_v49, %v2711_v14  ;;  %v2168_v49 = vmul.f32 %v7156_v52, %v7156_v52 }
 0x34c   :  { %v2985_v46 = vsub.f32 1.5, %v2984_v42  ;;  %v2235_v42 = vpack.c.bf16 %v2171_v50, %v2167_v22 }
 0x34d   :  { %v5049_v6 = vpop.eup %5048  ;;  %v7388_v5 = vmax.f32 %v2800_v57, 1e-24  ;;  %v2233_v57 = vpack.c.bf16 %v2169_v23, %v2165_v30 }
 0x34e   :  { %v2992_v47 = vmul.f32 %v5049_v6, %v7378_v0  ;;  %vm2998_vm4 = vweird.f32 %v5049_v6 }
 0x34f   :  { %5050 = vrsqrt.f32 %v7388_v5  ;;  %vm2999_vm8 = vmor %vm2997_vm7, %vm2998_vm4  ;;  %vm3007_vm12 = vweird.f32 %v7388_v5 }
 0x350   :  { %v2993_v11 = vmul.f32 %v5049_v6, %v2992_v47  ;;  %v2712_v3 = vpop.f32.mrf.mxu2  ;;  %v2537_v14 = vpop.f32.mrf.mxu0  ;;  %v2986_v47 = vmul.f32 %v7375_v38, %v2985_v46 }
 0x351   :  { %v2713_v35 = vadd.f32 %v2712_v3, %v2624_v58  ;;  %v2801_v55 = vpop.f32.mrf.mxu3  ;;  %v2626_v36 = vpop.f32.mrf.mxu1  ;;  %v2236_v58 = vpack.c.bf16 %v2172_v62, %v2168_v49 }
 0x352   :  { %v2994_v44 = vmul.f32 0.5, %v2993_v11  ;;  %v2627_v26 = vadd.f32 %v2626_v36, %v2537_v14  ;;  %v2990_v54 = vsel %vm2989_vm6, %v7375_v38, %v2986_v47 }
 0x353   :  { %v2802_v25 = vadd.f32 %v2801_v55, %v2713_v35  ;;  %2576 = vmatmul.bf16.gmra.mxu0 %v2233_v57 }
 0x354   :  { %v2995_v20 = vsub.f32 1.5, %v2994_v44  ;;  %2665 = vmatmul.bf16.gmra.mxu1 %v2234_v53 }
 0x355   :  { %v7410_v3 = vpop.eup %5050  ;;  %v2862_v52 = vmax.f32 %v2802_v25, 1e-24  ;;  %2754 = vmatmul.bf16.gmra.mxu2 %v2235_v42 }
 0x356   :  { %v2996_v23 = vmul.f32 %v5049_v6, %v2995_v20  ;;  %v3002_v15 = vmul.f32 %v7410_v3, %v7388_v5  ;;  %2843 = vmatmul.bf16.gmra.mxu3 %v2236_v58  ;;  %vm3008_vm10 = vweird.f32 %v7410_v3 }
 0x357   :  { %5052 = vrsqrt.f32 %v2862_v52  ;;  %vm3009_vm13 = vmor %vm3007_vm12, %vm3008_vm10  ;;  %vm3017_vm14 = vweird.f32 %v2862_v52 }
 0x358   :  { %v3003_v50 = vmul.f32 %v7410_v3, %v3002_v15  ;;  %v2715_v30 = vpop.f32.mrf.mxu2  ;;  %v3000_v62 = vsel %vm2999_vm8, %v5049_v6, %v2996_v23  ;;  %v2539_v53 = vpop.f32.mrf.mxu0 }
 0x359   :  { %v2716_v27 = vadd.f32 %v2715_v30, %v2627_v26  ;;  %v2804_v25 = vpop.f32.mrf.mxu3  ;;  %v7418_v46 = vpack.c.bf16 %v3000_v62, %v2990_v54  ;;  %v2628_v20 = vpop.f32.mrf.mxu1 }
 0x35a   :  { %v2629_v0 = vadd.f32 %v2628_v20, %v2539_v53  ;;  %v3004_v22 = vmul.f32 0.5, %v3003_v50 }
 0x35b   :  { %v2805_v11 = vadd.f32 %v2804_v25, %v2716_v27 }
 0x35c   :  { %v3005_v49 = vsub.f32 1.5, %v3004_v22 }
 0x35d   :  { %v5053_v35 = vpop.eup %5052  ;;  %v7420_v55 = vmax.f32 %v2805_v11, 1e-24 }
 0x35e   :  { %v3012_v14 = vmul.f32 %v5053_v35, %v2862_v52  ;;  %v3006_v23 = vmul.f32 %v7410_v3, %v3005_v49  ;;  %vm3018_vm11 = vweird.f32 %v5053_v35 }
 0x35f   :  { %5054 = vrsqrt.f32 %v7420_v55  ;;  %vm3019_vm15 = vmor %vm3017_vm14, %vm3018_vm11  ;;  %vm3027_vm2 = vweird.f32 %v7420_v55 }
 0x360   :  { %v3013_v44 = vmul.f32 %v5053_v35, %v3012_v14  ;;  %v2717_v36 = vpop.f32.mrf.mxu2  ;;  %v2542_v26 = vpop.f32.mrf.mxu0  ;;  %v3010_v25 = vsel %vm3009_vm13, %v7410_v3, %v3006_v23 }
 0x361   :  { %v2718_v38 = vadd.f32 %v2717_v36, %v2629_v0  ;;  %v2806_v6 = vpop.f32.mrf.mxu3  ;;  %v2631_v42 = vpop.f32.mrf.mxu1 }
 0x362   :  { %v3014_v57 = vmul.f32 0.5, %v3013_v44  ;;  %v2632_v58 = vadd.f32 %v2631_v42, %v2542_v26 }
 0x363   :  { %v2807_v47 = vadd.f32 %v2806_v6, %v2718_v38  ;;  %4755 = vmatmul.msk.bf16.vlgmr.msrb.gmra.mxu0 %vm3261_vm9, %v7246_v7 }
 0x364   :  { %v3015_v15 = vsub.f32 1.5, %v3014_v57  ;;  %4771 = vmatmul.msk.bf16.vlgmr.msrb.gmra.mxu1 %vm3261_vm9, %v7246_v7 }
 0x365   :  { %v7427_v50 = vpop.eup %5054  ;;  %v2864_v30 = vmax.f32 %v2807_v47, 1e-24  ;;  %4787 = vmatmul.msk.bf16.vlgmr.msrb.gmra.mxu2 %vm3261_vm9, %v7246_v7 }
 0x366   :  { %v3016_v54 = vmul.f32 %v5053_v35, %v3015_v15  ;;  %v3022_v62 = vmul.f32 %v7427_v50, %v7420_v55  ;;  %4803 = vmatmul.msk.bf16.vlgmr.msrb.gmra.mxu3 %vm3261_vm9, %v7246_v7  ;;  %vm3028_vm0 = vweird.f32 %v7427_v50 }
 0x367   :  { %5056 = vrsqrt.f32 %v2864_v30  ;;  %vm3029_vm3 = vmor %vm3027_vm2, %vm3028_vm0  ;;  %vm3037_vm4 = vweird.f32 %v2864_v30 }
 0x368   :  { %v3023_v5 = vmul.f32 %v7427_v50, %v3022_v62  ;;  %v2720_v27 = vpop.f32.mrf.mxu2  ;;  %v3020_v53 = vsel %vm3019_vm15, %v5053_v35, %v3016_v54  ;;  %v2544_v0 = vpop.f32.mrf.mxu0 }
 0x369   :  { %v2721_v20 = vadd.f32 %v2720_v27, %v2632_v58  ;;  %v2809_v11 = vpop.f32.mrf.mxu3  ;;  %v7440_v22 = vpack.c.bf16 %v3020_v53, %v3010_v25  ;;  %v2633_v52 = vpop.f32.mrf.mxu1 }
 0x36a   :  { %v2634_v49 = vadd.f32 %v2633_v52, %v2544_v0  ;;  %v3024_v44 = vmul.f32 0.5, %v3023_v5 }
 0x36b   :  { %v2810_v14 = vadd.f32 %v2809_v11, %v2721_v20 }
 0x36c   :  { %v3025_v6 = vsub.f32 1.5, %v3024_v44 }
 0x36d   :  { %v5057_v36 = vpop.eup %5056  ;;  %v7442_v38 = vmax.f32 %v2810_v14, 1e-24 }
 0x36e   :  { %v3032_v7 = vmul.f32 %v5057_v36, %v2864_v30  ;;  %v3026_v54 = vmul.f32 %v7427_v50, %v3025_v6  ;;  %vm3038_vm1 = vweird.f32 %v5057_v36 }
 0x36f   :  { %5058 = vrsqrt.f32 %v7442_v38  ;;  %vm3039_vm5 = vmor %vm3037_vm4, %vm3038_vm1  ;;  %vm3047_vm8 = vweird.f32 %v7442_v38 }
 0x370   :  { %v3033_v26 = vmul.f32 %v5057_v36, %v3032_v7  ;;  %v2722_v57 = vpop.f32.mrf.mxu2  ;;  %v2547_v42 = vpop.f32.mrf.mxu0  ;;  %v3030_v11 = vsel %vm3029_vm3, %v7427_v50, %v3026_v54 }
 0x371   :  { %v2723_v3 = vadd.f32 %v2722_v57, %v2634_v49  ;;  %v2811_v35 = vpop.f32.mrf.mxu3  ;;  %v2636_v58 = vpop.f32.mrf.mxu1 }
 0x372   :  { %v3034_v47 = vmul.f32 0.5, %v3033_v26  ;;  %v2637_v15 = vadd.f32 %v2636_v58, %v2547_v42 }
 0x373   :  { %v2812_v23 = vadd.f32 %v2811_v35, %v2723_v3  ;;  %4756 = vmatmul.msk.bf16.gmra.mxu0 %vm3261_vm9, %v7281_v1 }
 0x374   :  { %v3035_v62 = vsub.f32 1.5, %v3034_v47  ;;  %4772 = vmatmul.msk.bf16.gmra.mxu1 %vm3261_vm9, %v7281_v1 }
 0x375   :  { %v7449_v5 = vpop.eup %5058  ;;  %v2866_v27 = vmax.f32 %v2812_v23, 1e-24  ;;  %4788 = vmatmul.msk.bf16.gmra.mxu2 %vm3261_vm9, %v7281_v1 }
 0x376   :  { %v3036_v25 = vmul.f32 %v5057_v36, %v3035_v62  ;;  %v3042_v53 = vmul.f32 %v7449_v5, %v7442_v38  ;;  %4804 = vmatmul.msk.bf16.gmra.mxu3 %vm3261_vm9, %v7281_v1  ;;  %vm3048_vm6 = vweird.f32 %v7449_v5 }
 0x377   :  { %5060 = vrsqrt.f32 %v2866_v27  ;;  %vm3049_vm10 = vmor %vm3047_vm8, %vm3048_vm6  ;;  %vm3057_vm11 = vweird.f32 %v2866_v27 }
 0x378   :  { %v3043_v55 = vmul.f32 %v7449_v5, %v3042_v53  ;;  %v2725_v20 = vpop.f32.mrf.mxu2  ;;  %v3040_v0 = vsel %vm3039_vm5, %v5057_v36, %v3036_v25  ;;  %v2549_v49 = vpop.f32.mrf.mxu0 }
 0x379   :  { %v2726_v52 = vadd.f32 %v2725_v20, %v2637_v15  ;;  %v2814_v14 = vpop.f32.mrf.mxu3  ;;  %v7462_v44 = vpack.c.bf16 %v3040_v0, %v3030_v11  ;;  %v2638_v30 = vpop.f32.mrf.mxu1 }
 0x37a   :  { %v2639_v6 = vadd.f32 %v2638_v30, %v2549_v49  ;;  %v3044_v26 = vmul.f32 0.5, %v3043_v55 }
 0x37b   :  { %v2815_v7 = vadd.f32 %v2814_v14, %v2726_v52 }
 0x37c   :  { %v3045_v35 = vsub.f32 1.5, %v3044_v26 }
 0x37d   :  { %v5061_v57 = vpop.eup %5060  ;;  %v7464_v3 = vmax.f32 %v2815_v7, 1e-24 }
 0x37e   :  { %v3052_v1 = vmul.f32 %v5061_v57, %v2866_v27  ;;  %v3046_v25 = vmul.f32 %v7449_v5, %v3045_v35  ;;  %vm3058_vm7 = vweird.f32 %v5061_v57 }
 0x37f   :  { %5062 = vrsqrt.f32 %v7464_v3  ;;  %vm3059_vm12 = vmor %vm3057_vm11, %vm3058_vm7  ;;  %vm3067_vm15 = vweird.f32 %v7464_v3 }
 0x380   :  { %v3053_v42 = vmul.f32 %v5061_v57, %v3052_v1  ;;  %v2727_v47 = vpop.f32.mrf.mxu2  ;;  %v2552_v58 = vpop.f32.mrf.mxu0  ;;  %v3050_v14 = vsel %vm3049_vm10, %v7449_v5, %v3046_v25 }
 0x381   :  { %v2728_v50 = vadd.f32 %v2727_v47, %v2639_v6  ;;  %v2816_v36 = vpop.f32.mrf.mxu3  ;;  %v2641_v15 = vpop.f32.mrf.mxu1 }
 0x382   :  { %v3054_v23 = vmul.f32 0.5, %v3053_v42  ;;  %v2642_v62 = vadd.f32 %v2641_v15, %v2552_v58 }
 0x383   :  { %v2817_v54 = vadd.f32 %v2816_v36, %v2728_v50  ;;  %4757 = vmatmul.msk.bf16.gmra.mxu0 %vm3261_vm9, %v7316_v29 }
 0x384   :  { %v3055_v53 = vsub.f32 1.5, %v3054_v23  ;;  %4773 = vmatmul.msk.bf16.gmra.mxu1 %vm3261_vm9, %v7316_v29 }
 0x385   :  { %v7471_v55 = vpop.eup %5062  ;;  %v2868_v20 = vmax.f32 %v2817_v54, 1e-24  ;;  %4789 = vmatmul.msk.bf16.gmra.mxu2 %vm3261_vm9, %v7316_v29 }
 0x386   :  { %v3056_v11 = vmul.f32 %v5061_v57, %v3055_v53  ;;  %v3062_v0 = vmul.f32 %v7471_v55, %v7464_v3  ;;  %4805 = vmatmul.msk.bf16.gmra.mxu3 %vm3261_vm9, %v7316_v29  ;;  %vm3068_vm13 = vweird.f32 %v7471_v55 }
 0x387   :  { %5064 = vrsqrt.f32 %v2868_v20  ;;  %vm3069_vm0 = vmor %vm3067_vm15, %vm3068_vm13  ;;  %vm3077_vm1 = vweird.f32 %v2868_v20 }
 0x388   :  { %v3063_v38 = vmul.f32 %v7471_v55, %v3062_v0  ;;  %v2730_v52 = vpop.f32.mrf.mxu2  ;;  %v3060_v49 = vsel %vm3059_vm12, %v5061_v57, %v3056_v11  ;;  %v2554_v6 = vpop.f32.mrf.mxu0 }
 0x389   :  { %v2731_v30 = vadd.f32 %v2730_v52, %v2642_v62  ;;  %v2819_v7 = vpop.f32.mrf.mxu3  ;;  %v7484_v26 = vpack.c.bf16 %v3060_v49, %v3050_v14  ;;  %v2643_v27 = vpop.f32.mrf.mxu1 }
 0x38a   :  { %v2644_v35 = vadd.f32 %v2643_v27, %v2554_v6  ;;  %v3064_v42 = vmul.f32 0.5, %v3063_v38 }
 0x38b   :  { %v2820_v1 = vadd.f32 %v2819_v7, %v2731_v30 }
 0x38c   :  { %v3065_v36 = vsub.f32 1.5, %v3064_v42 }
 0x38d   :  { %v5065_v47 = vpop.eup %5064  ;;  %v7486_v50 = vmax.f32 %v2820_v1, 1e-24 }
 0x38e   :  { %v3072_v29 = vmul.f32 %v5065_v47, %v2868_v20  ;;  %v3066_v11 = vmul.f32 %v7471_v55, %v3065_v36  ;;  %vm3078_vm14 = vweird.f32 %v5065_v47 }
 0x38f   :  { %5066 = vrsqrt.f32 %v7486_v50  ;;  %vm3079_vm2 = vmor %vm3077_vm1, %vm3078_vm14  ;;  %vm3087_vm5 = vweird.f32 %v7486_v50 }
 0x390   :  { %v3073_v58 = vmul.f32 %v5065_v47, %v3072_v29  ;;  %v2732_v23 = vpop.f32.mrf.mxu2  ;;  %v2557_v15 = vpop.f32.mrf.mxu0  ;;  %v3070_v7 = vsel %vm3069_vm0, %v7471_v55, %v3066_v11 }
 0x391   :  { %v2733_v5 = vadd.f32 %v2732_v23, %v2644_v35  ;;  %v2821_v57 = vpop.f32.mrf.mxu3  ;;  %v2646_v62 = vpop.f32.mrf.mxu1 }
 0x392   :  { %v3074_v54 = vmul.f32 0.5, %v3073_v58  ;;  %v2647_v53 = vadd.f32 %v2646_v62, %v2557_v15 }
 0x393   :  { %v2822_v25 = vadd.f32 %v2821_v57, %v2733_v5  ;;  %4758 = vmatmul.msk.bf16.gmra.mxu0 %vm3261_vm9, %v7351_v24 }
 0x394   :  { %v3075_v0 = vsub.f32 1.5, %v3074_v54  ;;  %4774 = vmatmul.msk.bf16.gmra.mxu1 %vm3261_vm9, %v7351_v24 }
 0x395   :  { %v7493_v38 = vpop.eup %5066  ;;  %v2870_v52 = vmax.f32 %v2822_v25, 1e-24  ;;  %4790 = vmatmul.msk.bf16.gmra.mxu2 %vm3261_vm9, %v7351_v24 }
 0x396   :  { %v3076_v14 = vmul.f32 %v5065_v47, %v3075_v0  ;;  %v3082_v49 = vmul.f32 %v7493_v38, %v7486_v50  ;;  %4806 = vmatmul.msk.bf16.gmra.mxu3 %vm3261_vm9, %v7351_v24  ;;  %vm3088_vm3 = vweird.f32 %v7493_v38 }
 0x397   :  { %5068 = vrsqrt.f32 %v2870_v52  ;;  %vm3089_vm6 = vmor %vm3087_vm5, %vm3088_vm3  ;;  %vm3097_vm7 = vweird.f32 %v2870_v52 }
 0x398   :  { %v3083_v3 = vmul.f32 %v7493_v38, %v3082_v49  ;;  %v2735_v30 = vpop.f32.mrf.mxu2  ;;  %v3080_v6 = vsel %vm3079_vm2, %v5065_v47, %v3076_v14  ;;  %v2559_v35 = vpop.f32.mrf.mxu0 }
 0x399   :  { %v2736_v27 = vadd.f32 %v2735_v30, %v2647_v53  ;;  %v2824_v1 = vpop.f32.mrf.mxu3  ;;  %v7506_v42 = vpack.c.bf16 %v3080_v6, %v3070_v7  ;;  %v2648_v20 = vpop.f32.mrf.mxu1 }
 0x39a   :  { %v2649_v36 = vadd.f32 %v2648_v20, %v2559_v35  ;;  %v3084_v58 = vmul.f32 0.5, %v3083_v3 }
 0x39b   :  { %v2825_v29 = vadd.f32 %v2824_v1, %v2736_v27 }
 0x39c   :  { %v3085_v57 = vsub.f32 1.5, %v3084_v58 }
 0x39d   :  { %v5069_v23 = vpop.eup %5068  ;;  %v7508_v5 = vmax.f32 %v2825_v29, 1e-24 }
 0x39e   :  { %v3092_v24 = vmul.f32 %v5069_v23, %v2870_v52  ;;  %v3086_v14 = vmul.f32 %v7493_v38, %v3085_v57  ;;  %vm3098_vm4 = vweird.f32 %v5069_v23 }
 0x39f   :  { %5070 = vrsqrt.f32 %v7508_v5  ;;  %vm3099_vm8 = vmor %vm3097_vm7, %vm3098_vm4  ;;  %vm3107_vm12 = vweird.f32 %v7508_v5 }
 0x3a0   :  { %v3093_v15 = vmul.f32 %v5069_v23, %v3092_v24  ;;  %v2737_v54 = vpop.f32.mrf.mxu2  ;;  %v2562_v62 = vpop.f32.mrf.mxu0  ;;  %v3090_v1 = vsel %vm3089_vm6, %v7493_v38, %v3086_v14 }
 0x3a1   :  { %v2738_v55 = vadd.f32 %v2737_v54, %v2649_v36  ;;  %v2826_v47 = vpop.f32.mrf.mxu3  ;;  %v2651_v53 = vpop.f32.mrf.mxu1 }
 0x3a2   :  { %v3094_v25 = vmul.f32 0.5, %v3093_v15  ;;  %v2652_v0 = vadd.f32 %v2651_v53, %v2562_v62 }
 0x3a3   :  { %v2827_v11 = vadd.f32 %v2826_v47, %v2738_v55  ;;  %4759 = vmatmul.msk.bf16.gmra.mxu0 %vm3261_vm9, %v7386_v10 }
 0x3a4   :  { %v3095_v49 = vsub.f32 1.5, %v3094_v25  ;;  %4775 = vmatmul.msk.bf16.gmra.mxu1 %vm3261_vm9, %v7386_v10 }
 0x3a5   :  { %v7515_v3 = vpop.eup %5070  ;;  %v2872_v30 = vmax.f32 %v2827_v11, 1e-24  ;;  %4791 = vmatmul.msk.bf16.gmra.mxu2 %vm3261_vm9, %v7386_v10 }
 0x3a6   :  { %v3096_v7 = vmul.f32 %v5069_v23, %v3095_v49  ;;  %v3102_v6 = vmul.f32 %v7515_v3, %v7508_v5  ;;  %4807 = vmatmul.msk.bf16.gmra.mxu3 %vm3261_vm9, %v7386_v10  ;;  %vm3108_vm10 = vweird.f32 %v7515_v3 }
 0x3a7   :  { %5072 = vrsqrt.f32 %v2872_v30  ;;  %vm3109_vm13 = vmor %vm3107_vm12, %vm3108_vm10  ;;  %vm3117_vm14 = vweird.f32 %v2872_v30 }
 0x3a8   :  { %v3103_v50 = vmul.f32 %v7515_v3, %v3102_v6  ;;  %v2740_v27 = vpop.f32.mrf.mxu2  ;;  %v3100_v35 = vsel %vm3099_vm8, %v5069_v23, %v3096_v7  ;;  %v2564_v36 = vpop.f32.mrf.mxu0 }
 0x3a9   :  { %v2741_v20 = vadd.f32 %v2740_v27, %v2652_v0  ;;  %v2829_v29 = vpop.f32.mrf.mxu3  ;;  %v7528_v58 = vpack.c.bf16 %v3100_v35, %v3090_v1  ;;  %v2653_v52 = vpop.f32.mrf.mxu1 }
 0x3aa   :  { %v2654_v57 = vadd.f32 %v2653_v52, %v2564_v36  ;;  %v3104_v15 = vmul.f32 0.5, %v3103_v50 }
 0x3ab   :  { %v2830_v24 = vadd.f32 %v2829_v29, %v2741_v20 }
 0x3ac   :  { %v3105_v47 = vsub.f32 1.5, %v3104_v15 }
 0x3ad   :  { %v5073_v54 = vpop.eup %5072  ;;  %v7530_v55 = vmax.f32 %v2830_v24, 1e-24 }
 0x3ae   :  { %v3112_v10 = vmul.f32 %v5073_v54, %v2872_v30  ;;  %v3106_v7 = vmul.f32 %v7515_v3, %v3105_v47  ;;  %vm3118_vm11 = vweird.f32 %v5073_v54 }
 0x3af   :  { %5074 = vrsqrt.f32 %v7530_v55  ;;  %vm3119_vm15 = vmor %vm3117_vm14, %vm3118_vm11  ;;  %vm3127_vm2 = vweird.f32 %v7530_v55 }
 0x3b0   :  { %v3113_v62 = vmul.f32 %v5073_v54, %v3112_v10  ;;  %v2742_v25 = vpop.f32.mrf.mxu2  ;;  %v2567_v53 = vpop.f32.mrf.mxu0  ;;  %v3110_v29 = vsel %vm3109_vm13, %v7515_v3, %v3106_v7 }
 0x3b1   :  { %v2743_v38 = vadd.f32 %v2742_v25, %v2654_v57  ;;  %v2831_v23 = vpop.f32.mrf.mxu3  ;;  %v2656_v0 = vpop.f32.mrf.mxu1 }
 0x3b2   :  { %v3114_v11 = vmul.f32 0.5, %v3113_v62  ;;  %v2657_v49 = vadd.f32 %v2656_v0, %v2567_v53 }
 0x3b3   :  { %v2832_v14 = vadd.f32 %v2831_v23, %v2743_v38  ;;  %4760 = vmatmul.msk.bf16.gmra.mxu0 %vm3261_vm9, %v7418_v46 }
 0x3b4   :  { %v3115_v6 = vsub.f32 1.5, %v3114_v11  ;;  %4776 = vmatmul.msk.bf16.gmra.mxu1 %vm3261_vm9, %v7418_v46 }
 0x3b5   :  { %v7537_v50 = vpop.eup %5074  ;;  %v2874_v27 = vmax.f32 %v2832_v14, 1e-24  ;;  %4792 = vmatmul.msk.bf16.gmra.mxu2 %vm3261_vm9, %v7418_v46 }
 0x3b6   :  { %v3116_v1 = vmul.f32 %v5073_v54, %v3115_v6  ;;  %v3122_v35 = vmul.f32 %v7537_v50, %v7530_v55  ;;  %4808 = vmatmul.msk.bf16.gmra.mxu3 %vm3261_vm9, %v7418_v46  ;;  %vm3128_vm0 = vweird.f32 %v7537_v50 }
 0x3b7   :  { %5076 = vrsqrt.f32 %v2874_v27  ;;  %vm3129_vm3 = vmor %vm3127_vm2, %vm3128_vm0  ;;  %vm3137_vm4 = vweird.f32 %v2874_v27 }
 0x3b8   :  { %v3123_v5 = vmul.f32 %v7537_v50, %v3122_v35  ;;  %v2745_v20 = vpop.f32.mrf.mxu2  ;;  %v3120_v36 = vsel %vm3119_vm15, %v5073_v54, %v3116_v1  ;;  %v2569_v57 = vpop.f32.mrf.mxu0 }
 0x3b9   :  { %v2746_v52 = vadd.f32 %v2745_v20, %v2657_v49  ;;  %v2834_v24 = vpop.f32.mrf.mxu3  ;;  %v7550_v15 = vpack.c.bf16 %v3120_v36, %v3110_v29  ;;  %v2658_v30 = vpop.f32.mrf.mxu1 }
 0x3ba   :  { %v2659_v47 = vadd.f32 %v2658_v30, %v2569_v57  ;;  %v3124_v62 = vmul.f32 0.5, %v3123_v5 }
 0x3bb   :  { %v2835_v10 = vadd.f32 %v2834_v24, %v2746_v52 }
 0x3bc   :  { %v3125_v23 = vsub.f32 1.5, %v3124_v62 }
 0x3bd   :  { %v5077_v25 = vpop.eup %5076  ;;  %v7552_v38 = vmax.f32 %v2835_v10, 1e-24 }
 0x3be   :  { %v3132_v46 = vmul.f32 %v5077_v25, %v2874_v27  ;;  %v3126_v1 = vmul.f32 %v7537_v50, %v3125_v23  ;;  %vm3138_vm1 = vweird.f32 %v5077_v25 }
 0x3bf   :  { %5078 = vrsqrt.f32 %v7552_v38  ;;  %vm3139_vm5 = vmor %vm3137_vm4, %vm3138_vm1  ;;  %vm3147_vm8 = vweird.f32 %v7552_v38 }
 0x3c0   :  { %v3133_v53 = vmul.f32 %v5077_v25, %v3132_v46  ;;  %v2747_v11 = vpop.f32.mrf.mxu2  ;;  %v2572_v0 = vpop.f32.mrf.mxu0  ;;  %v3130_v24 = vsel %vm3129_vm3, %v7537_v50, %v3126_v1 }
 0x3c1   :  { %v2748_v3 = vadd.f32 %v2747_v11, %v2659_v47  ;;  %v2836_v54 = vpop.f32.mrf.mxu3  ;;  %v2661_v49 = vpop.f32.mrf.mxu1 }
 0x3c2   :  { %v3134_v14 = vmul.f32 0.5, %v3133_v53  ;;  %v2662_v6 = vadd.f32 %v2661_v49, %v2572_v0 }
 0x3c3   :  { %v2837_v7 = vadd.f32 %v2836_v54, %v2748_v3  ;;  %4761 = vmatmul.msk.bf16.gmra.mxu0 %vm3261_vm9, %v7440_v22 }
 0x3c4   :  { %v3135_v35 = vsub.f32 1.5, %v3134_v14  ;;  %4777 = vmatmul.msk.bf16.gmra.mxu1 %vm3261_vm9, %v7440_v22 }
 0x3c5   :  { %v7559_v5 = vpop.eup %5078  ;;  %v2876_v20 = vmax.f32 %v2837_v7, 1e-24  ;;  %4793 = vmatmul.msk.bf16.gmra.mxu2 %vm3261_vm9, %v7440_v22 }
 0x3c6   :  { %v3136_v29 = vmul.f32 %v5077_v25, %v3135_v35  ;;  %v3142_v36 = vmul.f32 %v7559_v5, %v7552_v38  ;;  %4809 = vmatmul.msk.bf16.gmra.mxu3 %vm3261_vm9, %v7440_v22  ;;  %vm3148_vm6 = vweird.f32 %v7559_v5 }
 0x3c7   :  { %5080 = vrsqrt.f32 %v2876_v20  ;;  %vm3149_vm10 = vmor %vm3147_vm8, %vm3148_vm6  ;;  %vm3157_vm11 = vweird.f32 %v2876_v20 }
 0x3c8   :  { %v3143_v55 = vmul.f32 %v7559_v5, %v3142_v36  ;;  %v2750_v52 = vpop.f32.mrf.mxu2  ;;  %v3140_v57 = vsel %vm3139_vm5, %v5077_v25, %v3136_v29  ;;  %v2574_v47 = vpop.f32.mrf.mxu0 }
 0x3c9   :  { %v2751_v30 = vadd.f32 %v2750_v52, %v2662_v6  ;;  %v2839_v10 = vpop.f32.mrf.mxu3  ;;  %v7572_v62 = vpack.c.bf16 %v3140_v57, %v3130_v24  ;;  %v2663_v27 = vpop.f32.mrf.mxu1 }
 0x3ca   :  { %v2664_v23 = vadd.f32 %v2663_v27, %v2574_v47  ;;  %v3144_v53 = vmul.f32 0.5, %v3143_v55 }
 0x3cb   :  { %v2840_v46 = vadd.f32 %v2839_v10, %v2751_v30 }
 0x3cc   :  { %v3145_v54 = vsub.f32 1.5, %v3144_v53 }
 0x3cd   :  { %v5081_v11 = vpop.eup %5080  ;;  %v7574_v3 = vmax.f32 %v2840_v46, 1e-24 }
 0x3ce   :  { %v3152_v22 = vmul.f32 %v5081_v11, %v2876_v20  ;;  %v3146_v29 = vmul.f32 %v7559_v5, %v3145_v54  ;;  %vm3158_vm7 = vweird.f32 %v5081_v11 }
 0x3cf   :  { %5082 = vrsqrt.f32 %v7574_v3  ;;  %vm3159_vm12 = vmor %vm3157_vm11, %vm3158_vm7  ;;  %vm3167_vm15 = vweird.f32 %v7574_v3 }
 0x3d0   :  { %v3153_v0 = vmul.f32 %v5081_v11, %v3152_v22  ;;  %v2752_v14 = vpop.f32.mrf.mxu2  ;;  %v2577_v49 = vpop.f32.mrf.mxu0  ;;  %v3150_v10 = vsel %vm3149_vm10, %v7559_v5, %v3146_v29 }
 0x3d1   :  { %v2753_v50 = vadd.f32 %v2752_v14, %v2664_v23  ;;  %v2841_v25 = vpop.f32.mrf.mxu3  ;;  %v2666_v6 = vpop.f32.mrf.mxu1 }
 0x3d2   :  { %v3154_v7 = vmul.f32 0.5, %v3153_v0  ;;  %v2667_v35 = vadd.f32 %v2666_v6, %v2577_v49 }
 0x3d3   :  { %v2842_v1 = vadd.f32 %v2841_v25, %v2753_v50  ;;  %4762 = vmatmul.msk.bf16.gmra.mxu0 %vm3261_vm9, %v7462_v44 }
 0x3d4   :  { %v3155_v36 = vsub.f32 1.5, %v3154_v7  ;;  %4778 = vmatmul.msk.bf16.gmra.mxu1 %vm3261_vm9, %v7462_v44 }
 0x3d5   :  { %v7581_v55 = vpop.eup %5082  ;;  %v2878_v52 = vmax.f32 %v2842_v1, 1e-24  ;;  %4794 = vmatmul.msk.bf16.gmra.mxu2 %vm3261_vm9, %v7462_v44 }
 0x3d6   :  { %v3156_v24 = vmul.f32 %v5081_v11, %v3155_v36  ;;  %v3162_v57 = vmul.f32 %v7581_v55, %v7574_v3  ;;  %4810 = vmatmul.msk.bf16.gmra.mxu3 %vm3261_vm9, %v7462_v44  ;;  %vm3168_vm13 = vweird.f32 %v7581_v55 }
 0x3d7   :  { %5084 = vrsqrt.f32 %v2878_v52  ;;  %vm3169_vm0 = vmor %vm3167_vm15, %vm3168_vm13  ;;  %vm3177_vm1 = vweird.f32 %v2878_v52 }
 0x3d8   :  { %v3163_v38 = vmul.f32 %v7581_v55, %v3162_v57  ;;  %v2755_v30 = vpop.f32.mrf.mxu2  ;;  %v3160_v47 = vsel %vm3159_vm12, %v5081_v11, %v3156_v24  ;;  %v2579_v23 = vpop.f32.mrf.mxu0  ;;  %v8554_v57 = vld [vmem:[#allocation6_spill] sm:$0xff] }
 0x3d9   :  { %v2756_v27 = vadd.f32 %v2755_v30, %v2667_v35  ;;  %v2844_v46 = vpop.f32.mrf.mxu3  ;;  %v7594_v53 = vpack.c.bf16 %v3160_v47, %v3150_v10  ;;  %v2668_v20 = vpop.f32.mrf.mxu1  ;;  %v8553_v35 = vld [vmem:[#allocation5_spill] sm:$0xff] }
 0x3da   :  { %v2669_v54 = vadd.f32 %v2668_v20, %v2579_v23  ;;  %v3164_v0 = vmul.f32 0.5, %v3163_v38 }
 0x3db   :  { %v2845_v22 = vadd.f32 %v2844_v46, %v2756_v27 }
 0x3dc   :  { %v3165_v25 = vsub.f32 1.5, %v3164_v0  ;;  %v8555_v0 = vld [vmem:[#allocation80_spill] sm:$0xff] }
 0x3dd   :  { %v5085_v14 = vpop.eup %5084  ;;  %v7596_v50 = vmax.f32 %v2845_v22, 1e-24 }
 0x3de   :  { %v3172_v44 = vmul.f32 %v5085_v14, %v2878_v52  ;;  %v3166_v30 = vmul.f32 %v7581_v55, %v3165_v25  ;;  %vm3178_vm14 = vweird.f32 %v5085_v14  ;;  %v8556_v52 = vld [vmem:[#allocation81_spill] sm:$0xff] }
 0x3df   :  { %5086 = vrsqrt.f32 %v7596_v50  ;;  %vm3179_vm2 = vmor %vm3177_vm1, %vm3178_vm14  ;;  %vm3187_vm5 = vweird.f32 %v7596_v50 }
 0x3e0   :  { %v3173_v49 = vmul.f32 %v5085_v14, %v3172_v44  ;;  %v2757_v7 = vpop.f32.mrf.mxu2  ;;  %v3332_v6 = vpop.f32.mrf.mxu0  ;;  %v3170_v22 = vsel %vm3169_vm0, %v7581_v55, %v3166_v30 }
 0x3e1   :  { %v2758_v5 = vadd.f32 %v2757_v7, %v2669_v54  ;;  %v2846_v11 = vpop.f32.mrf.mxu3  ;;  %v3679_v29 = vmul.f32 %v3332_v6, %v8553_v35  ;;  %v3421_v36 = vpop.f32.mrf.mxu1 }
 0x3e2   :  { %v3174_v1 = vmul.f32 0.5, %v3173_v49  ;;  %v3680_v38 = vmul.f32 %v3421_v36, %v8554_v57 }
 0x3e3   :  { %v2847_v24 = vadd.f32 %v2846_v11, %v2758_v5  ;;  %3807 = vst [vmem:[%s8204_s9] sm:$0xff] %v3679_v29  ;;  %4763 = vmatmul.msk.bf16.gmra.mxu0 %vm3261_vm9, %v7484_v26  ;;  %v8557_v11 = vld [vmem:[#allocation7_spill] sm:$0xff] }
 0x3e4   :  { %v3175_v10 = vsub.f32 1.5, %v3174_v1  ;;  %3808 = vst [vmem:[%s8204_s9 + $0x8] sm:$0xff] %v3680_v38  ;;  %4779 = vmatmul.msk.bf16.gmra.mxu1 %vm3261_vm9, %v7484_v26  ;;  %v8559_v38 = vld [vmem:[#allocation82_spill] sm:$0xff] }
 0x3e5   :  { %v7608_v47 = vpop.eup %5086  ;;  %v2880_v27 = vmax.f32 %v2847_v24, 1e-24  ;;  %4795 = vmatmul.msk.bf16.gmra.mxu2 %vm3261_vm9, %v7484_v26 }
 0x3e6   :  { %v3176_v46 = vmul.f32 %v5085_v14, %v3175_v10  ;;  %v3182_v23 = vmul.f32 %v7608_v47, %v7596_v50  ;;  %4811 = vmatmul.msk.bf16.gmra.mxu3 %vm3261_vm9, %v7484_v26  ;;  %v8558_v26 = vld [vmem:[#allocation8_spill] sm:$0xff]  ;;  %vm3188_vm3 = vweird.f32 %v7608_v47 }
 0x3e7   :  { %5088 = vrsqrt.f32 %v2880_v27  ;;  %vm3189_vm6 = vmor %vm3187_vm5, %vm3188_vm3  ;;  %vm3197_vm7 = vweird.f32 %v2880_v27 }
 0x3e8   :  { %v3183_v3 = vmul.f32 %v7608_v47, %v3182_v23  ;;  %v3510_v20 = vpop.f32.mrf.mxu2  ;;  %v3180_v54 = vsel %vm3179_vm2, %v5085_v14, %v3176_v46  ;;  %v3334_v49 = vpop.f32.mrf.mxu0 }
 0x3e9   :  { %v3681_v44 = vmul.f32 %v3510_v20, %v8555_v0  ;;  %v3599_v25 = vpop.f32.mrf.mxu3  ;;  %v7625_v7 = vpack.c.bf16 %v3180_v54, %v3170_v22  ;;  %v3683_v6 = vmul.f32 %v3334_v49, %v8557_v11  ;;  %v3423_v1 = vpop.f32.mrf.mxu1  ;;  %v8561_v0 = vld [vmem:[#allocation10_spill] sm:$0xff]  ;;  %v8562_v11 = vld [vmem:[#allocation84_spill] sm:$0xff] }
 0x3ea   :  { %v3682_v5 = vmul.f32 %v3599_v25, %v8556_v52  ;;  %v3684_v35 = vmul.f32 %v3423_v1, %v8558_v26  ;;  %v3184_v29 = vmul.f32 0.5, %v3183_v3  ;;  %v8560_v3 = vld [vmem:[#allocation83_spill] sm:$0xff] }
 0x3eb   :  { %3809 = vst [vmem:[%s8204_s9 + $0x10] sm:$0xff] %v3681_v44 }
 0x3ec   :  { %3810 = vst [vmem:[%s8204_s9 + $0x18] sm:$0xff] %v3682_v5  ;;  %v3185_v36 = vsub.f32 1.5, %v3184_v29  ;;  %v8563_v29 = vld [vmem:[#allocation85_spill] sm:$0xff] }
 0x3ed   :  { %v5089_v55 = vpop.eup %5088  ;;  %3811 = vst [vmem:[%s8204_s9 + $0x20] sm:$0xff] %v3683_v6 }
 0x3ee   :  { %v3192_v14 = vmul.f32 %v5089_v55, %v2880_v27  ;;  %3812 = vst [vmem:[%s8204_s9 + $0x28] sm:$0xff] %v3684_v35  ;;  %v3186_v25 = vmul.f32 %v7608_v47, %v3185_v36  ;;  %vm3198_vm4 = vweird.f32 %v5089_v55 }
 0x3ef   :  { %vm3199_vm8 = vmor %vm3197_vm7, %vm3198_vm4 }
 0x3f0   :  { %v3193_v24 = vmul.f32 %v5089_v55, %v3192_v14  ;;  %v3512_v57 = vpop.f32.mrf.mxu2  ;;  %v3337_v46 = vpop.f32.mrf.mxu0  ;;  %v3190_v52 = vsel %vm3189_vm6, %v7608_v47, %v3186_v25  ;;  %v8564_v14 = vld [vmem:[#allocation11_spill] sm:$0xff]  ;;  %v8569_v25 = vld [vmem:[#allocation89_spill] sm:$0xff] }
 0x3f1   :  { %v3685_v30 = vmul.f32 %v3512_v57, %v8559_v38  ;;  %v3601_v10 = vpop.f32.mrf.mxu3  ;;  %v3687_v22 = vmul.f32 %v3337_v46, %v8472_v31  ;;  %v3426_v54 = vpop.f32.mrf.mxu1  ;;  %v8567_v46 = vld [vmem:[#allocation87_spill] sm:$0xff] }
 0x3f2   :  { %v3194_v23 = vmul.f32 0.5, %v3193_v24  ;;  %v3686_v20 = vmul.f32 %v3601_v10, %v8560_v3  ;;  %v3688_v44 = vmul.f32 %v3426_v54, %v8561_v0 }
 0x3f3   :  { %3813 = vst [vmem:[%s8204_s9 + $0x30] sm:$0xff] %v3685_v30  ;;  %4764 = vmatmul.msk.bf16.gmra.mxu0 %vm3261_vm9, %v7506_v42 }
 0x3f4   :  { %v3195_v49 = vsub.f32 1.5, %v3194_v23  ;;  %3814 = vst [vmem:[%s8204_s9 + $0x38] sm:$0xff] %v3686_v20  ;;  %4780 = vmatmul.msk.bf16.gmra.mxu1 %vm3261_vm9, %v7506_v42 }
 0x3f5   :  { %3815 = vst [vmem:[%s8204_s9 + $0x40] sm:$0xff] %v3687_v22  ;;  %4796 = vmatmul.msk.bf16.gmra.mxu2 %vm3261_vm9, %v7506_v42 }
 0x3f6   :  { %v3196_v31 = vmul.f32 %v5089_v55, %v3195_v49  ;;  %3816 = vst [vmem:[%s8204_s9 + $0x48] sm:$0xff] %v3688_v44  ;;  %4812 = vmatmul.msk.bf16.gmra.mxu3 %vm3261_vm9, %v7506_v42  ;;  %v8565_v42 = vld [vmem:[#allocation13_spill] sm:$0xff] }
 0x3f8   :  { %v3515_v50 = vpop.f32.mrf.mxu2  ;;  %v3200_v5 = vsel %vm3199_vm8, %v5089_v55, %v3196_v31  ;;  %v3339_v26 = vpop.f32.mrf.mxu0  ;;  %v8566_v55 = vld [vmem:[#allocation86_spill] sm:$0xff]  ;;  %v8570_v31 = vld [vmem:[#allocation16_spill] sm:$0xff] }
 0x3f9   :  { %v3689_v6 = vmul.f32 %v3515_v50, %v8562_v11  ;;  %v3604_v1 = vpop.f32.mrf.mxu3  ;;  %v7671_v35 = vpack.c.bf16 %v3200_v5, %v3190_v52  ;;  %v3691_v36 = vmul.f32 %v3339_v26, %v8564_v14  ;;  %v3428_v24 = vpop.f32.mrf.mxu1  ;;  %v8571_v5 = vld [vmem:[#allocation17_spill] sm:$0xff] }
 0x3fa   :  { %v3690_v27 = vmul.f32 %v3604_v1, %v8563_v29  ;;  %v3692_v57 = vmul.f32 %v3428_v24, %v8565_v42 }
 0x3fb   :  { %3817 = vst [vmem:[%s8204_s9 + $0x50] sm:$0xff] %v3689_v6  ;;  %v8572_v6 = vld [vmem:[#allocation90_spill] sm:$0xff] }
 0x3fc   :  { %3818 = vst [vmem:[%s8204_s9 + $0x58] sm:$0xff] %v3690_v27  ;;  %v8573_v27 = vld [vmem:[#allocation91_spill] sm:$0xff] }
 0x3fd   :  { %3819 = vst [vmem:[%s8204_s9 + $0x60] sm:$0xff] %v3691_v36 }
 0x3fe   :  { %3820 = vst [vmem:[%s8204_s9 + $0x68] sm:$0xff] %v3692_v57 }
 0x400   :  { %v3517_v47 = vpop.f32.mrf.mxu2  ;;  %v3342_v10 = vpop.f32.mrf.mxu0 }
 0x401   :  { %v3693_v38 = vmul.f32 %v3517_v47, %v8566_v55  ;;  %v3606_v30 = vpop.f32.mrf.mxu3  ;;  %v3695_v3 = vmul.f32 %v3342_v10, %v8478_v32  ;;  %v3431_v20 = vpop.f32.mrf.mxu1  ;;  %v8576_v10 = vld [vmem:[#allocation20_spill] sm:$0xff] }
 0x402   :  { %v3694_v23 = vmul.f32 %v3606_v30, %v8567_v46  ;;  %v3696_v22 = vmul.f32 %v3431_v20, %v8479_v51  ;;  %v8568_v51 = vld [vmem:[#allocation88_spill] sm:$0xff] }
 0x403   :  { %3821 = vst [vmem:[%s8204_s9 + $0x70] sm:$0xff] %v3693_v38  ;;  %4765 = vmatmul.msk.bf16.gmra.mxu0 %vm3261_vm9, %v7528_v58  ;;  %v8575_v38 = vld [vmem:[#allocation93_spill] sm:$0xff] }
 0x404   :  { %3822 = vst [vmem:[%s8204_s9 + $0x78] sm:$0xff] %v3694_v23  ;;  %4781 = vmatmul.msk.bf16.gmra.mxu1 %vm3261_vm9, %v7528_v58 }
 0x405   :  { %3823 = vst [vmem:[%s8204_s9 + $0x80] sm:$0xff] %v3695_v3  ;;  %4797 = vmatmul.msk.bf16.gmra.mxu2 %vm3261_vm9, %v7528_v58  ;;  %v8577_v3 = vld [vmem:[#allocation21_spill] sm:$0xff] }
 0x406   :  { %3824 = vst [vmem:[%s8204_s9 + $0x88] sm:$0xff] %v3696_v22  ;;  %4813 = vmatmul.msk.bf16.gmra.mxu3 %vm3261_vm9, %v7528_v58  ;;  %v8578_v22 = vld [vmem:[#allocation94_spill] sm:$0xff] }
 0x408   :  { %v3520_v32 = vpop.f32.mrf.mxu2  ;;  %v3344_v44 = vpop.f32.mrf.mxu0 }
 0x409   :  { %v3697_v54 = vmul.f32 %v3520_v32, %v8568_v51  ;;  %v3609_v0 = vpop.f32.mrf.mxu3  ;;  %v3699_v50 = vmul.f32 %v3344_v44, %v8570_v31  ;;  %v3433_v52 = vpop.f32.mrf.mxu1 }
 0x40a   :  { %v3698_v49 = vmul.f32 %v3609_v0, %v8569_v25  ;;  %v3700_v11 = vmul.f32 %v3433_v52, %v8571_v5  ;;  %v8579_v0 = vld [vmem:[#allocation95_spill] sm:$0xff] }
 0x40b   :  { %3825 = vst [vmem:[%s8204_s9 + $0x90] sm:$0xff] %v3697_v54 }
 0x40c   :  { %3826 = vst [vmem:[%s8204_s9 + $0x98] sm:$0xff] %v3698_v49 }
 0x40d   :  { %3827 = vst [vmem:[%s8204_s9 + $0xa0] sm:$0xff] %v3699_v50 }
 0x40e   :  { %3828 = vst [vmem:[%s8204_s9 + $0xa8] sm:$0xff] %v3700_v11  ;;  %v8581_v11 = vld [vmem:[#allocation23_spill] sm:$0xff] }
 0x410   :  { %v3522_v58 = vpop.f32.mrf.mxu2  ;;  %v3347_v29 = vpop.f32.mrf.mxu0 }
 0x411   :  { %v3701_v1 = vmul.f32 %v3522_v58, %v8572_v6  ;;  %v3611_v26 = vpop.f32.mrf.mxu3  ;;  %v3703_v36 = vmul.f32 %v3347_v29, %v8485_v56  ;;  %v3436_v24 = vpop.f32.mrf.mxu1  ;;  %v8582_v6 = vld [vmem:[#allocation25_spill] sm:$0xff] }
 0x412   :  { %v3702_v14 = vmul.f32 %v3611_v26, %v8573_v27  ;;  %v3704_v42 = vmul.f32 %v3436_v24, %v8486_v2  ;;  %v8574_v2 = vld [vmem:[#allocation92_spill] sm:$0xff]  ;;  %v8583_v29 = vld [vmem:[#allocation29_spill] sm:$0xff] }
 0x413   :  { %3829 = vst [vmem:[%s8204_s9 + $0xb0] sm:$0xff] %v3701_v1  ;;  %4766 = vmatmul.msk.bf16.gmra.mxu0 %vm3261_vm9, %v7550_v15 }
 0x414   :  { %3830 = vst [vmem:[%s8204_s9 + $0xb8] sm:$0xff] %v3702_v14  ;;  %4782 = vmatmul.msk.bf16.gmra.mxu1 %vm3261_vm9, %v7550_v15  ;;  %v8584_v14 = vld [vmem:[#allocation97_spill] sm:$0xff] }
 0x415   :  { %3831 = vst [vmem:[%s8204_s9 + $0xc0] sm:$0xff] %v3703_v36  ;;  %4798 = vmatmul.msk.bf16.gmra.mxu2 %vm3261_vm9, %v7550_v15 }
 0x416   :  { %3832 = vst [vmem:[%s8204_s9 + $0xc8] sm:$0xff] %v3704_v42  ;;  %4814 = vmatmul.msk.bf16.gmra.mxu3 %vm3261_vm9, %v7550_v15 }
 0x418   :  { %v3525_v56 = vpop.f32.mrf.mxu2  ;;  %v3349_v55 = vpop.f32.mrf.mxu0 }
 0x419   :  { %v3705_v57 = vmul.f32 %v3525_v56, %v8574_v2  ;;  %v3614_v47 = vpop.f32.mrf.mxu3  ;;  %v3707_v46 = vmul.f32 %v3349_v55, %v8576_v10  ;;  %v3438_v23 = vpop.f32.mrf.mxu1  ;;  %v8585_v56 = vld [vmem:[#allocation26_spill] sm:$0xff] }
 0x41a   :  { %v3706_v30 = vmul.f32 %v3614_v47, %v8575_v38  ;;  %v3708_v20 = vmul.f32 %v3438_v23, %v8577_v3  ;;  %v8588_v3 = vld [vmem:[#allocation32_spill] sm:$0xff] }
 0x41b   :  { %3833 = vst [vmem:[%s8204_s9 + $0xd0] sm:$0xff] %v3705_v57 }
 0x41c   :  { %3834 = vst [vmem:[%s8204_s9 + $0xd8] sm:$0xff] %v3706_v30 }
 0x41d   :  { %3835 = vst [vmem:[%s8204_s9 + $0xe0] sm:$0xff] %v3707_v46  ;;  %v8587_v46 = vld [vmem:[#allocation27_spill] sm:$0xff] }
 0x41e   :  { %3836 = vst [vmem:[%s8204_s9 + $0xe8] sm:$0xff] %v3708_v20 }
 0x420   :  { %v3527_v15 = vpop.f32.mrf.mxu2  ;;  %v3352_v54 = vpop.f32.mrf.mxu0 }
 0x421   :  { %v3709_v32 = vmul.f32 %v3527_v15, %v8578_v22  ;;  %v3616_v51 = vpop.f32.mrf.mxu3  ;;  %v3711_v25 = vmul.f32 %v3352_v54, %v8492_v41  ;;  %v3441_v49 = vpop.f32.mrf.mxu1  ;;  %v8589_v22 = vld [vmem:[#allocation36_spill] sm:$0xff] }
 0x422   :  { %v3710_v44 = vmul.f32 %v3616_v51, %v8579_v0  ;;  %v3712_v31 = vmul.f32 %v3441_v49, %v8493_v21  ;;  %v8580_v21 = vld [vmem:[#allocation96_spill] sm:$0xff] }
 0x423   :  { %3837 = vst [vmem:[%s8204_s9 + $0xf0] sm:$0xff] %v3709_v32  ;;  %4767 = vmatmul.msk.bf16.gmra.mxu0 %vm3261_vm9, %v7572_v62  ;;  %v8590_v51 = vld [vmem:[#allocation28_spill] sm:$0xff] }
 0x424   :  { %3838 = vst [vmem:[%s8204_s9 + $0xf8] sm:$0xff] %v3710_v44  ;;  %4783 = vmatmul.msk.bf16.gmra.mxu1 %vm3261_vm9, %v7572_v62 }
 0x425   :  { %3839 = vst [vmem:[%s8204_s9 + $0x100] sm:$0xff] %v3711_v25  ;;  %4799 = vmatmul.msk.bf16.gmra.mxu2 %vm3261_vm9, %v7572_v62  ;;  %v8591_v25 = vld [vmem:[#allocation12_spill] sm:$0xff] }
 0x426   :  { %3840 = vst [vmem:[%s8204_s9 + $0x108] sm:$0xff] %v3712_v31  ;;  %4815 = vmatmul.msk.bf16.gmra.mxu3 %vm3261_vm9, %v7572_v62  ;;  %v8592_v31 = vld [vmem:[#allocation37_spill] sm:$0xff] }
 0x428   :  { %v3530_v41 = vpop.f32.mrf.mxu2  ;;  %v3354_v5 = vpop.f32.mrf.mxu0 }
 0x429   :  { %v3713_v50 = vmul.f32 %v3530_v41, %v8580_v21  ;;  %v3619_v52 = vpop.f32.mrf.mxu3  ;;  %v3715_v1 = vmul.f32 %v3354_v5, %v8582_v6  ;;  %v3443_v26 = vpop.f32.mrf.mxu1 }
 0x42a   :  { %v3714_v58 = vmul.f32 %v3619_v52, %v8581_v11  ;;  %v3716_v27 = vmul.f32 %v3443_v26, %v8583_v29  ;;  %v8594_v11 = vld [vmem:[#allocation33_spill] sm:$0xff]  ;;  %v8595_v26 = vld [vmem:[#allocation34_spill] sm:$0xff] }
 0x42b   :  { %3841 = vst [vmem:[%s8204_s9 + $0x110] sm:$0xff] %v3713_v50  ;;  %v8593_v50 = vld [vmem:[#allocation38_spill] sm:$0xff] }
 0x42c   :  { %3842 = vst [vmem:[%s8204_s9 + $0x118] sm:$0xff] %v3714_v58 }
 0x42d   :  { %3843 = vst [vmem:[%s8204_s9 + $0x120] sm:$0xff] %v3715_v1 }
 0x42e   :  { %3844 = vst [vmem:[%s8204_s9 + $0x128] sm:$0xff] %v3716_v27  ;;  %v8596_v27 = vld [vmem:[#allocation39_spill] sm:$0xff] }
 0x430   :  { %v3532_v62 = vpop.f32.mrf.mxu2  ;;  %v3357_v42 = vpop.f32.mrf.mxu0 }
 0x431   :  { %v3717_v36 = vmul.f32 %v3532_v62, %v8584_v14  ;;  %v3621_v24 = vpop.f32.mrf.mxu3  ;;  %v3719_v57 = vmul.f32 %v3357_v42, %v8499_v16  ;;  %v3446_v47 = vpop.f32.mrf.mxu1  ;;  %v8598_v42 = vld [vmem:[#allocation35_spill] sm:$0xff] }
 0x432   :  { %v3718_v2 = vmul.f32 %v3621_v24, %v8585_v56  ;;  %v3720_v55 = vmul.f32 %v3446_v47, %v8500_v28  ;;  %v8586_v28 = vld [vmem:[#allocation98_spill] sm:$0xff]  ;;  %v8599_v47 = vld [vmem:[#allocation99_spill] sm:$0xff] }
 0x433   :  { %3845 = vst [vmem:[%s8204_s9 + $0x130] sm:$0xff] %v3717_v36  ;;  %4768 = vmatmul.msk.bf16.gmra.mxu0 %vm3261_vm9, %v7594_v53  ;;  %v8597_v36 = vld [vmem:[#allocation41_spill] sm:$0xff] }
 0x434   :  { %3846 = vst [vmem:[%s8204_s9 + $0x138] sm:$0xff] %v3718_v2  ;;  %4784 = vmatmul.msk.bf16.gmra.mxu1 %vm3261_vm9, %v7594_v53 }
 0x435   :  { %3847 = vst [vmem:[%s8204_s9 + $0x140] sm:$0xff] %v3719_v57  ;;  %4800 = vmatmul.msk.bf16.gmra.mxu2 %vm3261_vm9, %v7594_v53 }
 0x436   :  { %3848 = vst [vmem:[%s8204_s9 + $0x148] sm:$0xff] %v3720_v55  ;;  %4816 = vmatmul.msk.bf16.gmra.mxu3 %vm3261_vm9, %v7594_v53 }
 0x438   :  { %v3535_v16 = vpop.f32.mrf.mxu2  ;;  %v3359_v10 = vpop.f32.mrf.mxu0 }
 0x439   :  { %v3721_v38 = vmul.f32 %v3535_v16, %v8586_v28  ;;  %v3624_v30 = vpop.f32.mrf.mxu3  ;;  %v3723_v20 = vmul.f32 %v3359_v10, %v8588_v3  ;;  %v3448_v15 = vpop.f32.mrf.mxu1  ;;  %v8600_v16 = vld [vmem:[#allocation42_spill] sm:$0xff] }
 0x43a   :  { %v3722_v23 = vmul.f32 %v3624_v30, %v8587_v46  ;;  %v3724_v32 = vmul.f32 %v3448_v15, %v8589_v22  ;;  %v8601_v30 = vld [vmem:[#allocation43_spill] sm:$0xff]  ;;  %v8603_v22 = vld [vmem:[#allocation40_spill] sm:$0xff] }
 0x43b   :  { %3849 = vst [vmem:[%s8204_s9 + $0x150] sm:$0xff] %v3721_v38 }
 0x43c   :  { %3850 = vst [vmem:[%s8204_s9 + $0x158] sm:$0xff] %v3722_v23  ;;  %v8602_v23 = vld [vmem:[#allocation100_spill] sm:$0xff] }
 0x43d   :  { %3851 = vst [vmem:[%s8204_s9 + $0x160] sm:$0xff] %v3723_v20 }
 0x43e   :  { %3852 = vst [vmem:[%s8204_s9 + $0x168] sm:$0xff] %v3724_v32 }
 0x440   :  { %v3537_v53 = vpop.f32.mrf.mxu2  ;;  %v3362_v44 = vpop.f32.mrf.mxu0 }
 0x441   :  { %v3725_v54 = vmul.f32 %v3537_v53, %v8590_v51  ;;  %v3626_v0 = vpop.f32.mrf.mxu3  ;;  %v3727_v41 = vmul.f32 %v3362_v44, %v8592_v31  ;;  %v3451_v21 = vpop.f32.mrf.mxu1  ;;  %v8604_v53 = vld [vmem:[#allocation44_spill] sm:$0xff] }
 0x442   :  { %v3726_v49 = vmul.f32 %v3626_v0, %v8591_v25  ;;  %v3728_v52 = vmul.f32 %v3451_v21, %v8593_v50  ;;  %v8605_v0 = vld [vmem:[#allocation45_spill] sm:$0xff]  ;;  %v8607_v21 = vld [vmem:[#allocation102_spill] sm:$0xff] }
 0x443   :  { %3853 = vst [vmem:[%s8204_s9 + $0x170] sm:$0xff] %v3725_v54  ;;  %4769 = vmatmul.msk.bf16.gmra.mxu0 %vm3261_vm9, %v7625_v7  ;;  %v8606_v25 = vld [vmem:[#allocation101_spill] sm:$0xff] }
 0x444   :  { %3854 = vst [vmem:[%s8204_s9 + $0x178] sm:$0xff] %v3726_v49  ;;  %4785 = vmatmul.msk.bf16.gmra.mxu1 %vm3261_vm9, %v7625_v7 }
 0x445   :  { %3855 = vst [vmem:[%s8204_s9 + $0x180] sm:$0xff] %v3727_v41  ;;  %4801 = vmatmul.msk.bf16.gmra.mxu2 %vm3261_vm9, %v7625_v7 }
 0x446   :  { %3856 = vst [vmem:[%s8204_s9 + $0x188] sm:$0xff] %v3728_v52  ;;  %4817 = vmatmul.msk.bf16.gmra.mxu3 %vm3261_vm9, %v7625_v7  ;;  %v8608_v52 = vld [vmem:[#allocation46_spill] sm:$0xff] }
 0x448   :  { %v3540_v5 = vpop.f32.mrf.mxu2  ;;  %v3364_v1 = vpop.f32.mrf.mxu0 }
 0x449   :  { %v3729_v58 = vmul.f32 %v3540_v5, %v8594_v11  ;;  %v3629_v6 = vpop.f32.mrf.mxu3  ;;  %v3731_v62 = vmul.f32 %v3364_v1, %v8596_v27  ;;  %v3453_v14 = vpop.f32.mrf.mxu1 }
 0x44a   :  { %v3730_v29 = vmul.f32 %v3629_v6, %v8595_v26  ;;  %v3732_v24 = vmul.f32 %v3453_v14, %v8597_v36  ;;  %v8610_v26 = vld [vmem:[#allocation103_spill] sm:$0xff]  ;;  %v8611_v14 = vld [vmem:[#allocation104_spill] sm:$0xff] }
 0x44b   :  { %3857 = vst [vmem:[%s8204_s9 + $0x190] sm:$0xff] %v3729_v58  ;;  %v8609_v58 = vld [vmem:[#allocation47_spill] sm:$0xff] }
 0x44c   :  { %3858 = vst [vmem:[%s8204_s9 + $0x198] sm:$0xff] %v3730_v29 }
 0x44d   :  { %3859 = vst [vmem:[%s8204_s9 + $0x1a0] sm:$0xff] %v3731_v62 }
 0x44e   :  { %3860 = vst [vmem:[%s8204_s9 + $0x1a8] sm:$0xff] %v3732_v24  ;;  %v8612_v24 = vld [vmem:[#allocation48_spill] sm:$0xff] }
 0x450   :  { %v3542_v7 = vpop.f32.mrf.mxu2  ;;  %v3367_v57 = vpop.f32.mrf.mxu0 }
 0x451   :  { %v3733_v56 = vmul.f32 %v3542_v7, %v8598_v42  ;;  %v3631_v2 = vpop.f32.mrf.mxu3  ;;  %v3735_v28 = vmul.f32 %v3367_v57, %v8600_v16  ;;  %v3456_v38 = vpop.f32.mrf.mxu1 }
 0x452   :  { %v3734_v55 = vmul.f32 %v3631_v2, %v8599_v47  ;;  %v3736_v10 = vmul.f32 %v3456_v38, %v8601_v30  ;;  %v8614_v47 = vld [vmem:[#allocation105_spill] sm:$0xff] }
 0x453   :  { %3861 = vst [vmem:[%s8204_s9 + $0x1b0] sm:$0xff] %v3733_v56  ;;  %4770 = vmatmul.msk.bf16.gmra.mxu0 %vm3261_vm9, %v7671_v35  ;;  %v8613_v56 = vld [vmem:[#allocation49_spill] sm:$0xff] }
 0x454   :  { %3862 = vst [vmem:[%s8204_s9 + $0x1b8] sm:$0xff] %v3734_v55  ;;  %4786 = vmatmul.msk.bf16.gmra.mxu1 %vm3261_vm9, %v7671_v35  ;;  %v8615_v38 = vld [vmem:[#allocation9_spill] sm:$0xff] }
 0x455   :  { %3863 = vst [vmem:[%s8204_s9 + $0x1c0] sm:$0xff] %v3735_v28  ;;  %4802 = vmatmul.msk.bf16.gmra.mxu2 %vm3261_vm9, %v7671_v35 }
 0x456   :  { %3864 = vst [vmem:[%s8204_s9 + $0x1c8] sm:$0xff] %v3736_v10  ;;  %4818 = vmatmul.msk.bf16.gmra.mxu3 %vm3261_vm9, %v7671_v35 }
 0x458   :  { %v3545_v46 = vpop.f32.mrf.mxu2  ;;  %v3369_v15 = vpop.f32.mrf.mxu0 }
 0x459   :  { %v3737_v3 = vmul.f32 %v3545_v46, %v8602_v23  ;;  %v3634_v20 = vpop.f32.mrf.mxu3  ;;  %v3739_v51 = vmul.f32 %v3369_v15, %v8604_v53  ;;  %v3458_v54 = vpop.f32.mrf.mxu1 }
 0x45a   :  { %v3738_v32 = vmul.f32 %v3634_v20, %v8603_v22  ;;  %v3740_v44 = vmul.f32 %v3458_v54, %v8605_v0 }
 0x45b   :  { %3865 = vst [vmem:[%s8204_s9 + $0x1d0] sm:$0xff] %v3737_v3 }
 0x45c   :  { %3866 = vst [vmem:[%s8204_s9 + $0x1d8] sm:$0xff] %v3738_v32 }
 0x45d   :  { %3867 = vst [vmem:[%s8204_s9 + $0x1e0] sm:$0xff] %v3739_v51  ;;  %v8617_v51 = vld [vmem:[#allocation53_spill] sm:$0xff] }
 0x45e   :  { %3868 = vst [vmem:[%s8204_s9 + $0x1e8] sm:$0xff] %v3740_v44 }
 0x460   :  { %v3547_v35 = vpop.f32.mrf.mxu2  ;;  %v3372_v41 = vpop.f32.mrf.mxu0 }
 0x461   :  { %v3741_v49 = vmul.f32 %v3547_v35, %v8606_v25  ;;  %v3636_v31 = vpop.f32.mrf.mxu3  ;;  %v3743_v5 = vmul.f32 %v3372_v41, %v8608_v52  ;;  %v3461_v11 = vpop.f32.mrf.mxu1  ;;  %v8619_v25 = vld [vmem:[#allocation14_spill] sm:$0xff] }
 0x462   :  { %v3742_v50 = vmul.f32 %v3636_v31, %v8607_v21  ;;  %v3744_v6 = vmul.f32 %v3461_v11, %v8609_v58  ;;  %v8620_v31 = vld [vmem:[#allocation54_spill] sm:$0xff] }
 0x463   :  { %3869 = vst [vmem:[%s8204_s9 + $0x1f0] sm:$0xff] %v3741_v49 }
 0x464   :  { %3870 = vst [vmem:[%s8204_s9 + $0x1f8] sm:$0xff] %v3742_v50  ;;  %v8621_v50 = vld [vmem:[#allocation55_spill] sm:$0xff] }
 0x465   :  { %3871 = vst [vmem:[%s8204_s9 + $0x200] sm:$0xff] %v3743_v5 }
 0x466   :  { %3872 = vst [vmem:[%s8204_s9 + $0x208] sm:$0xff] %v3744_v6 }
 0x468   :  { %v3550_v1 = vpop.f32.mrf.mxu2  ;;  %v3374_v62 = vpop.f32.mrf.mxu0 }
 0x469   :  { %v3745_v29 = vmul.f32 %v3550_v1, %v8610_v26  ;;  %v3639_v27 = vpop.f32.mrf.mxu3  ;;  %v3747_v7 = vmul.f32 %v3374_v62, %v8612_v24  ;;  %v3463_v42 = vpop.f32.mrf.mxu1  ;;  %v8622_v1 = vld [vmem:[#allocation15_spill] sm:$0xff] }
 0x46a   :  { %v3746_v36 = vmul.f32 %v3639_v27, %v8611_v14  ;;  %v3748_v2 = vmul.f32 %v3463_v42, %v8613_v56  ;;  %v8624_v14 = vld [vmem:[#allocation57_spill] sm:$0xff]  ;;  %v8625_v24 = vld [vmem:[#allocation107_spill] sm:$0xff] }
 0x46b   :  { %3873 = vst [vmem:[%s8204_s9 + $0x210] sm:$0xff] %v3745_v29  ;;  %v8623_v29 = vld [vmem:[#allocation56_spill] sm:$0xff] }
 0x46c   :  { %3874 = vst [vmem:[%s8204_s9 + $0x218] sm:$0xff] %v3746_v36 }
 0x46d   :  { %3875 = vst [vmem:[%s8204_s9 + $0x220] sm:$0xff] %v3747_v7 }
 0x46e   :  { %3876 = vst [vmem:[%s8204_s9 + $0x228] sm:$0xff] %v3748_v2  ;;  %v8626_v2 = vld [vmem:[#allocation18_spill] sm:$0xff] }
 0x470   :  { %v3552_v57 = vpop.f32.mrf.mxu2  ;;  %v3377_v28 = vpop.f32.mrf.mxu0 }
 0x471   :  { %v3749_v55 = vmul.f32 %v3552_v57, %v8614_v47  ;;  %v3641_v16 = vpop.f32.mrf.mxu3  ;;  %v3751_v10 = vmul.f32 %v3377_v28, %v8527_v60  ;;  %v3466_v46 = vpop.f32.mrf.mxu1 }
 0x472   :  { %v3750_v30 = vmul.f32 %v3641_v16, %v8615_v38  ;;  %v3752_v23 = vmul.f32 %v3466_v46, %v8528_v12  ;;  %v8616_v12 = vld [vmem:[#allocation52_spill] sm:$0xff] }
 0x473   :  { %3877 = vst [vmem:[%s8204_s9 + $0x230] sm:$0xff] %v3749_v55 }
 0x474   :  { %3878 = vst [vmem:[%s8204_s9 + $0x238] sm:$0xff] %v3750_v30 }
 0x475   :  { %3879 = vst [vmem:[%s8204_s9 + $0x240] sm:$0xff] %v3751_v10  ;;  %v8627_v10 = vld [vmem:[#allocation19_spill] sm:$0xff] }
 0x476   :  { %3880 = vst [vmem:[%s8204_s9 + $0x248] sm:$0xff] %v3752_v23 }
 0x478   :  { %v3555_v60 = vpop.f32.mrf.mxu2  ;;  %v3379_v15 = vpop.f32.mrf.mxu0 }
 0x479   :  { %v3753_v3 = vmul.f32 %v3555_v60, %v6972_v37  ;;  %v3644_v20 = vpop.f32.mrf.mxu3  ;;  %v3755_v32 = vmul.f32 %v3379_v15, %v8616_v12  ;;  %v3468_v53 = vpop.f32.mrf.mxu1  ;;  %v8630_v15 = vld [vmem:[#allocation108_spill] sm:$0xff] }
 0x47a   :  { %v3754_v22 = vmul.f32 %v3644_v20, %v6976_v19  ;;  %v3756_v54 = vmul.f32 %v3468_v53, %v8617_v51  ;;  %v8618_v19 = vld [vmem:[#allocation106_spill] sm:$0xff] }
 0x47b   :  { %3881 = vst [vmem:[%s8204_s9 + $0x250] sm:$0xff] %v3753_v3  ;;  %v8629_v3 = vld [vmem:[#allocation61_spill] sm:$0xff]  ;;  %v8631_v53 = vld [vmem:[#allocation22_spill] sm:$0xff] }
 0x47c   :  { %3882 = vst [vmem:[%s8204_s9 + $0x258] sm:$0xff] %v3754_v22 }
 0x47d   :  { %3883 = vst [vmem:[%s8204_s9 + $0x260] sm:$0xff] %v3755_v32 }
 0x47e   :  { %3884 = vst [vmem:[%s8204_s9 + $0x268] sm:$0xff] %v3756_v54 }
 0x480   :  { %v3557_v37 = vpop.f32.mrf.mxu2  ;;  %v3382_v35 = vpop.f32.mrf.mxu0 }
 0x481   :  { %v3757_v0 = vmul.f32 %v3557_v37, %v8618_v19  ;;  %v3646_v44 = vpop.f32.mrf.mxu3  ;;  %v3759_v41 = vmul.f32 %v3382_v35, %v8620_v31  ;;  %v3471_v21 = vpop.f32.mrf.mxu1 }
 0x482   :  { %v3758_v49 = vmul.f32 %v3646_v44, %v8619_v25  ;;  %v3760_v52 = vmul.f32 %v3471_v21, %v8621_v50  ;;  %v8632_v25 = vld [vmem:[#allocation24_spill] sm:$0xff]  ;;  %v8634_v21 = vld [vmem:[#allocation65_spill] sm:$0xff] }
 0x483   :  { %3885 = vst [vmem:[%s8204_s9 + $0x270] sm:$0xff] %v3757_v0 }
 0x484   :  { %3886 = vst [vmem:[%s8204_s9 + $0x278] sm:$0xff] %v3758_v49 }
 0x485   :  { %3887 = vst [vmem:[%s8204_s9 + $0x280] sm:$0xff] %v3759_v41 }
 0x486   :  { %3888 = vst [vmem:[%s8204_s9 + $0x288] sm:$0xff] %v3760_v52  ;;  %v8635_v52 = vld [vmem:[#allocation109_spill] sm:$0xff] }
 0x488   :  { %v3560_v5 = vpop.f32.mrf.mxu2  ;;  %v3384_v6 = vpop.f32.mrf.mxu0 }
 0x489   :  { %v3761_v11 = vmul.f32 %v3560_v5, %v7000_v9  ;;  %v3649_v58 = vpop.f32.mrf.mxu3  ;;  %v3763_v27 = vmul.f32 %v3384_v6, %v8623_v29  ;;  %v3473_v62 = vpop.f32.mrf.mxu1  ;;  %v8636_v6 = vld [vmem:[#allocation30_spill] sm:$0xff] }
 0x48a   :  { %v3762_v26 = vmul.f32 %v3649_v58, %v8622_v1  ;;  %v3764_v36 = vmul.f32 %v3473_v62, %v8624_v14 }
 0x48b   :  { %3889 = vst [vmem:[%s8204_s9 + $0x290] sm:$0xff] %v3761_v11 }
 0x48c   :  { %3890 = vst [vmem:[%s8204_s9 + $0x298] sm:$0xff] %v3762_v26 }
 0x48d   :  { %3891 = vst [vmem:[%s8204_s9 + $0x2a0] sm:$0xff] %v3763_v27 }
 0x48e   :  { %3892 = vst [vmem:[%s8204_s9 + $0x2a8] sm:$0xff] %v3764_v36 }
 0x490   :  { %v3562_v9 = vpop.f32.mrf.mxu2  ;;  %v3387_v56 = vpop.f32.mrf.mxu0 }
 0x491   :  { %v3765_v7 = vmul.f32 %v3562_v9, %v8625_v24  ;;  %v3651_v42 = vpop.f32.mrf.mxu3  ;;  %v3767_v47 = vmul.f32 %v3387_v56, %v8535_v45  ;;  %v3476_v55 = vpop.f32.mrf.mxu1  ;;  %v8637_v9 = vld [vmem:[#allocation31_spill] sm:$0xff]  ;;  %v8639_v56 = vld [vmem:[#allocation69_spill] sm:$0xff] }
 0x492   :  { %v3766_v57 = vmul.f32 %v3651_v42, %v8626_v2  ;;  %v3768_v16 = vmul.f32 %v3476_v55, %v8536_v43  ;;  %v8628_v43 = vld [vmem:[#allocation60_spill] sm:$0xff] }
 0x493   :  { %3893 = vst [vmem:[%s8204_s9 + $0x2b0] sm:$0xff] %v3765_v7 }
 0x494   :  { %3894 = vst [vmem:[%s8204_s9 + $0x2b8] sm:$0xff] %v3766_v57  ;;  %v8640_v57 = vld [vmem:[#allocation110_spill] sm:$0xff] }
 0x495   :  { %3895 = vst [vmem:[%s8204_s9 + $0x2c0] sm:$0xff] %v3767_v47 }
 0x496   :  { %3896 = vst [vmem:[%s8204_s9 + $0x2c8] sm:$0xff] %v3768_v16 }
 0x498   :  { %v3565_v45 = vpop.f32.mrf.mxu2  ;;  %v3389_v30 = vpop.f32.mrf.mxu0 }
 0x499   :  { %v3769_v28 = vmul.f32 %v3565_v45, %v7028_v40  ;;  %v3654_v38 = vpop.f32.mrf.mxu3  ;;  %v3771_v23 = vmul.f32 %v3389_v30, %v8628_v43  ;;  %v3478_v60 = vpop.f32.mrf.mxu1  ;;  %v8641_v45 = vld [vmem:[#allocation111_spill] sm:$0xff] }
 0x49a   :  { %v3770_v46 = vmul.f32 %v3654_v38, %v8627_v10  ;;  %v3772_v20 = vmul.f32 %v3478_v60, %v8629_v3  ;;  %v8642_v60 = vld [vmem:[#allocation112_spill] sm:$0xff] }
 0x49b   :  { %3897 = vst [vmem:[%s8204_s9 + $0x2d0] sm:$0xff] %v3769_v28 }
 0x49c   :  { %3898 = vst [vmem:[%s8204_s9 + $0x2d8] sm:$0xff] %v3770_v46 }
 0x49d   :  { %3899 = vst [vmem:[%s8204_s9 + $0x2e0] sm:$0xff] %v3771_v23 }
 0x49e   :  { %3900 = vst [vmem:[%s8204_s9 + $0x2e8] sm:$0xff] %v3772_v20 }
 0x4a0   :  { %v3567_v40 = vpop.f32.mrf.mxu2  ;;  %v3392_v32 = vpop.f32.mrf.mxu0 }
 0x4a1   :  { %v3773_v22 = vmul.f32 %v3567_v40, %v8630_v15  ;;  %v3656_v12 = vpop.f32.mrf.mxu3  ;;  %v3775_v54 = vmul.f32 %v3392_v32, %v8539_v63  ;;  %v3481_v37 = vpop.f32.mrf.mxu1  ;;  %v8644_v15 = vld [vmem:[#allocation74_spill] sm:$0xff] }
 0x4a2   :  { %v3774_v51 = vmul.f32 %v3656_v12, %v8631_v53  ;;  %v3776_v19 = vmul.f32 %v3481_v37, %v8540_v48  ;;  %v8633_v48 = vld [vmem:[#allocation64_spill] sm:$0xff]  ;;  %v8645_v12 = vld [vmem:[#allocation113_spill] sm:$0xff] }
 0x4a3   :  { %3901 = vst [vmem:[%s8204_s9 + $0x2f0] sm:$0xff] %v3773_v22 }
 0x4a4   :  { %3902 = vst [vmem:[%s8204_s9 + $0x2f8] sm:$0xff] %v3774_v51 }
 0x4a5   :  { %3903 = vst [vmem:[%s8204_s9 + $0x300] sm:$0xff] %v3775_v54  ;;  %v8646_v54 = vld [vmem:[#allocation73_spill] sm:$0xff] }
 0x4a6   :  { %3904 = vst [vmem:[%s8204_s9 + $0x308] sm:$0xff] %v3776_v19 }
 0x4a8   :  { %v3570_v63 = vpop.f32.mrf.mxu2  ;;  %v3394_v35 = vpop.f32.mrf.mxu0 }
 0x4a9   :  { %v3777_v0 = vmul.f32 %v3570_v63, %v7056_v33  ;;  %v3659_v44 = vpop.f32.mrf.mxu3  ;;  %v3779_v31 = vmul.f32 %v3394_v35, %v8633_v48  ;;  %v3483_v41 = vpop.f32.mrf.mxu1 }
 0x4aa   :  { %v3778_v49 = vmul.f32 %v3659_v44, %v8632_v25  ;;  %v3780_v50 = vmul.f32 %v3483_v41, %v8634_v21  ;;  %v8649_v21 = vld [vmem:[#allocation79_spill] sm:$0xff] }
 0x4ab   :  { %3905 = vst [vmem:[%s8204_s9 + $0x310] sm:$0xff] %v3777_v0 }
 0x4ac   :  { %3906 = vst [vmem:[%s8204_s9 + $0x318] sm:$0xff] %v3778_v49  ;;  %v8647_v49 = vld [vmem:[#allocation76_spill] sm:$0xff] }
 0x4ad   :  { %3907 = vst [vmem:[%s8204_s9 + $0x320] sm:$0xff] %v3779_v31 }
 0x4ae   :  { %3908 = vst [vmem:[%s8204_s9 + $0x328] sm:$0xff] %v3780_v50 }
 0x4b0   :  { %v3572_v33 = vpop.f32.mrf.mxu2  ;;  %v3397_v58 = vpop.f32.mrf.mxu0 }
 0x4b1   :  { %v3781_v5 = vmul.f32 %v3572_v33, %v8635_v52  ;;  %v3661_v11 = vpop.f32.mrf.mxu3  ;;  %v3783_v26 = vmul.f32 %v3397_v58, %v8543_v39  ;;  %v3486_v29 = vpop.f32.mrf.mxu1  ;;  %v8650_v33 = vld [vmem:[#allocation114_spill] sm:$0xff] }
 0x4b2   :  { %v3782_v1 = vmul.f32 %v3661_v11, %v8636_v6  ;;  %v3784_v27 = vmul.f32 %v3486_v29, %v8544_v18  ;;  %v8638_v18 = vld [vmem:[#allocation68_spill] sm:$0xff]  ;;  %v8651_v11 = vld [vmem:[#allocation115_spill] sm:$0xff] }
 0x4b3   :  { %3909 = vst [vmem:[%s8204_s9 + $0x330] sm:$0xff] %v3781_v5 }
 0x4b4   :  { %3910 = vst [vmem:[%s8204_s9 + $0x338] sm:$0xff] %v3782_v1 }
 0x4b5   :  { %3911 = vst [vmem:[%s8204_s9 + $0x340] sm:$0xff] %v3783_v26 }
 0x4b6   :  { %3912 = vst [vmem:[%s8204_s9 + $0x348] sm:$0xff] %v3784_v27 }
 0x4b8   :  { %v3575_v39 = vpop.f32.mrf.mxu2  ;;  %v3399_v36 = vpop.f32.mrf.mxu0 }
 0x4b9   :  { %v3785_v62 = vmul.f32 %v3575_v39, %v7084_v17  ;;  %v3664_v14 = vpop.f32.mrf.mxu3  ;;  %v3787_v7 = vmul.f32 %v3399_v36, %v8638_v18  ;;  %v3488_v42 = vpop.f32.mrf.mxu1 }
 0x4ba   :  { %v3786_v24 = vmul.f32 %v3664_v14, %v8637_v9  ;;  %v3788_v2 = vmul.f32 %v3488_v42, %v8639_v56 }
 0x4bb   :  { %3913 = vst [vmem:[%s8204_s9 + $0x350] sm:$0xff] %v3785_v62 }
 0x4bc   :  { %3914 = vst [vmem:[%s8204_s9 + $0x358] sm:$0xff] %v3786_v24 }
 0x4bd   :  { %3915 = vst [vmem:[%s8204_s9 + $0x360] sm:$0xff] %v3787_v7 }
 0x4be   :  { %3916 = vst [vmem:[%s8204_s9 + $0x368] sm:$0xff] %v3788_v2 }
 0x4c0   :  { %v3577_v17 = vpop.f32.mrf.mxu2  ;;  %v3402_v16 = vpop.f32.mrf.mxu0 }
 0x4c1   :  { %v3789_v47 = vmul.f32 %v3577_v17, %v8640_v57  ;;  %v3666_v55 = vpop.f32.mrf.mxu3  ;;  %v3791_v38 = vmul.f32 %v3402_v16, %v8547_v13  ;;  %v3491_v30 = vpop.f32.mrf.mxu1 }
 0x4c2   :  { %v3790_v28 = vmul.f32 %v3666_v55, %v8641_v45  ;;  %v3792_v10 = vmul.f32 %v3491_v30, %v8548_v8  ;;  %v8643_v8 = vld [vmem:[#allocation72_spill] sm:$0xff] }
 0x4c3   :  { %3917 = vst [vmem:[%s8204_s9 + $0x370] sm:$0xff] %v3789_v47 }
 0x4c4   :  { %3918 = vst [vmem:[%s8204_s9 + $0x378] sm:$0xff] %v3790_v28 }
 0x4c5   :  { %3919 = vst [vmem:[%s8204_s9 + $0x380] sm:$0xff] %v3791_v38 }
 0x4c6   :  { %3920 = vst [vmem:[%s8204_s9 + $0x388] sm:$0xff] %v3792_v10 }
 0x4c8   :  { %v3580_v13 = vpop.f32.mrf.mxu2  ;;  %v3404_v23 = vpop.f32.mrf.mxu0 }
 0x4c9   :  { %v3793_v46 = vmul.f32 %v3580_v13, %v7112_v34  ;;  %v3669_v43 = vpop.f32.mrf.mxu3  ;;  %v3795_v20 = vmul.f32 %v3404_v23, %v8643_v8  ;;  %v3493_v40 = vpop.f32.mrf.mxu1 }
 0x4ca   :  { %v3794_v3 = vmul.f32 %v3669_v43, %v8642_v60  ;;  %v3796_v22 = vmul.f32 %v3493_v40, %v8644_v15 }
 0x4cb   :  { %3921 = vst [vmem:[%s8204_s9 + $0x390] sm:$0xff] %v3793_v46 }
 0x4cc   :  { %3922 = vst [vmem:[%s8204_s9 + $0x398] sm:$0xff] %v3794_v3 }
 0x4cd   :  { %3923 = vst [vmem:[%s8204_s9 + $0x3a0] sm:$0xff] %v3795_v20 }
 0x4ce   :  { %3924 = vst [vmem:[%s8204_s9 + $0x3a8] sm:$0xff] %v3796_v22 }
 0x4d0   :  { %v3582_v34 = vpop.f32.mrf.mxu2  ;;  %v3407_v51 = vpop.f32.mrf.mxu0 }
 0x4d1   :  { %v3797_v32 = vmul.f32 %v3582_v34, %v8645_v12  ;;  %v3671_v53 = vpop.f32.mrf.mxu3  ;;  %v3799_v19 = vmul.f32 %v3407_v51, %v8551_v59  ;;  %v3496_v63 = vpop.f32.mrf.mxu1 }
 0x4d2   :  { %v3798_v37 = vmul.f32 %v3671_v53, %v8646_v54  ;;  %v3800_v0 = vmul.f32 %v3496_v63, %v8552_v61  ;;  %v8648_v61 = vld [vmem:[#allocation78_spill] sm:$0xff] }
 0x4d3   :  { %3925 = vst [vmem:[%s8204_s9 + $0x3b0] sm:$0xff] %v3797_v32 }
 0x4d4   :  { %3926 = vst [vmem:[%s8204_s9 + $0x3b8] sm:$0xff] %v3798_v37 }
 0x4d5   :  { %3927 = vst [vmem:[%s8204_s9 + $0x3c0] sm:$0xff] %v3799_v19 }
 0x4d6   :  { %3928 = vst [vmem:[%s8204_s9 + $0x3c8] sm:$0xff] %v3800_v0 }
 0x4d8   :  { %v3585_v59 = vpop.f32.mrf.mxu2  ;;  %v3409_v25 = vpop.f32.mrf.mxu0 }
 0x4d9   :  { %v3801_v44 = vmul.f32 %v3585_v59, %v7152_v4  ;;  %v3674_v35 = vpop.f32.mrf.mxu3  ;;  %v3803_v31 = vmul.f32 %v3409_v25, %v8648_v61  ;;  %v3498_v41 = vpop.f32.mrf.mxu1 }
 0x4da   :  { %v3802_v48 = vmul.f32 %v3674_v35, %v8647_v49  ;;  %v3804_v50 = vmul.f32 %v3498_v41, %v8649_v21 }
 0x4db   :  { %3929 = vst [vmem:[%s8204_s9 + $0x3d0] sm:$0xff] %v3801_v44 }
 0x4dc   :  { %3930 = vst [vmem:[%s8204_s9 + $0x3d8] sm:$0xff] %v3802_v48 }
 0x4dd   :  { %3931 = vst [vmem:[%s8204_s9 + $0x3e0] sm:$0xff] %v3803_v31 }
 0x4de   :  { %3932 = vst [vmem:[%s8204_s9 + $0x3e8] sm:$0xff] %v3804_v50 }
 0x4e0   :  { %v3587_v4 = vpop.f32.mrf.mxu2 }
 0x4e1   :  { %v3805_v52 = vmul.f32 %v3587_v4, %v8650_v33  ;;  %v3676_v5 = vpop.f32.mrf.mxu3 }
 0x4e2   :  { %v3806_v58 = vmul.f32 %v3676_v5, %v8651_v11 }
 0x4e3   :  { %3933 = vst [vmem:[%s8204_s9 + $0x3f0] sm:$0xff] %v3805_v52 }
 0x4e4   :  { %3934 = vst [vmem:[%s8204_s9 + $0x3f8] sm:$0xff] %v3806_v58 }
 0x4e5   :  { %5114 = dma.done.wait [#allocation3], 64  }
 0x4e6   :  { %5115 = vsyncadd [#allocation3], 4294967232 }
 0x4e7   :  { %3954 = vsyncpa [#allocation3], 1 }

</bundles_post_ra>
